<compile_context>
chip_gen: v7x
topology: tpu7x:2x2x1
jax: 0.10.0
libtpu: 0.0.40
codegen_flags: <defaults>
</compile_context>

<pallas_src>
import jax
import jax.numpy as jnp
import numpy as np
from jax.experimental import pallas as pl
from jax.experimental.pallas import tpu as pltpu

_VMEM_LIMIT = 32 * 1024 * 1024  # footprint <= ~15 MiB at tile_n=1024; v5e default is 16 MiB


# ----------------------------------------------------------------------------
# In-kernel helpers (traced inside kernel bodies)
# ----------------------------------------------------------------------------
def _relu_mm(x_bf16, w, b):
    """(tile, Cin) bf16 @ (Cin, Cout) bf16 -> f32 accumulate, +bias, ReLU."""
    return jnp.maximum(
        jnp.dot(x_bf16, w, preferred_element_type=jnp.float32) + b, 0.0)


def _mlp1_tile(x, mw1, mb1, mw2, mb2):
    """mlp1 on one tile; the input transform is already folded into mw1 (per batch)."""
    h = _relu_mm(x, mw1, mb1)                                    # (tile, 64) f32
    x64 = jnp.dot(h.astype(jnp.bfloat16), mw2,
                  preferred_element_type=jnp.float32) + mb2      # no ReLU (last mlp1 conv)
    return x64.astype(jnp.bfloat16)


def _fc_head(feat_f32, fw1, fb1, fw2, fb2, fw3, fb3):
    """STN fc head on the (1, 1024) max feature; identity already folded into fb3."""
    g = _relu_mm(feat_f32.astype(jnp.bfloat16), fw1, fb1)
    g = _relu_mm(g.astype(jnp.bfloat16), fw2, fb2)
    return jnp.dot(g.astype(jnp.bfloat16), fw3,
                   preferred_element_type=jnp.float32) + fb3


def _tile_max_accumulate(max_sc, h):
    """Accumulate the per-tile max into an 8-row scratch with pure elementwise (VPU)
    maxima over sublane-aligned 8-row groups; the 8->1 cross-sublane (XLU) collapse
    is deferred to the last N tile."""
    part = h[0:8, :]
    for r in range(8, h.shape[0], 8):
        part = jnp.maximum(part, h[r:r + 8, :])
    max_sc[...] = jnp.maximum(max_sc[...], part)


# ----------------------------------------------------------------------------
# Pallas kernels
# ----------------------------------------------------------------------------
def stn3_kernel(x_ref, w1_ref, b1_ref, w2_ref, b2_ref, w3_ref, b3_ref,
                fw1_ref, fb1_ref, fw2_ref, fb2_ref, fw3_ref, fb3_ref,
                o_ref, max_sc):
    """STN(k=3): 3x(1x1 conv + folded-BN + ReLU) per tile, running max over N tiles,
    fused fc head on the last tile."""
    nk = pl.program_id(1)

    @pl.when(nk == 0)
    def _():
        max_sc[...] = jnp.full_like(max_sc, -jnp.inf)

    h = _relu_mm(x_ref[0], w1_ref[...], b1_ref[...])                     # (tile, 64)
    h = _relu_mm(h.astype(jnp.bfloat16), w2_ref[...], b2_ref[...])       # (tile, 128)
    h = _relu_mm(h.astype(jnp.bfloat16), w3_ref[...], b3_ref[...])       # (tile, 1024)
    _tile_max_accumulate(max_sc, h)

    @pl.when(nk == pl.num_programs(1) - 1)
    def _():
        feat = jnp.max(max_sc[...], axis=0, keepdims=True)               # (1, 1024) f32
        o_ref[0] = _fc_head(feat, fw1_ref[...], fb1_ref[...], fw2_ref[...],
                            fb2_ref[...], fw3_ref[...], fb3_ref[...])


def stn64_fused_kernel(x_ref, mw1_ref, mb1_ref, mw2_ref, mb2_ref,
                       w1_ref, b1_ref, w2_ref, b2_ref, w3_ref, b3_ref,
                       fw1_ref, fb1_ref, fw2_ref, fb2_ref, fw3_ref, fb3_ref,
                       o_ref, max_sc):
    """mlp1 (t3 pre-folded into mw1 per batch) recomputed per tile, then STN(k=64)
    conv chain + running max + fused fc head. No [B,N,64] HBM intermediate."""
    nk = pl.program_id(1)

    @pl.when(nk == 0)
    def _():
        max_sc[...] = jnp.full_like(max_sc, -jnp.inf)

    x64 = _mlp1_tile(x_ref[0], mw1_ref[0], mb1_ref[...], mw2_ref[...], mb2_ref[...])
    h = _relu_mm(x64, w1_ref[...], b1_ref[...])                          # (tile, 64)
    h = _relu_mm(h.astype(jnp.bfloat16), w2_ref[...], b2_ref[...])       # (tile, 128)
    h = _relu_mm(h.astype(jnp.bfloat16), w3_ref[...], b3_ref[...])       # (tile, 1024)
    _tile_max_accumulate(max_sc, h)

    @pl.when(nk == pl.num_programs(1) - 1)
    def _():
        feat = jnp.max(max_sc[...], axis=0, keepdims=True)
        o_ref[0] = _fc_head(feat, fw1_ref[...], fb1_ref[...], fw2_ref[...],
                            fb2_ref[...], fw3_ref[...], fb3_ref[...])


def mlp2_fused_kernel(x_ref, mw1_ref, mb1_ref, mw2_ref, mb2_ref,
                      tw1_ref, b1_ref, w2_ref, b2_ref, w3_ref, b3_ref,
                      o_ref, max_sc):
    """mlp1 (t3 folded) recomputed per tile, feature transform t64 pre-folded into
    mlp2's first conv weight (per batch), mlp2 chain + running max over N tiles."""
    nk = pl.program_id(1)

    @pl.when(nk == 0)
    def _():
        max_sc[...] = jnp.full_like(max_sc, -jnp.inf)

    x64 = _mlp1_tile(x_ref[0], mw1_ref[0], mb1_ref[...], mw2_ref[...], mb2_ref[...])
    h = _relu_mm(x64, tw1_ref[0], b1_ref[...])                           # (tile, 64)
    h = _relu_mm(h.astype(jnp.bfloat16), w2_ref[...], b2_ref[...])       # (tile, 128)
    h = jnp.dot(h.astype(jnp.bfloat16), w3_ref[...],
                preferred_element_type=jnp.float32) + b3_ref[...]        # (tile, 1024)
    _tile_max_accumulate(max_sc, h)

    @pl.when(nk == pl.num_programs(1) - 1)
    def _():
        o_ref[0] = jnp.max(max_sc[...], axis=0, keepdims=True)


# ----------------------------------------------------------------------------
# pallas_call wrappers
# ----------------------------------------------------------------------------
def _const_spec(shape):
    return pl.BlockSpec(shape, lambda *_: (0,) * len(shape))


def _choose_tile_n(n):
    # Biggest tile that keeps the (tile, 1024) f32 intermediate + double-buffered
    # weights around ~15 MiB; correctness of N-padding relies on replicating the
    # LAST POINT (max-safe) — do not switch to zero padding.
    if n >= 1024:
        return 1024
    return ((n + 7) // 8) * 8


def _bf16(a):
    return a.astype(jnp.bfloat16)


def fold_bn(w, b, bn, eps=1e-5):
    gamma, beta, mean, var = bn
    scale = gamma * jax.lax.rsqrt(var + eps)
    return w * scale[None, :], (b - mean) * scale + beta


def _stn_folded_weights(sp, k, cin_pad=None):
    """Fold BN into STN conv/fc weights, pad conv1 input rows to cin_pad, fold the
    flattened identity into the final fc bias, pad k*k output to a 128 multiple."""
    w1, b1 = fold_bn(sp["c1_w"], sp["c1_b"], sp["bn1"])
    if cin_pad is not None and cin_pad != w1.shape[0]:
        w1 = jnp.pad(w1, ((0, cin_pad - w1.shape[0]), (0, 0)))   # zero rows for padded channels
    w2, b2 = fold_bn(sp["c2_w"], sp["c2_b"], sp["bn2"])
    w3, b3 = fold_bn(sp["c3_w"], sp["c3_b"], sp["bn3"])
    fw1, fb1 = fold_bn(sp["f1_w"], sp["f1_b"], sp["fbn1"])
    fw2, fb2 = fold_bn(sp["f2_w"], sp["f2_b"], sp["fbn2"])
    kk = k * k
    kkp = ((kk + 127) // 128) * 128
    fw3 = sp["f3_w"]
    fb3 = sp["f3_b"] + jnp.eye(k, dtype=jnp.float32).reshape(kk)
    if kkp != kk:                                                # lane-dense output store
        fw3 = jnp.pad(fw3, ((0, 0), (0, kkp - kk)))
        fb3 = jnp.pad(fb3, (0, kkp - kk))
    return w1, b1, w2, b2, w3, b3, fw1, fb1, fw2, fb2, fw3, fb3, kk, kkp


def _compiler_params():
    return pltpu.CompilerParams(
        dimension_semantics=("parallel", "arbitrary"),
        vmem_limit_bytes=_VMEM_LIMIT,
    )


def stn3_forward(x8, sp, tile_n):
    B, Np, Cp = x8.shape
    (w1, b1, w2, b2, w3, b3, fw1, fb1, fw2, fb2, fw3, fb3,
     kk, kkp) = _stn_folded_weights(sp, 3, cin_pad=Cp)
    args = (x8,
            _bf16(w1), b1[None], _bf16(w2), b2[None], _bf16(w3), b3[None],
            _bf16(fw1), fb1[None], _bf16(fw2), fb2[None], _bf16(fw3), fb3[None])
    in_specs = [pl.BlockSpec((1, tile_n, Cp), lambda b, n: (b, n, 0))]
    in_specs += [_const_spec(a.shape) for a in args[1:]]
    out = pl.pallas_call(
        stn3_kernel,
        out_shape=jax.ShapeDtypeStruct((B, 1, kkp), jnp.float32),
        grid=(B, Np // tile_n),
        in_specs=in_specs,
        out_specs=pl.BlockSpec((1, 1, kkp), lambda b, n: (b, 0, 0)),
        scratch_shapes=[pltpu.VMEM((8, 1024), jnp.float32)],
        compiler_params=_compiler_params(),
    )(*args)
    return out[:, 0, :kk].reshape(B, 3, 3)


def stn64_mlp1_forward(x8, tw1_m1, m1b1, m1w2, m1b2, sp, tile_n):
    B, Np, Cp = x8.shape
    (w1, b1, w2, b2, w3, b3, fw1, fb1, fw2, fb2, fw3, fb3,
     kk, kkp) = _stn_folded_weights(sp, 64)
    args = (x8, _bf16(tw1_m1), m1b1[None], _bf16(m1w2), m1b2[None],
            _bf16(w1), b1[None], _bf16(w2), b2[None], _bf16(w3), b3[None],
            _bf16(fw1), fb1[None], _bf16(fw2), fb2[None], _bf16(fw3), fb3[None])
    in_specs = [pl.BlockSpec((1, tile_n, Cp), lambda b, n: (b, n, 0)),
                pl.BlockSpec((1, Cp, 64), lambda b, n: (b, 0, 0))]  # per-batch folded mlp1 w1
    in_specs += [_const_spec(a.shape) for a in args[2:]]
    out = pl.pallas_call(
        stn64_fused_kernel,
        out_shape=jax.ShapeDtypeStruct((B, 1, kkp), jnp.float32),
        grid=(B, Np // tile_n),
        in_specs=in_specs,
        out_specs=pl.BlockSpec((1, 1, kkp), lambda b, n: (b, 0, 0)),
        scratch_shapes=[pltpu.VMEM((8, 1024), jnp.float32)],
        compiler_params=_compiler_params(),
    )(*args)
    return out[:, 0, :kk].reshape(B, 64, 64)


def mlp2_fused_forward(x8, tw1_m1, m1b1, m1w2, m1b2, tw1_m2, b1, w2, b2, w3, b3, tile_n):
    B, Np, Cp = x8.shape
    args = (x8, _bf16(tw1_m1), m1b1[None], _bf16(m1w2), m1b2[None],
            _bf16(tw1_m2), b1[None], _bf16(w2), b2[None], _bf16(w3), b3[None])
    in_specs = [pl.BlockSpec((1, tile_n, Cp), lambda b, n: (b, n, 0)),
                pl.BlockSpec((1, Cp, 64), lambda b, n: (b, 0, 0)),   # per-batch folded mlp1 w1
                _const_spec(args[2].shape),
                _const_spec(args[3].shape), _const_spec(args[4].shape),
                pl.BlockSpec((1, 64, 64), lambda b, n: (b, 0, 0)),   # per-batch t64-folded mlp2 w1
                _const_spec(args[6].shape),
                _const_spec(args[7].shape), _const_spec(args[8].shape),
                _const_spec(args[9].shape), _const_spec(args[10].shape)]
    return pl.pallas_call(
        mlp2_fused_kernel,
        out_shape=jax.ShapeDtypeStruct((B, 1, 1024), jnp.float32),
        grid=(B, Np // tile_n),
        in_specs=in_specs,
        out_specs=pl.BlockSpec((1, 1, 1024), lambda b, n: (b, 0, 0)),
        scratch_shapes=[pltpu.VMEM((8, 1024), jnp.float32)],
        compiler_params=_compiler_params(),
    )(*args)


# ----------------------------------------------------------------------------
# Parameters (deterministic synthetic init)
# ----------------------------------------------------------------------------
def make_bn_params(key, c):
    k1, k2, k3, k4 = jax.random.split(key, 4)
    return (1.0 + 0.1 * jax.random.normal(k1, (c,), jnp.float32),
            0.1 * jax.random.normal(k2, (c,), jnp.float32),
            0.1 * jax.random.normal(k3, (c,), jnp.float32),
            1.0 + 0.1 * jnp.abs(jax.random.normal(k4, (c,), jnp.float32)))


def make_linear(key, cin, cout, scale=0.1):
    kw, kb = jax.random.split(key)
    return (scale * jax.random.normal(kw, (cin, cout), jnp.float32),
            scale * jax.random.normal(kb, (cout,), jnp.float32))


def make_stn_params(key, k):
    ks = jax.random.split(key, 11)
    p = {}
    p["c1_w"], p["c1_b"] = make_linear(ks[0], k, 64)
    p["bn1"] = make_bn_params(ks[1], 64)
    p["c2_w"], p["c2_b"] = make_linear(ks[2], 64, 128)
    p["bn2"] = make_bn_params(ks[3], 128)
    p["c3_w"], p["c3_b"] = make_linear(ks[4], 128, 1024)
    p["bn3"] = make_bn_params(ks[5], 1024)
    p["f1_w"], p["f1_b"] = make_linear(ks[6], 1024, 512)
    p["fbn1"] = make_bn_params(ks[7], 512)
    p["f2_w"], p["f2_b"] = make_linear(ks[8], 512, 256)
    p["fbn2"] = make_bn_params(ks[9], 256)
    p["f3_w"], p["f3_b"] = make_linear(ks[10], 256, k * k)
    return p


def make_params(key):
    ks = jax.random.split(key, 10)
    p = {"stn3": make_stn_params(ks[0], 3), "stn64": make_stn_params(ks[1], 64)}
    p["m1_w1"], p["m1_b1"] = make_linear(ks[2], 3, 64)
    p["m1_bn1"] = make_bn_params(ks[3], 64)
    p["m1_w2"], p["m1_b2"] = make_linear(ks[4], 64, 64)
    p["m2_w1"], p["m2_b1"] = make_linear(ks[5], 64, 64)
    p["m2_bn1"] = make_bn_params(ks[6], 64)
    p["m2_w2"], p["m2_b2"] = make_linear(ks[7], 64, 128)
    p["m2_bn2"] = make_bn_params(ks[8], 128)
    p["m2_w3"], p["m2_b3"] = make_linear(ks[9], 128, 1024)
    return p


# ----------------------------------------------------------------------------
# Forward (Pallas) + pure-JAX reference
# ----------------------------------------------------------------------------
def pointnet_feat_forward(pointcloud, p):
    """pointcloud: [B,N,3] -> (global feature [B,1,1024], stn3 [B,3,3], stn64 [B,64,64])."""
    B, N, _ = pointcloud.shape
    tile_n = _choose_tile_n(N)
    Np = ((N + tile_n - 1) // tile_n) * tile_n
    pc = pointcloud
    if Np != N:
        # Pad N by replicating the last point: safe under max pooling, and the
        # duplicate rows never influence any returned tensor.
        pad = jnp.broadcast_to(pc[:, -1:, :], (B, Np - N, 3))
        pc = jnp.concatenate([pc, pad], axis=1)

    # Channels 3 -> 8 zero pad (sublane-friendly small K); bf16 for the MXU.
    x8 = _bf16(jnp.pad(pc, ((0, 0), (0, 0), (0, 5))))                    # [B, Np, 8]

    # --- input STN ---
    t3 = stn3_forward(x8, p["stn3"], tile_n)                             # [B, 3, 3] f32

    # Fold (BN, t3) into mlp1's first conv weight: once per batch, in f32.
    m1w1, m1b1 = fold_bn(p["m1_w1"], p["m1_b1"], p["m1_bn1"])
    tw1_m1 = jnp.einsum("bij,jk->bik", t3, m1w1,
                        precision=jax.lax.Precision.HIGHEST)             # [B, 3, 64]
    tw1_m1 = jnp.pad(tw1_m1, ((0, 0), (0, 5), (0, 0)))                   # [B, 8, 64]

    # --- feature STN (mlp1 fused into the kernel; no x64 HBM round-trip) ---
    t64 = stn64_mlp1_forward(x8, tw1_m1, m1b1, p["m1_w2"], p["m1_b2"],
                             p["stn64"], tile_n)                         # [B, 64, 64] f32

    # Fold (BN, t64) into mlp2's first conv weight: once per batch, in f32.
    m2w1, m2b1 = fold_bn(p["m2_w1"], p["m2_b1"], p["m2_bn1"])
    m2w2, m2b2 = fold_bn(p["m2_w2"], p["m2_b2"], p["m2_bn2"])
    tw1_m2 = jnp.einsum("bij,jk->bik", t64, m2w1,
                        precision=jax.lax.Precision.HIGHEST)             # [B, 64, 64]

    # --- mlp2 + global max (mlp1 fused into the kernel) ---
    gf = mlp2_fused_forward(x8, tw1_m1, m1b1, p["m1_w2"], p["m1_b2"],
                            tw1_m2, m2b1, m2w2, m2b2,
                            p["m2_w3"], p["m2_b3"], tile_n)              # [B, 1, 1024]
    return gf, t3, t64


def ref_stn(x_cl, sp, k):
    w1, b1 = fold_bn(sp["c1_w"], sp["c1_b"], sp["bn1"])
    w2, b2 = fold_bn(sp["c2_w"], sp["c2_b"], sp["bn2"])
    w3, b3 = fold_bn(sp["c3_w"], sp["c3_b"], sp["bn3"])
    h = jnp.maximum(x_cl @ w1 + b1, 0.0)
    h = jnp.maximum(h @ w2 + b2, 0.0)
    h = jnp.maximum(h @ w3 + b3, 0.0)
    feat = h.max(axis=1)
    fw1, fb1 = fold_bn(sp["f1_w"], sp["f1_b"], sp["fbn1"])
    fw2, fb2 = fold_bn(sp["f2_w"], sp["f2_b"], sp["fbn2"])
    g = jnp.maximum(feat @ fw1 + fb1, 0.0)
    g = jnp.maximum(g @ fw2 + fb2, 0.0)
    g = g @ sp["f3_w"] + sp["f3_b"] + jnp.eye(k, dtype=jnp.float32).reshape(1, k * k)
    return g.reshape(-1, k, k)


def ref_forward(pc, p):
    t3 = ref_stn(pc, p["stn3"], 3)
    x = pc @ t3
    w1, b1 = fold_bn(p["m1_w1"], p["m1_b1"], p["m1_bn1"])
    x64 = jnp.maximum(x @ w1 + b1, 0.0) @ p["m1_w2"] + p["m1_b2"]
    t64 = ref_stn(x64, p["stn64"], 64)
    x2 = x64 @ t64
    w1f, b1f = fold_bn(p["m2_w1"], p["m2_b1"], p["m2_bn1"])
    w2f, b2f = fold_bn(p["m2_w2"], p["m2_b2"], p["m2_bn2"])
    h = jnp.maximum(x2 @ w1f + b1f, 0.0)
    h = jnp.maximum(h @ w2f + b2f, 0.0)
    h = h @ p["m2_w3"] + p["m2_b3"]
    return h.max(axis=1)[:, None, :], t3, t64


def _assert_close(name, actual, desired, rel):
    desired = np.asarray(desired, dtype=np.float32)
    actual = np.asarray(actual, dtype=np.float32)
    scale = max(float(np.max(np.abs(desired))), 1.0)
    np.testing.assert_allclose(actual, desired, rtol=rel, atol=rel * scale, err_msg=name)


# ----------------------------------------------------------------------------
if __name__ == "__main__":
    key = jax.random.PRNGKey(0)
    kp_, kd_ = jax.random.split(key)
    params = make_params(kp_)

    B, N = 2, 64
    pointcloud = jax.random.normal(kd_, (B, N, 3), dtype=jnp.float32)

    gf, t3, t64 = pointnet_feat_forward(pointcloud, params)
    jax.block_until_ready((gf, t3, t64))

    assert gf.shape == (B, 1, 1024)
    assert t3.shape == (B, 3, 3)
    assert t64.shape == (B, 64, 64)

    with jax.default_matmul_precision("float32"):
        ref_gf, ref_t3, ref_t64 = ref_forward(pointcloud, params)

    # bf16 MXU operands with f32 accumulation: compare against the f32 reference
    # with a tolerance scaled to each tensor's magnitude.
    _assert_close("stn3", t3, ref_t3, rel=2e-2)
    _assert_close("stn64", t64, ref_t64, rel=3e-2)
    _assert_close("global_feature", gf, ref_gf, rel=3e-2)

    print("KERNEL_OK")
</pallas_src>

<mosaic_0001>
module attributes {stable_mosaic.version = 11 : i64} {
  func.func @stn3_kernel(%arg0: i32, %arg1: i32, %arg2: memref<1x64x8xbf16, #tpu.memory_space<vmem>>, %arg3: memref<8x64xbf16, #tpu.memory_space<vmem>>, %arg4: memref<1x64xf32, #tpu.memory_space<vmem>>, %arg5: memref<64x128xbf16, #tpu.memory_space<vmem>>, %arg6: memref<1x128xf32, #tpu.memory_space<vmem>>, %arg7: memref<128x1024xbf16, #tpu.memory_space<vmem>>, %arg8: memref<1x1024xf32, #tpu.memory_space<vmem>>, %arg9: memref<1024x512xbf16, #tpu.memory_space<vmem>>, %arg10: memref<1x512xf32, #tpu.memory_space<vmem>>, %arg11: memref<512x256xbf16, #tpu.memory_space<vmem>>, %arg12: memref<1x256xf32, #tpu.memory_space<vmem>>, %arg13: memref<256x128xbf16, #tpu.memory_space<vmem>>, %arg14: memref<1x128xf32, #tpu.memory_space<vmem>>, %arg15: memref<1x1x128xf32, #tpu.memory_space<vmem>>, %arg16: memref<8x1024xf32, #tpu.memory_space<vmem>>) attributes {dimension_semantics = [#tpu.dimension_semantics<parallel>, #tpu.dimension_semantics<arbitrary>], iteration_bounds = array<i64: 2, 1>, scalar_prefetch = 0 : i64, scratch_operands = 1 : i64, tpu.core_type = #tpu.core_type<tc>, window_params = [{transform_indices = @transform_0, window_bounds = array<i64: 1, 64, 8>}, {pipeline_mode = #tpu.pipeline_mode<synchronous>, transform_indices = @transform_1, window_bounds = array<i64: 8, 64>}, {pipeline_mode = #tpu.pipeline_mode<synchronous>, transform_indices = @transform_2, window_bounds = array<i64: 1, 64>}, {pipeline_mode = #tpu.pipeline_mode<synchronous>, transform_indices = @transform_3, window_bounds = array<i64: 64, 128>}, {pipeline_mode = #tpu.pipeline_mode<synchronous>, transform_indices = @transform_4, window_bounds = array<i64: 1, 128>}, {pipeline_mode = #tpu.pipeline_mode<synchronous>, transform_indices = @transform_5, window_bounds = array<i64: 128, 1024>}, {pipeline_mode = #tpu.pipeline_mode<synchronous>, transform_indices = @transform_6, window_bounds = array<i64: 1, 1024>}, {pipeline_mode = #tpu.pipeline_mode<synchronous>, transform_indices = @transform_7, window_bounds = array<i64: 1024, 512>}, {pipeline_mode = #tpu.pipeline_mode<synchronous>, transform_indices = @transform_8, window_bounds = array<i64: 1, 512>}, {pipeline_mode = #tpu.pipeline_mode<synchronous>, transform_indices = @transform_9, window_bounds = array<i64: 512, 256>}, {pipeline_mode = #tpu.pipeline_mode<synchronous>, transform_indices = @transform_10, window_bounds = array<i64: 1, 256>}, {pipeline_mode = #tpu.pipeline_mode<synchronous>, transform_indices = @transform_11, window_bounds = array<i64: 256, 128>}, {pipeline_mode = #tpu.pipeline_mode<synchronous>, transform_indices = @transform_12, window_bounds = array<i64: 1, 128>}, {transform_indices = @transform_13, window_bounds = array<i64: 1, 1, 128>}]} {
    %c0_i32 = arith.constant 0 : i32
    %0 = arith.cmpi eq, %arg1, %c0_i32 : i32
    %1 = arith.extui %0 : i1 to i32
    %c0_i32_0 = arith.constant 0 : i32
    %2 = arith.cmpi ne, %1, %c0_i32_0 : i32
    scf.if %2 {
      %cst_26 = arith.constant 0xFF800000 : f32
      %49 = vector.broadcast %cst_26 : f32 to vector<8x1024xf32>
      %c0_27 = arith.constant 0 : index
      %c0_28 = arith.constant 0 : index
      %50 = vector.load %arg16[%c0_27, %c0_28] : memref<8x1024xf32, #tpu.memory_space<vmem>>, vector<8x1024xf32>
      tpu.vector_store %arg16[%c0_27, %c0_28], %49 {strides = array<i32>} : memref<8x1024xf32, #tpu.memory_space<vmem>>, vector<8x1024xf32>,
    } else {
    }
    %c0 = arith.constant 0 : index
    %c0_1 = arith.constant 0 : index
    %c0_2 = arith.constant 0 : index
    %3 = vector.load %arg2[%c0, %c0_1, %c0_2] : memref<1x64x8xbf16, #tpu.memory_space<vmem>>, vector<1x64x8xbf16>
    %4 = vector.shape_cast %3 : vector<1x64x8xbf16> to vector<64x8xbf16>
    %c0_3 = arith.constant 0 : index
    %c0_4 = arith.constant 0 : index
    %5 = vector.load %arg3[%c0_3, %c0_4] : memref<8x64xbf16, #tpu.memory_space<vmem>>, vector<8x64xbf16>
    %c0_5 = arith.constant 0 : index
    %c0_6 = arith.constant 0 : index
    %6 = vector.load %arg4[%c0_5, %c0_6] : memref<1x64xf32, #tpu.memory_space<vmem>>, vector<1x64xf32>
    %cst = arith.constant dense<0.000000e+00> : vector<64x64xf32>
    %7 = tpu.matmul %4, %5, %cst {dimension_numbers = #tpu.dot_dimension_numbers<[1], [0], [0], [1], [0, 0, 1, 1], [], []>} : vector<64x8xbf16>, vector<8x64xbf16>, vector<64x64xf32> -> vector<64x64xf32>
    %8 = vector.broadcast %6 : vector<1x64xf32> to vector<64x64xf32>
    %9 = arith.addf %7, %8 : vector<64x64xf32>
    %cst_7 = arith.constant 0.000000e+00 : f32
    %10 = vector.broadcast %cst_7 : f32 to vector<64x64xf32>
    %11 = arith.maximumf %9, %10 : vector<64x64xf32>
    %12 = arith.truncf %11 : vector<64x64xf32> to vector<64x64xbf16>
    %c0_8 = arith.constant 0 : index
    %c0_9 = arith.constant 0 : index
    %13 = vector.load %arg5[%c0_8, %c0_9] : memref<64x128xbf16, #tpu.memory_space<vmem>>, vector<64x128xbf16>
    %c0_10 = arith.constant 0 : index
    %c0_11 = arith.constant 0 : index
    %14 = vector.load %arg6[%c0_10, %c0_11] : memref<1x128xf32, #tpu.memory_space<vmem>>, vector<1x128xf32>
    %cst_12 = arith.constant dense<0.000000e+00> : vector<64x128xf32>
    %15 = tpu.matmul %12, %13, %cst_12 {dimension_numbers = #tpu.dot_dimension_numbers<[1], [0], [0], [1], [0, 0, 1, 1], [], []>} : vector<64x64xbf16>, vector<64x128xbf16>, vector<64x128xf32> -> vector<64x128xf32>
    %16 = vector.broadcast %14 : vector<1x128xf32> to vector<64x128xf32>
    %17 = arith.addf %15, %16 : vector<64x128xf32>
    %cst_13 = arith.constant 0.000000e+00 : f32
    %18 = vector.broadcast %cst_13 : f32 to vector<64x128xf32>
    %19 = arith.maximumf %17, %18 : vector<64x128xf32>
    %20 = arith.truncf %19 : vector<64x128xf32> to vector<64x128xbf16>
    %c0_14 = arith.constant 0 : index
    %c0_15 = arith.constant 0 : index
    %21 = vector.load %arg7[%c0_14, %c0_15] : memref<128x1024xbf16, #tpu.memory_space<vmem>>, vector<128x1024xbf16>
    %c0_16 = arith.constant 0 : index
    %c0_17 = arith.constant 0 : index
    %22 = vector.load %arg8[%c0_16, %c0_17] : memref<1x1024xf32, #tpu.memory_space<vmem>>, vector<1x1024xf32>
    %cst_18 = arith.constant dense<0.000000e+00> : vector<64x1024xf32>
    %23 = tpu.matmul %20, %21, %cst_18 {dimension_numbers = #tpu.dot_dimension_numbers<[1], [0], [0], [1], [0, 0, 1, 1], [], []>} : vector<64x128xbf16>, vector<128x1024xbf16>, vector<64x1024xf32> -> vector<64x1024xf32>
    %24 = vector.broadcast %22 : vector<1x1024xf32> to vector<64x1024xf32>
    %25 = arith.addf %23, %24 : vector<64x1024xf32>
    %cst_19 = arith.constant 0.000000e+00 : f32
    %26 = vector.broadcast %cst_19 : f32 to vector<64x1024xf32>
    %27 = arith.maximumf %25, %26 : vector<64x1024xf32>
    %28 = vector.extract_strided_slice %27 {offsets = [0, 0], sizes = [8, 1024], strides = [1, 1]} : vector<64x1024xf32> to vector<8x1024xf32>
    %29 = vector.extract_strided_slice %27 {offsets = [8, 0], sizes = [8, 1024], strides = [1, 1]} : vector<64x1024xf32> to vector<8x1024xf32>
    %30 = arith.maximumf %28, %29 : vector<8x1024xf32>
    %31 = vector.extract_strided_slice %27 {offsets = [16, 0], sizes = [8, 1024], strides = [1, 1]} : vector<64x1024xf32> to vector<8x1024xf32>
    %32 = arith.maximumf %30, %31 : vector<8x1024xf32>
    %33 = vector.extract_strided_slice %27 {offsets = [24, 0], sizes = [8, 1024], strides = [1, 1]} : vector<64x1024xf32> to vector<8x1024xf32>
    %34 = arith.maximumf %32, %33 : vector<8x1024xf32>
    %35 = vector.extract_strided_slice %27 {offsets = [32, 0], sizes = [8, 1024], strides = [1, 1]} : vector<64x1024xf32> to vector<8x1024xf32>
    %36 = arith.maximumf %34, %35 : vector<8x1024xf32>
    %37 = vector.extract_strided_slice %27 {offsets = [40, 0], sizes = [8, 1024], strides = [1, 1]} : vector<64x1024xf32> to vector<8x1024xf32>
    %38 = arith.maximumf %36, %37 : vector<8x1024xf32>
    %39 = vector.extract_strided_slice %27 {offsets = [48, 0], sizes = [8, 1024], strides = [1, 1]} : vector<64x1024xf32> to vector<8x1024xf32>
    %40 = arith.maximumf %38, %39 : vector<8x1024xf32>
    %41 = vector.extract_strided_slice %27 {offsets = [56, 0], sizes = [8, 1024], strides = [1, 1]} : vector<64x1024xf32> to vector<8x1024xf32>
    %42 = arith.maximumf %40, %41 : vector<8x1024xf32>
    %c0_20 = arith.constant 0 : index
    %c0_21 = arith.constant 0 : index
    %43 = vector.load %arg16[%c0_20, %c0_21] : memref<8x1024xf32, #tpu.memory_space<vmem>>, vector<8x1024xf32>
    %44 = arith.maximumf %43, %42 : vector<8x1024xf32>
    %c0_22 = arith.constant 0 : index
    %c0_23 = arith.constant 0 : index
    %45 = vector.load %arg16[%c0_22, %c0_23] : memref<8x1024xf32, #tpu.memory_space<vmem>>, vector<8x1024xf32>
    tpu.vector_store %arg16[%c0_22, %c0_23], %44 {strides = array<i32>} : memref<8x1024xf32, #tpu.memory_space<vmem>>, vector<8x1024xf32>,
    %c0_i32_24 = arith.constant 0 : i32
    %46 = arith.cmpi eq, %arg1, %c0_i32_24 : i32
    %47 = arith.extui %46 : i1 to i32
    %c0_i32_25 = arith.constant 0 : i32
    %48 = arith.cmpi ne, %47, %c0_i32_25 : i32
    scf.if %48 {
      %c0_26 = arith.constant 0 : index
      %c0_27 = arith.constant 0 : index
      %49 = vector.load %arg16[%c0_26, %c0_27] : memref<8x1024xf32, #tpu.memory_space<vmem>>, vector<8x1024xf32>
      %cst_28 = arith.constant dense<0xFF800000> : vector<1024xf32>
      %50 = vector.multi_reduction <maximumf>, %49, %cst_28 [0] : vector<8x1024xf32> to vector<1024xf32>
      %51 = vector.shape_cast %50 : vector<1024xf32> to vector<1x1024xf32>
      %c0_29 = arith.constant 0 : index
      %c0_30 = arith.constant 0 : index
      %52 = vector.load %arg9[%c0_29, %c0_30] : memref<1024x512xbf16, #tpu.memory_space<vmem>>, vector<1024x512xbf16>
      %c0_31 = arith.constant 0 : index
      %c0_32 = arith.constant 0 : index
      %53 = vector.load %arg10[%c0_31, %c0_32] : memref<1x512xf32, #tpu.memory_space<vmem>>, vector<1x512xf32>
      %c0_33 = arith.constant 0 : index
      %c0_34 = arith.constant 0 : index
      %54 = vector.load %arg11[%c0_33, %c0_34] : memref<512x256xbf16, #tpu.memory_space<vmem>>, vector<512x256xbf16>
      %c0_35 = arith.constant 0 : index
      %c0_36 = arith.constant 0 : index
      %55 = vector.load %arg12[%c0_35, %c0_36] : memref<1x256xf32, #tpu.memory_space<vmem>>, vector<1x256xf32>
      %c0_37 = arith.constant 0 : index
      %c0_38 = arith.constant 0 : index
      %56 = vector.load %arg13[%c0_37, %c0_38] : memref<256x128xbf16, #tpu.memory_space<vmem>>, vector<256x128xbf16>
      %c0_39 = arith.constant 0 : index
      %c0_40 = arith.constant 0 : index
      %57 = vector.load %arg14[%c0_39, %c0_40] : memref<1x128xf32, #tpu.memory_space<vmem>>, vector<1x128xf32>
      %58 = arith.truncf %51 : vector<1x1024xf32> to vector<1x1024xbf16>
      %cst_41 = arith.constant dense<0.000000e+00> : vector<1x512xf32>
      %59 = tpu.matmul %58, %52, %cst_41 {dimension_numbers = #tpu.dot_dimension_numbers<[1], [0], [0], [1], [0, 0, 1, 1], [], []>} : vector<1x1024xbf16>, vector<1024x512xbf16>, vector<1x512xf32> -> vector<1x512xf32>
      %60 = arith.addf %59, %53 : vector<1x512xf32>
      %cst_42 = arith.constant 0.000000e+00 : f32
      %61 = vector.broadcast %cst_42 : f32 to vector<1x512xf32>
      %62 = arith.maximumf %60, %61 : vector<1x512xf32>
      %63 = arith.truncf %62 : vector<1x512xf32> to vector<1x512xbf16>
      %cst_43 = arith.constant dense<0.000000e+00> : vector<1x256xf32>
      %64 = tpu.matmul %63, %54, %cst_43 {dimension_numbers = #tpu.dot_dimension_numbers<[1], [0], [0], [1], [0, 0, 1, 1], [], []>} : vector<1x512xbf16>, vector<512x256xbf16>, vector<1x256xf32> -> vector<1x256xf32>
      %65 = arith.addf %64, %55 : vector<1x256xf32>
      %cst_44 = arith.constant 0.000000e+00 : f32
      %66 = vector.broadcast %cst_44 : f32 to vector<1x256xf32>
      %67 = arith.maximumf %65, %66 : vector<1x256xf32>
      %68 = arith.truncf %67 : vector<1x256xf32> to vector<1x256xbf16>
      %cst_45 = arith.constant dense<0.000000e+00> : vector<1x128xf32>
      %69 = tpu.matmul %68, %56, %cst_45 {dimension_numbers = #tpu.dot_dimension_numbers<[1], [0], [0], [1], [0, 0, 1, 1], [], []>} : vector<1x256xbf16>, vector<256x128xbf16>, vector<1x128xf32> -> vector<1x128xf32>
      %70 = arith.addf %69, %57 : vector<1x128xf32>
      %c0_46 = arith.constant 0 : index
      %c0_47 = arith.constant 0 : index
      %c0_48 = arith.constant 0 : index
      %71 = vector.load %arg15[%c0_46, %c0_47, %c0_48] : memref<1x1x128xf32, #tpu.memory_space<vmem>>, vector<1x1x128xf32>
      %72 = vector.shape_cast %71 : vector<1x1x128xf32> to vector<1x128xf32>
      %73 = vector.shape_cast %70 : vector<1x128xf32> to vector<1x1x128xf32>
      tpu.vector_store %arg15[%c0_46, %c0_47, %c0_48], %73 {strides = array<i32>} : memref<1x1x128xf32, #tpu.memory_space<vmem>>, vector<1x1x128xf32>,
    } else {
    }
    return
  }
  func.func @transform_0(%arg0: i32, %arg1: i32) -> (i32, i32, i32) {
    %c0_i32 = arith.constant 0 : i32
    %c0_i32_0 = arith.constant 0 : i32
    return %arg0, %arg1, %c0_i32 : i32, i32, i32
  }
  func.func @transform_1(%arg0: i32, %arg1: i32) -> (i32, i32) {
    %c0_i32 = arith.constant 0 : i32
    %c0_i32_0 = arith.constant 0 : i32
    %c0_i32_1 = arith.constant 0 : i32
    return %c0_i32, %c0_i32_0 : i32, i32
  }
  func.func @transform_2(%arg0: i32, %arg1: i32) -> (i32, i32) {
    %c0_i32 = arith.constant 0 : i32
    %c0_i32_0 = arith.constant 0 : i32
    %c0_i32_1 = arith.constant 0 : i32
    return %c0_i32, %c0_i32_0 : i32, i32
  }
  func.func @transform_3(%arg0: i32, %arg1: i32) -> (i32, i32) {
    %c0_i32 = arith.constant 0 : i32
    %c0_i32_0 = arith.constant 0 : i32
    %c0_i32_1 = arith.constant 0 : i32
    return %c0_i32, %c0_i32_0 : i32, i32
  }
  func.func @transform_4(%arg0: i32, %arg1: i32) -> (i32, i32) {
    %c0_i32 = arith.constant 0 : i32
    %c0_i32_0 = arith.constant 0 : i32
    %c0_i32_1 = arith.constant 0 : i32
    return %c0_i32, %c0_i32_0 : i32, i32
  }
  func.func @transform_5(%arg0: i32, %arg1: i32) -> (i32, i32) {
    %c0_i32 = arith.constant 0 : i32
    %c0_i32_0 = arith.constant 0 : i32
    %c0_i32_1 = arith.constant 0 : i32
    return %c0_i32, %c0_i32_0 : i32, i32
  }
  func.func @transform_6(%arg0: i32, %arg1: i32) -> (i32, i32) {
    %c0_i32 = arith.constant 0 : i32
    %c0_i32_0 = arith.constant 0 : i32
    %c0_i32_1 = arith.constant 0 : i32
    return %c0_i32, %c0_i32_0 : i32, i32
  }
  func.func @transform_7(%arg0: i32, %arg1: i32) -> (i32, i32) {
    %c0_i32 = arith.constant 0 : i32
    %c0_i32_0 = arith.constant 0 : i32
    %c0_i32_1 = arith.constant 0 : i32
    return %c0_i32, %c0_i32_0 : i32, i32
  }
  func.func @transform_8(%arg0: i32, %arg1: i32) -> (i32, i32) {
    %c0_i32 = arith.constant 0 : i32
    %c0_i32_0 = arith.constant 0 : i32
    %c0_i32_1 = arith.constant 0 : i32
    return %c0_i32, %c0_i32_0 : i32, i32
  }
  func.func @transform_9(%arg0: i32, %arg1: i32) -> (i32, i32) {
    %c0_i32 = arith.constant 0 : i32
    %c0_i32_0 = arith.constant 0 : i32
    %c0_i32_1 = arith.constant 0 : i32
    return %c0_i32, %c0_i32_0 : i32, i32
  }
  func.func @transform_10(%arg0: i32, %arg1: i32) -> (i32, i32) {
    %c0_i32 = arith.constant 0 : i32
    %c0_i32_0 = arith.constant 0 : i32
    %c0_i32_1 = arith.constant 0 : i32
    return %c0_i32, %c0_i32_0 : i32, i32
  }
  func.func @transform_11(%arg0: i32, %arg1: i32) -> (i32, i32) {
    %c0_i32 = arith.constant 0 : i32
    %c0_i32_0 = arith.constant 0 : i32
    %c0_i32_1 = arith.constant 0 : i32
    return %c0_i32, %c0_i32_0 : i32, i32
  }
  func.func @transform_12(%arg0: i32, %arg1: i32) -> (i32, i32) {
    %c0_i32 = arith.constant 0 : i32
    %c0_i32_0 = arith.constant 0 : i32
    %c0_i32_1 = arith.constant 0 : i32
    return %c0_i32, %c0_i32_0 : i32, i32
  }
  func.func @transform_13(%arg0: i32, %arg1: i32) -> (i32, i32, i32) {
    %c0_i32 = arith.constant 0 : i32
    %c0_i32_0 = arith.constant 0 : i32
    %c0_i32_1 = arith.constant 0 : i32
    return %arg0, %c0_i32, %c0_i32_0 : i32, i32, i32
  }
}

</mosaic_0001>

<bundles_post_ra>
// kernel: tpu_custom_call.1
= control target key start
LH: loop header
LB: loop body
LE: loop exit
PB: predicated region body
PF: predicated region fallthrough
CT: control target
= control target key end

     0   :  { %s6284_s0 = inlined_call_operand.vmem [shape: bf16[2,64,8], index: 0, kind: input, shape index: {}]   ;;  %s6285_s1 = inlined_call_operand.vmem [shape: bf16[8,64], index: 1, kind: input, shape index: {}]   ;;  %s6286_s2 = inlined_call_operand.vmem [shape: f32[1,64], index: 2, kind: input, shape index: {}]   ;;  %s6287_s3 = inlined_call_operand.vmem [shape: bf16[64,128], index: 3, kind: input, shape index: {}]   ;;  %s6288_s4 = inlined_call_operand.vmem [shape: f32[1,128], index: 4, kind: input, shape index: {}]   ;;  %s6289_s5 = inlined_call_operand.hbm [shape: bf16[128,1024], index: 5, kind: input, shape index: {}]   ;;  %s6290_s6 = inlined_call_operand.vmem [shape: f32[1,1024], index: 6, kind: input, shape index: {}]   ;;  %s6291_s7 = inlined_call_operand.hbm [shape: bf16[1024,512], index: 7, kind: input, shape index: {}]   ;;  %s6292_s8 = inlined_call_operand.vmem [shape: f32[1,512], index: 8, kind: input, shape index: {}]   ;;  %s6293_s9 = inlined_call_operand.hbm [shape: bf16[512,256], index: 9, kind: input, shape index: {}]   ;;  %s6294_s10 = inlined_call_operand.vmem [shape: f32[1,256], index: 10, kind: input, shape index: {}]   ;;  %s6295_s11 = inlined_call_operand.hbm [shape: bf16[256,128], index: 11, kind: input, shape index: {}]   ;;  %s6296_s12 = inlined_call_operand.vmem [shape: f32[1,128], index: 12, kind: input, shape index: {}]   ;;  %s6297_s13 = inlined_call_operand.hbm [shape: f32[2,1,128], index: 13, kind: output, shape index: {}]  }
   0x1   :  { %6312 = sst [smem:[#allocation24_spill]] %s6291_s7 }
   0x2   :  { %6313 = sst [smem:[#allocation25_spill]] %s6296_s12 }
   0x3   :  { %6314 = sst [smem:[#allocation26_spill]] %s6297_s13 }
   0x4   :  { %18 = vsyncpa [#allocation4], 0 }
   0x5   :  { %19 = vsyncpa [#allocation7], 0 }
   0x6   :  { %20 = vsyncpa [#allocation10], 0 }
   0x7   :  { %21 = vsyncpa [#allocation5], 0 }
   0x8   :  { %23 = vsyncpa [#allocation5 + $0x1], 0  ;;  %s5825_s25 = smov 0   ;;  %s5827_s26 = smov 0  }
   0x9   :  { %s5829_s27 = smov 0   ;;  %s5831_s28 = smov 0  }
   0xa   :  { %s5833_s29 = smov 0   ;;  %s5835_s30 = smov 0  }
   0xb LB: > { %6315 = sst [smem:[#allocation16_spill]] %s5719_s25  ;;  %s4395_s14 = sadd.s32 4294967295, %s5739_s30   ;;  %s5739_s30 = sphi %s5835_s30, %s29_s30   ;;  %s5735_s29 = sphi %s5833_s29, %s6343_s29   ;;  %s5731_s28 = sphi %s5831_s28, %s6346_s28   ;;  %s5727_s27 = sphi %s5829_s27, %s6341_s27   ;;  %s5723_s26 = sphi %s5827_s26, %s6345_s26   ;;  %s5719_s25 = sphi %s5825_s25, %s6344_s25  }
   0xc   : > { %6316 = sst [smem:[#allocation17_spill]] %s5727_s27  ;;  %s4396_s15 = sadd.s32 4294967294, %s5739_s30  }
   0xd   : > { %6317 = sst [smem:[#allocation18_spill]] %s5735_s29  ;;  %s41_s16 = sadd.s32 1, %s5735_s29 }
   0xe   : > { %6318 = sst [smem:[#allocation19_spill]] %s5739_s30  ;;  %s328_s17 = sadd.s32 1, %s5727_s27 }
   0xf   : > { %p43_p0 = scmp.ge.s32.totalorder %s41_s16, 2  ;;  %p338_p1 = scmp.ne.s32.totalorder %s5727_s27, %s5723_s26 }
  0x10   : > { %p339_p2 = scmp.eq.s32.totalorder %s4395_s14, 1  ;;  %p344_p3 = scmp.ne.s32.totalorder %s5723_s26, %s5719_s25 }
  0x11   : > { %s6348_s16 = smov (%p43_p0, %s41_s16), 0  ;;  %p345_p5 = scmp.eq.s32.totalorder %s4396_s15, 1 }
  0x12   : > { %6319 = sst [smem:[#allocation20_spill]] %s6348_s16  ;;  %p5865_p4 = por %p339_p2, %p338_p1 }
  0x13   : > { %s325_s19 = ssub.s32 %s5735_s29, %s6348_s16  ;;  %p4397_p6 = scmp.ge.s32.totalorder %s5739_s30, 1 }
  0x14   : > { %s6320_s18 = scalar_select %p5865_p4, 1, 0 }
  0x15   : > { %p326_p7 = scmp.eq.s32.totalorder %s325_s19, 0  ;;  %p5872_p8 = por %p345_p5, %p344_p3 }
  0x16   : > { %6321 = sst [smem:[#allocation21_spill]] %s6320_s18  ;;  %p352_p9 = scmp.lt.s32.totalorder %s5739_s30, 3 }
  0x17   : > { %s6322_s20 = scalar_select %p5872_p8, 1, 0 }
  0x18   : > { %s5878_s21 = scalar_select %p326_p7, %s5727_s27, %s328_s17  }
  0x19   : > { %6323 = sst [smem:[#allocation22_spill]] %s6322_s20  ;;  %p5880_p10 = pnand %p4397_p6, %p352_p9 }
  0x1a   : > { %6324 = sst [smem:[#allocation23_spill]] %s5878_s21  ;;  %p5884_p11 = scmp.eq.s32.totalorder %s4395_s14, 0 }
  0x1b   : > { %s6325_s22 = scalar_select %p5880_p10, 1, 0 }
  0x1c   : > { %s6326_s23 = scalar_select %p5884_p11, 1, 0 }
  0x1d   : > { %p4946_p12 = pneg %p5880_p10  ;;  %s5741_s24 = smov [#allocation6]  }
  0x1e   : > { %s392_s15 = sshll.u32 %s5741_s24, 4  ;;  %s5742_s17 = smov [#allocation3]   ;;  %s393_s15 = int_to_ptr.vmem [resolvable:$true] %s392_s15 }
  0x1f   : > { %p5892_p13 = pnand %p5884_p11, %p4946_p12  ;;  %s376_s16 = sshll.u32 %s5742_s17, 4  ;;  %s377_s16 = int_to_ptr.vmem [resolvable:$true] %s376_s16 }
  0x20   : > { %s6328_s7 = sld [smem:[#allocation24_spill]] }
  0x21   : > { %p5904_p1 = pneg %p5892_p13 }
  0x26   : > { %s5537_s14 = scalar_lea.hbm %s6328_s7, 32768 }
  0x27   : > { %p5538_p0 = scmp.ne.s32.totalorder %s6328_s7, %s5537_s14  ;;  %p5544_p5 = scmp.lt.u32.totalorder %s5537_s14, %s6328_s7 }
  0x29   : > { %p5540_p2 = pnand %p5904_p1, %p5538_p0 }
  0x2b   : > { %p5541_p3 = pneg %p5540_p2 }
  0x2d   : > { %p5546_p6 = pnand %p5544_p5, %p5541_p3 }
  0x2f   : > { %5549 = shalt.err (!%p5546_p6)
}
  0x30   : > { %s5550_s29 = scalar_lea.vmem %s393_s15, 32768  ;;  %p5558_p8 = scmp.lt.s32.totalorder %s393_s15, %s393_s15 }
  0x31   : > { %p5551_p7 = scmp.ne.s32.totalorder %s393_s15, %s5550_s29  ;;  %p5559_p4 = scmp.lt.s32.totalorder %s5550_s29, %s5550_s29 }
  0x33   : > { %p5553_p9 = pnand %p5551_p7, %p5904_p1  ;;  %p5560_p11 = por %p5559_p4, %p5558_p8 }
  0x35   : > { %p5554_p12 = pneg %p5553_p9 }
  0x37   : > { %p5561_p10 = pnand %p5560_p11, %p5554_p12 }
  0x39   : > { %5564 = shalt.err (!%p5561_p10)
}
  0x3a   : > { %s5743_s27 = smov 256   ;;  %s5744_s20 = smov 16  }
  0x3b   : > { %4952 = dma.hbm_to_vmem [thread:$0]  (!%p5892_p13), %s6328_s7, 32768, %s393_s15, [#allocation7], %s5743_s27, %s5743_s27, %s5744_s20  }
  0x3c   : > { %s5565_s14 = scalar_lea.hbm %s6289_s5, 8192 }
  0x3d   : > { %p5566_p4 = scmp.ne.s32.totalorder %s6289_s5, %s5565_s14  ;;  %p5572_p11 = scmp.lt.u32.totalorder %s5565_s14, %s6289_s5 }
  0x3f   : > { %p5568_p8 = pnand %p5566_p4, %p5904_p1 }
  0x41   : > { %p5569_p10 = pneg %p5568_p8 }
  0x43   : > { %p5574_p0 = pnand %p5572_p11, %p5569_p10 }
  0x45   : > { %5577 = shalt.err (!%p5574_p0)
}
  0x46   : > { %s5578_s25 = scalar_lea.vmem %s377_s16, 8192  ;;  %p5586_p6 = scmp.lt.s32.totalorder %s377_s16, %s377_s16 }
  0x47   : > { %p5579_p2 = scmp.ne.s32.totalorder %s377_s16, %s5578_s25  ;;  %p5587_p7 = scmp.lt.s32.totalorder %s5578_s25, %s5578_s25 }
  0x49   : > { %p5581_p3 = pnand %p5579_p2, %p5904_p1  ;;  %p5588_p9 = por %p5587_p7, %p5586_p6 }
  0x4b   : > { %p5582_p5 = pneg %p5581_p3 }
  0x4d   : > { %p5589_p12 = pnand %p5588_p9, %p5582_p5 }
  0x4f   : > { %5592 = shalt.err (!%p5589_p12)
}
  0x50   : > { %s5745_s13 = smov 512   ;;  %s5746_s18 = smov 32  }
  0x51   : > { %4949 = dma.hbm_to_vmem [thread:$0]  (!%p5892_p13), %s6289_s5, 8192, %s377_s16, [#allocation4], %s5745_s13, %s5745_s13, %s5746_s18  }
  0x52   : > { %s5747_s27 = smov [#allocation8]   ;;  %s5593_s17 = scalar_lea.hbm %s6293_s9, 8192 }
  0x53   : > { %s408_s20 = sshll.u32 %s5747_s27, 4  ;;  %p5594_p4 = scmp.ne.s32.totalorder %s6293_s9, %s5593_s17  ;;  %s409_s20 = int_to_ptr.vmem [resolvable:$true] %s408_s20 }
  0x54   : > { %p5600_p11 = scmp.lt.u32.totalorder %s5593_s17, %s6293_s9 }
  0x55   : > { %p5596_p8 = pnand %p5594_p4, %p5904_p1 }
  0x57   : > { %p5597_p10 = pneg %p5596_p8 }
  0x59   : > { %p5602_p0 = pnand %p5600_p11, %p5597_p10 }
  0x5b   : > { %5605 = shalt.err (!%p5602_p0)
}
  0x5c   : > { %s5606_s16 = scalar_lea.vmem %s409_s20, 8192  ;;  %p5614_p6 = scmp.lt.s32.totalorder %s409_s20, %s409_s20 }
  0x5d   : > { %p5607_p2 = scmp.ne.s32.totalorder %s409_s20, %s5606_s16  ;;  %p5615_p7 = scmp.lt.s32.totalorder %s5606_s16, %s5606_s16 }
  0x5f   : > { %p5609_p3 = pnand %p5607_p2, %p5904_p1  ;;  %p5616_p9 = por %p5615_p7, %p5614_p6 }
  0x61   : > { %p5610_p5 = pneg %p5609_p3 }
  0x63   : > { %p5617_p12 = pnand %p5616_p9, %p5610_p5 }
  0x65   : > { %5620 = shalt.err (!%p5617_p12)
}
  0x66   : > { %s5748_s13 = smov 128   ;;  %s5749_s18 = smov 8  }
  0x67   : > { %4955 = dma.hbm_to_vmem [thread:$0]  (!%p5892_p13), %s6293_s9, 8192, %s409_s20, [#allocation7], %s5748_s13, %s5748_s13, %s5749_s18  }
  0x68   : > { %s5750_s15 = smov [#allocation9]   ;;  %s5621_s17 = scalar_lea.hbm %s6295_s11, 2048 }
  0x69   : > { %s424_s27 = sshll.u32 %s5750_s15, 4  ;;  %p5622_p4 = scmp.ne.s32.totalorder %s6295_s11, %s5621_s17  ;;  %s425_s27 = int_to_ptr.vmem [resolvable:$true] %s424_s27 }
  0x6a   : > { %p5628_p11 = scmp.lt.u32.totalorder %s5621_s17, %s6295_s11 }
  0x6b   : > { %p5624_p8 = pnand %p5622_p4, %p5904_p1 }
  0x6d   : > { %p5625_p10 = pneg %p5624_p8 }
  0x6f   : > { %p5630_p0 = pnand %p5628_p11, %p5625_p10 }
  0x71   : > { %5633 = shalt.err (!%p5630_p0)
}
  0x72   : > { %s5634_s20 = scalar_lea.vmem %s425_s27, 2048  ;;  %p5642_p6 = scmp.lt.s32.totalorder %s425_s27, %s425_s27 }
  0x73   : > { %p5635_p2 = scmp.ne.s32.totalorder %s425_s27, %s5634_s20  ;;  %p5643_p7 = scmp.lt.s32.totalorder %s5634_s20, %s5634_s20 }
  0x75   : > { %p5637_p3 = pnand %p5635_p2, %p5904_p1  ;;  %p5644_p9 = por %p5643_p7, %p5642_p6 }
  0x77   : > { %p5638_p5 = pneg %p5637_p3 }
  0x79   : > { %p5645_p12 = pnand %p5644_p9, %p5638_p5 }
  0x7b   : > { %5648 = shalt.err (!%p5645_p12)
}
  0x7c   : > { %s5751_s13 = smov 64   ;;  %s5752_s18 = smov 4  }
  0x7d   : > { %4958 = dma.hbm_to_vmem [thread:$0]  (!%p5892_p13), %s6295_s11, 2048, %s425_s27, [#allocation10], %s5751_s13, %s5751_s13, %s5752_s18  }
  0x7e   : > { %p6330_p4 = scmp.ne.s32.totalorder %s6325_s22, 0 }
  0x7f   : > { %p6331_p8 = scmp.ne.s32.totalorder (!%p6330_p4), %s6326_s23, 0 }
  0x80   : > { %456 = sbr.rel (%p6330_p4) target bundleno = 1778 (0x6f2), region = 72 }
  0x87   : > { %5702 = dma.done.wait (%p6331_p8), [#allocation4], 8192  }
  0x88   : > { %5704 = vsyncadd (%p6331_p8), [#allocation4], 4294959104 }
  0x89   : > { %5706 = dma.done.wait (%p6331_p8), [#allocation7], 40960  }
  0x8a   : > { %5708 = vsyncadd (%p6331_p8), [#allocation7], 4294926336 }
  0x8b   : > { %5710 = dma.done.wait (%p6331_p8), [#allocation10], 2048  }
  0x8c   : > { %5712 = vsyncadd (%p6331_p8), [#allocation10], 4294965248  ;;  %p516_p13 = scmp.lt.s32.totalorder %s5731_s28, 1  ;;  %vm587_vm0 = vcmask 1043456   ;;  %vm574_vm1 = vcmask 64512   ;;  %v5037_v5 = vld [vmem:[%s6287_s3] sm:$0xff]  }
  0x8d   : > { %v546_v0 = vld [vmem:[%s6285_s1] sm:$0xf]  ;;  %v5038_v6 = vld [vmem:[%s6287_s3 + $0x8] sm:$0xff]   ;;  %v5039_v8 = vld [vmem:[%s6287_s3 + $0x10] sm:$0xff]   ;;  %vm707_vm2 = vcmask 523264   ;;  %s513_s23 = sand.u32 1, %s5723_s26  }
  0x8e   : > { %s517_s22 = scalar_select %p516_p13, %s5731_s28, 1  ;;  %4927 = vmatprep.subr.msk.bf16.mxu1 %vm587_vm0, %v546_v0  ;;  %v589_v1 = vsel %vm587_vm0, %v546_v0, 0  ;;  %v5040_v9 = vld [vmem:[%s6287_s3 + $0x18] sm:$0xff]   ;;  %v6012_v10 = vld [vmem:[#allocation3] sm:$0xff]  ;;  %v799_v12 = vld [vmem:[#allocation3 + $0x10] sm:$0xff] }
  0x8f   : > { %4868 = vmatpush3.bf16.msra.mxu1 %v589_v1  ;;  %v6014_v11 = vld [vmem:[#allocation3 + $0x20] sm:$0xff]  ;;  %v803_v15 = vld [vmem:[#allocation3 + $0x30] sm:$0xff]  ;;  %s6332_s29 = sld [smem:[#allocation25_spill]]  ;;  %s4828_s16 = sshll.u32 %s5731_s28, 4 }
  0x90   : > { %s4831_s19 = sshll.u32 %s517_s22, 5  ;;  %4877 = vmatprep.subr.bf16.mxu1 %v5037_v5  ;;  %v4428_v13 = vcombine.low %v6012_v10, %v6014_v11  ;;  %v4429_v14 = vcombine.high %v6012_v10, %v6014_v11  ;;  %v4433_v16 = vcombine.high %v799_v12, %v803_v15  ;;  %v4432_v17 = vcombine.low %v799_v12, %v803_v15  ;;  %v807_v18 = vld [vmem:[#allocation3 + $0x50] sm:$0xff]  ;;  %v4410_v38 = vld [vmem:[%s6286_s2] ss:$0 sm:$0xff]  ;;  %s6333_s25 = sld [smem:[#allocation21_spill]] }
  0x91   : > { %s523_s27 = scalar_lea.vmem %s6284_s0, %s4831_s19  ;;  %v811_v19 = vld [vmem:[#allocation3 + $0x70] sm:$0xff]  ;;  %v805_v51 = vld [vmem:[#allocation3 + $0x40] sm:$0xff]  ;;  %s514_s20 = scalar_lea.vmem [#allocation11], %s513_s23 }
  0x92   : > { %v5033_v2 = vld [vmem:[%s523_s27] sm:$0xff]   ;;  %v5034_v3 = vld [vmem:[%s523_s27 + $0x8] sm:$0xff]   ;;  %v5035_v4 = vld [vmem:[%s523_s27 + $0x10] sm:$0xff]   ;;  %v4441_v20 = vcombine.high %v807_v18, %v811_v19  ;;  %1369 = vmatprep.subr.bf16.mxu0 %v4433_v16  ;;  %v4440_v23 = vcombine.low %v807_v18, %v811_v19  ;;  %s4285_s13 = sshll.u32 %s514_s20, 4  ;;  %s6334_s12 = sld [smem:[#allocation26_spill]]  ;;  %s6239_s13 = int_to_ptr.vmem [resolvable:$true] %s4285_s13 }
  0x93   : > { %4869 = vmatprep.mubr.msk.bf16.mxu1 %vm574_vm1, %v5033_v2  ;;  %v5036_v7 = vld [vmem:[%s523_s27 + $0x18] sm:$0xff]   ;;  %v815_v21 = vld [vmem:[#allocation3 + $0x90] sm:$0xff]  ;;  %1370 = vmatpush1.bf16.msra.mxu0 %v4432_v17  ;;  %v809_v52 = vld [vmem:[#allocation3 + $0x60] sm:$0xff]  ;;  %s4273_s19 = scalar_lea.sflag [#allocation5], %s513_s23  ;;  %s5649_s24 = scalar_lea.vmem %s6239_s13, 16 }
  0x94   : > { %4870 = vmatmul.mubr.msk.bf16.vlgmr.msra.gmra.mrb[0].mxu1 %vm574_vm1, %v5034_v3  ;;  %v819_v22 = vld [vmem:[#allocation3 + $0xb0] sm:$0xff]  ;;  %1371 = vmatprep.subr.bf16.mxu0 %v4441_v20  ;;  %v4437_v58 = vcombine.high %v805_v51, %v809_v52  ;;  %v813_v61 = vld [vmem:[#allocation3 + $0x80] sm:$0xff]  ;;  %p5650_p1 = scmp.ne.s32.totalorder %s6239_s13, %s5649_s24  ;;  %s5754_s28 = smov [#allocation11]  }
  0x95   : > { %4873 = vmatprep.mubr.msk.bf16.mxu1 %vm574_vm1, %v5035_v4  ;;  %4878 = vmatpush3.bf16.msra.mxu1 %v5037_v5  ;;  %v4449_v24 = vcombine.high %v815_v21, %v819_v22  ;;  %v823_v25 = vld [vmem:[#allocation3 + $0xd0] sm:$0xff]  ;;  %v4448_v27 = vcombine.low %v815_v21, %v819_v22  ;;  %v817_v62 = vld [vmem:[#allocation3 + $0xa0] sm:$0xff]  ;;  %v4436_v4 = vcombine.low %v805_v51, %v809_v52  ;;  %s5653_s15 = sshll.u32 %s5754_s28, 4  ;;  %s5654_s15 = int_to_ptr.vmem [resolvable:$false] %s5653_s15 }
  0x96   : > { %4879 = vmatprep.subr.bf16.mxu1 %v5038_v6  ;;  %v827_v26 = vld [vmem:[#allocation3 + $0xf0] sm:$0xff]  ;;  %v4444_v15 = vcombine.low %v813_v61, %v817_v62  ;;  %v829_v17 = vld [vmem:[#allocation3 + $0x100] sm:$0xff]  ;;  %p6335_p10 = scmp.ne.s32.totalorder %s6333_s25, 0  ;;  %s5655_s27 = scalar_lea.vmem %s5654_s15, 32 }
  0x97   : > { %1372 = vmatpush1.bf16.msra.mxu0 %v4440_v23  ;;  %v4457_v28 = vcombine.high %v823_v25, %v827_v26  ;;  %v831_v29 = vld [vmem:[#allocation3 + $0x110] sm:$0xff]  ;;  %v4456_v31 = vcombine.low %v823_v25, %v827_v26  ;;  %v833_v18 = vld [vmem:[#allocation3 + $0x120] sm:$0xff]  ;;  %p5656_p2 = scmp.lt.s32.totalorder %s6239_s13, %s5654_s15  ;;  %p5657_p3 = scmp.lt.s32.totalorder %s5655_s27, %s5649_s24 }
  0x98   : > { %1373 = vmatprep.subr.bf16.mxu0 %v4449_v24  ;;  %v835_v30 = vld [vmem:[#allocation3 + $0x130] sm:$0xff]  ;;  %v4461_v11 = vcombine.high %v829_v17, %v833_v18  ;;  %v841_v19 = vld [vmem:[#allocation3 + $0x160] sm:$0xff]  ;;  %v4460_v20 = vcombine.low %v829_v17, %v833_v18  ;;  %s6237_s22 = scalar_lea.hbm %s6334_s12, %s4828_s16  ;;  %p5651_p11 = pnand %p5650_p1, %p6335_p10 }
  0x99   : > { %4880 = vmatpush3.bf16.msra.mxu1 %v5038_v6  ;;  %v839_v32 = vld [vmem:[#allocation3 + $0x150] sm:$0xff]  ;;  %v4465_v34 = vcombine.high %v831_v29, %v835_v30  ;;  %v4464_v35 = vcombine.low %v831_v29, %v835_v30  ;;  %v4445_v6 = vcombine.high %v813_v61, %v817_v62  ;;  %v845_v23 = vld [vmem:[#allocation3 + $0x180] sm:$0xff]  ;;  %p5658_p5 = por %p5657_p3, %p5656_p2 }
  0x9a   : > { %4881 = vmatprep.subr.bf16.mxu1 %v5039_v8  ;;  %v843_v33 = vld [vmem:[#allocation3 + $0x170] sm:$0xff]  ;;  %v849_v24 = vld [vmem:[#allocation3 + $0x1a0] sm:$0xff]  ;;  %p5652_p0 = pneg %p5651_p11 }
  0x9b   : > { %1374 = vmatpush1.bf16.msra.mxu0 %v4448_v27  ;;  %v4473_v36 = vcombine.high %v839_v32, %v843_v33  ;;  %v4472_v37 = vcombine.low %v839_v32, %v843_v33  ;;  %v847_v25 = vld [vmem:[#allocation3 + $0x190] sm:$0xff]  ;;  %v4477_v26 = vcombine.high %v845_v23, %v849_v24  ;;  %v857_v32 = vld [vmem:[#allocation3 + $0x1e0] sm:$0xff] }
  0x9c   : > { %4874 = vmatmul.mubr.msk.bf16.gmra.mrb[4].mxu1 %vm574_vm1, %v5036_v7  ;;  %1375 = vmatprep.subr.bf16.mxu0 %v4457_v28  ;;  %v851_v27 = vld [vmem:[#allocation3 + $0x1b0] sm:$0xff]  ;;  %v4476_v28 = vcombine.low %v845_v23, %v849_v24  ;;  %v830_v24 = vld [vmem:[#allocation3 + $0x108] sm:$0xff]  ;;  %p5659_p6 = pnand %p5658_p5, %p5652_p0 }
  0x9d   : > { %4882 = vmatpush3.bf16.msra.mxu1 %v5039_v8  ;;  %v821_v8 = vld [vmem:[#allocation3 + $0xc0] sm:$0xff]  ;;  %v4481_v29 = vcombine.high %v847_v25, %v851_v27  ;;  %v4480_v30 = vcombine.low %v847_v25, %v851_v27  ;;  %v855_v33 = vld [vmem:[#allocation3 + $0x1d0] sm:$0xff]  ;;  %v834_v25 = vld [vmem:[#allocation3 + $0x128] sm:$0xff] }
  0x9e   : > { %4883 = vmatprep.subr.bf16.mxu1 %v5040_v9  ;;  %v5053_v27 = vld [vmem:[#allocation6 + $0x40] ss:$16 sps:$4 sm:$0xff]  }
  0x9f   : > { %1376 = vmatpush1.bf16.msra.mxu0 %v4456_v31  ;;  %v853_v31 = vld [vmem:[#allocation3 + $0x1c0] sm:$0xff] }
  0xa0   : > { %1377 = vmatprep.subr.bf16.mxu0 %v4465_v34  ;;  %v4485_v34 = vcombine.high %v853_v31, %v857_v32 }
  0xa1   : > { %4884 = vmatpush3.bf16.msra.mxu1 %v5040_v9  ;;  %v825_v9 = vld [vmem:[#allocation3 + $0xe0] sm:$0xff] }
  0xa2   : > { %1223 = vmatprep.subr.bf16.mxu1 %v4429_v14  ;;  %v4453_v16 = vcombine.high %v821_v8, %v825_v9  ;;  %v4452_v10 = vcombine.low %v821_v8, %v825_v9 }
  0xa3   : > { %1378 = vmatpush1.bf16.msra.mxu0 %v4464_v35  ;;  %v859_v35 = vld [vmem:[#allocation3 + $0x1f0] sm:$0xff] }
  0xa4   : > { %1379 = vmatprep.subr.bf16.mxu0 %v4473_v36  ;;  %v4484_v36 = vcombine.low %v853_v31, %v857_v32  ;;  %v838_v31 = vld [vmem:[#allocation3 + $0x148] sm:$0xff] }
  0xa5   : > { %v842_v32 = vld [vmem:[#allocation3 + $0x168] sm:$0xff] }
  0xa7   : > { %1380 = vmatpush1.bf16.msra.mxu0 %v4472_v37  ;;  %v4489_v37 = vcombine.high %v855_v33, %v859_v35 }
  0xa8   : > { %1381 = vmatprep.subr.bf16.mxu0 %v4481_v29  ;;  %v5061_v29 = vld [vmem:[#allocation6 + $0x64] ss:$16 sps:$4 sm:$0xff]  }
  0xab   : > { %1382 = vmatpush1.bf16.msra.mxu0 %v4480_v30  ;;  %v4463_v30 = vcombine.high %v830_v24, %v834_v25 }
  0xac   : > { %1383 = vmatprep.subr.bf16.mxu0 %v4489_v37  ;;  %v5059_v37 = vld [vmem:[#allocation6 + $0x60] ss:$16 sps:$4 sm:$0xff]  }
 0x167   : > { %v4871_v39 = vpop.f32.mrb[0].mxu1 }
 0x168   : > { %v634_v40 = vadd.f32 %v4871_v39, %v4410_v38  ;;  %v625_v41 = vpop.f32.mrb[1].mxu1  ;;  %v798_v39 = vld [vmem:[#allocation3 + $0x8] sm:$0xff] }
 0x169   : > { %v626_v42 = vadd.f32 %v4410_v38, %v625_v41  ;;  %v4872_v43 = vpop.f32.mrb[2].mxu1 }
 0x16a   : > { %v637_v44 = vadd.f32 %v4872_v43, %v4410_v38  ;;  %v628_v45 = vpop.f32.mrb[3].mxu1  ;;  %v658_v47 = vmax.f32 %v634_v40, 0.0  ;;  %v802_v40 = vld [vmem:[#allocation3 + $0x28] sm:$0xff] }
 0x16b   : > { %v629_v46 = vadd.f32 %v4410_v38, %v628_v45  ;;  %v656_v49 = vmax.f32 %v626_v42, 0.0  ;;  %v4431_v41 = vcombine.high %v798_v39, %v802_v40  ;;  %v5753_v42 = vmov 0   ;;  %v4419_v45 = vld [vmem:[%s6288_s4] ss:$0 sm:$0xff] }
 0x16c   : > { %v659_v48 = vmax.f32 %v637_v44, 0.0  ;;  %1401 = vmatprep.mubr.bf16.mxu0 %v5753_v42  ;;  %v4430_v43 = vcombine.low %v798_v39, %v802_v40  ;;  %v5043_v44 = vld [vmem:[#allocation6 + $0x4] ss:$16 sps:$4 sm:$0xff]   ;;  %v854_v40 = vld [vmem:[#allocation3 + $0x1c8] sm:$0xff] }
 0x16d   : > { %v657_v50 = vmax.f32 %v629_v46, 0.0 }
 0x16e   : > { %v665_v53 = vpack.c.bf16 %v659_v48, %v658_v47 }
 0x16f   : > { %v664_v54 = vpack.c.bf16 %v657_v50, %v656_v49  ;;  %v4875_v55 = vpop.f32.mrb[4].mxu1 }
 0x170   : > { %v650_v56 = vadd.f32 %v4875_v55, %v4410_v38  ;;  %v641_v57 = vpop.f32.mrb[5].mxu1 }
 0x171   : > { %v642_v59 = vadd.f32 %v4410_v38, %v641_v57  ;;  %4885 = vmatprep.mubr.msk.bf16.mxu1 %vm707_vm2, %v664_v54  ;;  %v4876_v60 = vpop.f32.mrb[6].mxu1  ;;  %v810_v57 = vld [vmem:[#allocation3 + $0x68] sm:$0xff] }
 0x172   : > { %v662_v63 = vmax.f32 %v650_v56, 0.0  ;;  %v653_v0 = vadd.f32 %v4876_v60, %v4410_v38  ;;  %4886 = vmatmul.mubr.msk.bf16.vlgmr.msra.gmra.mrb[8].mxu1 %vm707_vm2, %v665_v53  ;;  %v644_v1 = vpop.f32.mrb[7].mxu1  ;;  %v806_v56 = vld [vmem:[#allocation3 + $0x48] sm:$0xff] }
 0x173   : > { %v660_v2 = vmax.f32 %v642_v59, 0.0  ;;  %v645_v3 = vadd.f32 %v4410_v38, %v644_v1  ;;  %1224 = vmatpush1.bf16.msra.mxu1 %v4428_v13  ;;  %v837_v13 = vld [vmem:[#allocation3 + $0x140] sm:$0xff]  ;;  %v4488_v38 = vcombine.low %v855_v33, %v859_v35  ;;  %v4462_v33 = vcombine.low %v830_v24, %v834_v25  ;;  %v846_v35 = vld [vmem:[#allocation3 + $0x188] sm:$0xff] }
 0x174   : > { %v663_v5 = vmax.f32 %v653_v0, 0.0  ;;  %1225 = vmatprep.subr.bf16.mxu1 %v4437_v58  ;;  %v4469_v21 = vcombine.high %v837_v13, %v841_v19  ;;  %v4468_v22 = vcombine.low %v837_v13, %v841_v19  ;;  %v5047_v13 = vld [vmem:[#allocation6 + $0x20] ss:$16 sps:$4 sm:$0xff]   ;;  %v5064_v24 = vld [vmem:[#allocation6 + $0x6c] ss:$16 sps:$4 sm:$0xff]  }
 0x175   : > { %v661_v7 = vmax.f32 %v645_v3, 0.0  ;;  %1384 = vmatpush1.bf16.msra.mxu0 %v4488_v38  ;;  %v818_v3 = vld [vmem:[#allocation3 + $0xa8] sm:$0xff]  ;;  %v4470_v38 = vcombine.low %v838_v31, %v842_v32 }
 0x176   : > { %v667_v12 = vpack.c.bf16 %v663_v5, %v662_v63  ;;  %3382 = vmatprep.subr.bf16.mxu0 %v5043_v44  ;;  %v4439_v63 = vcombine.high %v806_v56, %v810_v57  ;;  %v5062_v25 = vld [vmem:[#allocation6 + $0x68] ss:$16 sps:$4 sm:$0xff]  }
 0x177   : > { %v666_v14 = vpack.c.bf16 %v661_v7, %v660_v2  ;;  %1226 = vmatpush1.bf16.msra.mxu1 %v4436_v4  ;;  %v814_v2 = vld [vmem:[#allocation3 + $0x88] sm:$0xff]  ;;  %v5041_v4 = vld [vmem:[#allocation6] ss:$16 sps:$4 sm:$0xff]   ;;  %v5049_v7 = vld [vmem:[#allocation6 + $0x24] ss:$16 sps:$4 sm:$0xff]  }
 0x178   : > { %1227 = vmatprep.subr.bf16.mxu1 %v4445_v6  ;;  %v4447_v17 = vcombine.high %v814_v2, %v818_v3 }
 0x179   : > { %4889 = vmatprep.mubr.msk.bf16.mxu1 %vm707_vm2, %v666_v14  ;;  %v4438_v14 = vcombine.low %v806_v56, %v810_v57  ;;  %v824_v57 = vld [vmem:[#allocation3 + $0xd8] sm:$0xff] }
 0x17a   : > { %4890 = vmatmul.mubr.msk.bf16.gmra.mrb[12].mxu1 %vm707_vm2, %v667_v12 }
 0x17b   : > { %1228 = vmatpush1.bf16.msra.mxu1 %v4444_v15  ;;  %1255 = vmatprep.mubr.bf16.mxu1 %v5753_v42 }
 0x17c   : > { %1229 = vmatprep.subr.bf16.mxu1 %v4453_v16 }
 0x17f   : > { %1230 = vmatpush1.bf16.msra.mxu1 %v4452_v10  ;;  %v822_v10 = vld [vmem:[#allocation3 + $0xc8] sm:$0xff] }
 0x180   : > { %1231 = vmatprep.subr.bf16.mxu1 %v4461_v11  ;;  %v826_v11 = vld [vmem:[#allocation3 + $0xe8] sm:$0xff] }
 0x181   : > { %v4455_v23 = vcombine.high %v822_v10, %v826_v11 }
 0x183   : > { %1232 = vmatpush1.bf16.msra.mxu1 %v4460_v20 }
 0x184   : > { %1233 = vmatprep.subr.bf16.mxu1 %v4469_v21  ;;  %v4446_v21 = vcombine.low %v814_v2, %v818_v3  ;;  %v840_v3 = vld [vmem:[#allocation3 + $0x158] sm:$0xff] }
 0x187   : > { %1234 = vmatpush1.bf16.msra.mxu1 %v4468_v22 }
 0x188   : > { %1235 = vmatprep.subr.bf16.mxu1 %v4477_v26  ;;  %v5055_v26 = vld [vmem:[#allocation6 + $0x44] ss:$16 sps:$4 sm:$0xff]  }
 0x18b   : > { %1236 = vmatpush1.bf16.msra.mxu1 %v4476_v28  ;;  %v4454_v28 = vcombine.low %v822_v10, %v826_v11  ;;  %v5046_v10 = vld [vmem:[#allocation6 + $0xc] ss:$16 sps:$4 sm:$0xff]   ;;  %v5044_v11 = vld [vmem:[#allocation6 + $0x8] ss:$16 sps:$4 sm:$0xff]  }
 0x18c   : > { %1237 = vmatprep.subr.bf16.mxu1 %v4485_v34  ;;  %v4471_v34 = vcombine.high %v838_v31, %v842_v32  ;;  %v5074_v31 = vld [vmem:[#allocation6 + $0xa8] ss:$16 sps:$4 sm:$0xff]   ;;  %v5077_v32 = vld [vmem:[#allocation6 + $0xc0] ss:$16 sps:$4 sm:$0xff]  }
 0x18f   : > { %1238 = vmatpush1.bf16.msra.mxu1 %v4484_v36  ;;  %v850_v36 = vld [vmem:[#allocation3 + $0x1a8] sm:$0xff] }
 0x190   : > { %1296 = vmatprep.subr.bf16.mxu1 %v4431_v41  ;;  %v4479_v39 = vcombine.high %v846_v35, %v850_v36  ;;  %v858_v41 = vld [vmem:[#allocation3 + $0x1e8] sm:$0xff] }
 0x191   : > { %v4487_v44 = vcombine.high %v854_v40, %v858_v41 }
 0x245   : > { %v4887_v46 = vpop.f32.mrb[8].mxu1 }
 0x246   : > { %v763_v47 = vadd.f32 %v4887_v46, %v4419_v45  ;;  %v754_v48 = vpop.f32.mrb[9].mxu1  ;;  %v804_v46 = vld [vmem:[#allocation3 + $0x38] sm:$0xff] }
 0x247   : > { %v755_v49 = vadd.f32 %v4419_v45, %v754_v48  ;;  %v4888_v50 = vpop.f32.mrb[10].mxu1 }
 0x248   : > { %v766_v51 = vadd.f32 %v4888_v50, %v4419_v45  ;;  %v757_v52 = vpop.f32.mrb[11].mxu1  ;;  %v787_v54 = vmax.f32 %v763_v47, 0.0  ;;  %v4486_v47 = vcombine.low %v854_v40, %v858_v41  ;;  %v812_v50 = vld [vmem:[#allocation3 + $0x78] sm:$0xff]  ;;  %v5097_v41 = vld [vmem:[#allocation6 + $0x124] ss:$16 sps:$4 sm:$0xff]  }
 0x249   : > { %v758_v53 = vadd.f32 %v4419_v45, %v757_v52  ;;  %v785_v58 = vmax.f32 %v755_v49, 0.0  ;;  %v808_v49 = vld [vmem:[#allocation3 + $0x58] sm:$0xff] }
 0x24a   : > { %v788_v55 = vmax.f32 %v766_v51, 0.0  ;;  %v4443_v52 = vcombine.high %v808_v49, %v812_v50  ;;  %v5092_v40 = vld [vmem:[#allocation6 + $0x108] ss:$16 sps:$4 sm:$0xff]  }
 0x24b   : > { %v786_v59 = vmax.f32 %v758_v53, 0.0  ;;  %v816_v53 = vld [vmem:[#allocation3 + $0x98] sm:$0xff] }
 0x24c   : > { %v6035_v60 = vpack.c.bf16 %v788_v55, %v787_v54  ;;  %v820_v54 = vld [vmem:[#allocation3 + $0xb8] sm:$0xff]  ;;  %v4442_v55 = vcombine.low %v808_v49, %v812_v50  ;;  %v5109_v50 = vld [vmem:[#allocation6 + $0x164] ss:$16 sps:$4 sm:$0xff]  }
 0x24d   : > { %v6037_v61 = vpack.c.bf16 %v786_v59, %v785_v58  ;;  %v4891_v62 = vpop.f32.mrb[12].mxu1  ;;  %v4451_v56 = vcombine.high %v816_v53, %v820_v54  ;;  %v828_v58 = vld [vmem:[#allocation3 + $0xf8] sm:$0xff]  ;;  %v4450_v59 = vcombine.low %v816_v53, %v820_v54  ;;  %v5115_v54 = vld [vmem:[#allocation6 + $0x184] ss:$16 sps:$4 sm:$0xff]  }
 0x24e   : > { %v779_v0 = vadd.f32 %v4891_v62, %v4419_v45  ;;  %v770_v1 = vpop.f32.mrb[13].mxu1  ;;  %v4459_v62 = vcombine.high %v824_v57, %v828_v58  ;;  %v5104_v49 = vld [vmem:[#allocation6 + $0x148] ss:$16 sps:$4 sm:$0xff]  }
 0x24f   : > { %v771_v5 = vadd.f32 %v4419_v45, %v770_v1  ;;  %1256 = vmatmul.mubr.bf16.vlgmr.msra.gmra.mrb[16].mxu1 %v6037_v61  ;;  %1402 = vmatmul.mubr.bf16.vlgmr.msra.gmra.mrb[0].mxu0 %v6037_v61  ;;  %v4892_v6 = vpop.f32.mrb[14].mxu1  ;;  %v4458_v1 = vcombine.low %v824_v57, %v828_v58  ;;  %v5110_v53 = vld [vmem:[#allocation6 + $0x168] ss:$16 sps:$4 sm:$0xff]   ;;  %v5121_v58 = vld [vmem:[#allocation6 + $0x1a4] ss:$16 sps:$4 sm:$0xff]  }
 0x250   : > { %v791_v8 = vmax.f32 %v779_v0, 0.0  ;;  %v782_v9 = vadd.f32 %v4892_v6, %v4419_v45  ;;  %1297 = vmatpush1.bf16.msra.mxu1 %v4430_v43  ;;  %v773_v12 = vpop.f32.mrb[15].mxu1  ;;  %1265 = vmatprep.mubr.bf16.mxu1 %v5753_v42  ;;  %v4478_v43 = vcombine.low %v846_v35, %v850_v36  ;;  %v836_v0 = vld [vmem:[#allocation3 + $0x138] sm:$0xff]  ;;  %v5083_v36 = vld [vmem:[#allocation6 + $0xe0] ss:$16 sps:$4 sm:$0xff]  }
 0x251   : > { %v789_v15 = vmax.f32 %v771_v5, 0.0  ;;  %v774_v16 = vadd.f32 %v4419_v45, %v773_v12  ;;  %1298 = vmatprep.subr.bf16.mxu1 %v4439_v63  ;;  %1411 = vmatprep.mubr.bf16.mxu0 %v5753_v42  ;;  %v800_v45 = vld [vmem:[#allocation3 + $0x18] sm:$0xff] }
 0x252   : > { %v792_v18 = vmax.f32 %v782_v9, 0.0  ;;  %3383 = vmatpush1.bf16.msra.mxu0 %v5041_v4  ;;  %v4435_v48 = vcombine.high %v800_v45, %v804_v46  ;;  %v4434_v51 = vcombine.low %v800_v45, %v804_v46  ;;  %v832_v63 = vld [vmem:[#allocation3 + $0x118] sm:$0xff]  ;;  %v5103_v46 = vld [vmem:[#allocation6 + $0x144] ss:$16 sps:$4 sm:$0xff]  }
 0x253   : > { %v790_v19 = vmax.f32 %v774_v16, 0.0  ;;  %3384 = vmatprep.subr.bf16.mxu0 %v5049_v7  ;;  %v4467_v2 = vcombine.high %v832_v63, %v836_v0  ;;  %v844_v4 = vld [vmem:[#allocation3 + $0x178] sm:$0xff]  ;;  %v4466_v5 = vcombine.low %v832_v63, %v836_v0  ;;  %v5127_v0 = vld [vmem:[#allocation6 + $0x1c4] ss:$16 sps:$4 sm:$0xff]  }
 0x254   : > { %v6043_v20 = vpack.c.bf16 %v792_v18, %v791_v8  ;;  %1299 = vmatpush1.bf16.msra.mxu1 %v4438_v14  ;;  %v4475_v6 = vcombine.high %v840_v3, %v844_v4  ;;  %v848_v7 = vld [vmem:[#allocation3 + $0x198] sm:$0xff]  ;;  %v4474_v9 = vcombine.low %v840_v3, %v844_v4  ;;  %v5133_v4 = vld [vmem:[#allocation6 + $0x1e4] ss:$16 sps:$4 sm:$0xff]  }
 0x255   : > { %v6045_v22 = vpack.c.bf16 %v790_v19, %v789_v15  ;;  %1300 = vmatprep.subr.bf16.mxu1 %v4447_v17  ;;  %v852_v8 = vld [vmem:[#allocation3 + $0x1b8] sm:$0xff] }
 0x256   : > { %3385 = vmatpush1.bf16.msra.mxu0 %v5047_v13  ;;  %v4483_v12 = vcombine.high %v848_v7, %v852_v8  ;;  %v856_v14 = vld [vmem:[#allocation3 + $0x1d8] sm:$0xff]  ;;  %v4482_v16 = vcombine.low %v848_v7, %v852_v8  ;;  %v5139_v8 = vld [vmem:[#allocation6 + $0x204] ss:$16 sps:$4 sm:$0xff]  }
 0x257   : > { %1266 = vmatmul.mubr.bf16.gmra.mrb[20].mxu1 %v6035_v60  ;;  %1412 = vmatmul.mubr.bf16.gmra.mrb[4].mxu0 %v6035_v60  ;;  %v860_v15 = vld [vmem:[#allocation3 + $0x1f8] sm:$0xff] }
 0x258   : > { %1301 = vmatpush1.bf16.msra.mxu1 %v4446_v21  ;;  %1275 = vmatprep.mubr.bf16.mxu1 %v5753_v42  ;;  %v4491_v17 = vcombine.high %v856_v14, %v860_v15  ;;  %v4490_v18 = vcombine.low %v856_v14, %v860_v15  ;;  %v5052_v13 = vld [vmem:[#allocation6 + $0x2c] ss:$16 sps:$4 sm:$0xff]   ;;  %v5050_v19 = vld [vmem:[#allocation6 + $0x28] ss:$16 sps:$4 sm:$0xff]  }
 0x259   : > { %1302 = vmatprep.subr.bf16.mxu1 %v4455_v23  ;;  %1421 = vmatprep.mubr.bf16.mxu0 %v5753_v42  ;;  %v5058_v21 = vld [vmem:[#allocation6 + $0x4c] ss:$16 sps:$4 sm:$0xff]   ;;  %v5056_v23 = vld [vmem:[#allocation6 + $0x48] ss:$16 sps:$4 sm:$0xff]  }
 0x25a   : > { %3386 = vmatprep.subr.bf16.mxu0 %v5055_v26  ;;  %v5070_v26 = vld [vmem:[#allocation6 + $0x8c] ss:$16 sps:$4 sm:$0xff]   ;;  %v5098_v45 = vld [vmem:[#allocation6 + $0x128] ss:$16 sps:$4 sm:$0xff]  }
 0x25b   : > { %3387 = vmatpush1.bf16.msra.mxu0 %v5053_v27  ;;  %v5065_v27 = vld [vmem:[#allocation6 + $0x80] ss:$16 sps:$4 sm:$0xff]   ;;  %v5088_v35 = vld [vmem:[#allocation6 + $0xec] ss:$16 sps:$4 sm:$0xff]   ;;  %v5116_v57 = vld [vmem:[#allocation6 + $0x188] ss:$16 sps:$4 sm:$0xff]  }
 0x25c   : > { %1303 = vmatpush1.bf16.msra.mxu1 %v4454_v28  ;;  %3388 = vmatprep.subr.bf16.mxu0 %v5061_v29  ;;  %v5068_v28 = vld [vmem:[#allocation6 + $0x88] ss:$16 sps:$4 sm:$0xff]   ;;  %v5073_v29 = vld [vmem:[#allocation6 + $0xa4] ss:$16 sps:$4 sm:$0xff]  }
 0x25d   : > { %1304 = vmatprep.subr.bf16.mxu1 %v4463_v30  ;;  %v5071_v30 = vld [vmem:[#allocation6 + $0xa0] ss:$16 sps:$4 sm:$0xff]   ;;  %v5122_v63 = vld [vmem:[#allocation6 + $0x1a8] ss:$16 sps:$4 sm:$0xff]  }
 0x25e   : > { %v5128_v3 = vld [vmem:[#allocation6 + $0x1c8] ss:$16 sps:$4 sm:$0xff]  }
 0x25f   : > { %1276 = vmatmul.mubr.bf16.gmra.mrb[24].mxu1 %v6045_v22  ;;  %1422 = vmatmul.mubr.bf16.gmra.mrb[8].mxu0 %v6045_v22  ;;  %v5134_v7 = vld [vmem:[#allocation6 + $0x1e8] ss:$16 sps:$4 sm:$0xff]  }
 0x260   : > { %1305 = vmatpush1.bf16.msra.mxu1 %v4462_v33  ;;  %1285 = vmatprep.mubr.bf16.mxu1 %v5753_v42  ;;  %v5080_v33 = vld [vmem:[#allocation6 + $0xc8] ss:$16 sps:$4 sm:$0xff]  }
 0x261   : > { %1306 = vmatprep.subr.bf16.mxu1 %v4471_v34  ;;  %1431 = vmatprep.mubr.bf16.mxu0 %v5753_v42  ;;  %v5085_v34 = vld [vmem:[#allocation6 + $0xe4] ss:$16 sps:$4 sm:$0xff]  }
 0x262   : > { %3389 = vmatpush1.bf16.msra.mxu0 %v5059_v37  ;;  %v5086_v37 = vld [vmem:[#allocation6 + $0xe8] ss:$16 sps:$4 sm:$0xff]  }
 0x264   : > { %1307 = vmatpush1.bf16.msra.mxu1 %v4470_v38  ;;  %v5091_v38 = vld [vmem:[#allocation6 + $0x104] ss:$16 sps:$4 sm:$0xff]  }
 0x265   : > { %1308 = vmatprep.subr.bf16.mxu1 %v4479_v39  ;;  %v5089_v39 = vld [vmem:[#allocation6 + $0x100] ss:$16 sps:$4 sm:$0xff]  }
 0x267   : > { %1286 = vmatmul.mubr.bf16.gmra.mrb[28].mxu1 %v6043_v20  ;;  %1432 = vmatmul.mubr.bf16.gmra.mrb[12].mxu0 %v6043_v20 }
 0x268   : > { %1309 = vmatpush1.bf16.msra.mxu1 %v4478_v43  ;;  %1328 = vmatprep.mubr.bf16.mxu1 %v5753_v42  ;;  %v5100_v43 = vld [vmem:[#allocation6 + $0x12c] ss:$16 sps:$4 sm:$0xff]  }
 0x269   : > { %1310 = vmatprep.subr.bf16.mxu1 %v4487_v44  ;;  %v5095_v44 = vld [vmem:[#allocation6 + $0x120] ss:$16 sps:$4 sm:$0xff]  }
 0x26c   : > { %1311 = vmatpush1.bf16.msra.mxu1 %v4486_v47  ;;  %v5106_v47 = vld [vmem:[#allocation6 + $0x14c] ss:$16 sps:$4 sm:$0xff]  }
 0x26d   : > { %1442 = vmatprep.subr.bf16.mxu1 %v4435_v48  ;;  %v5101_v48 = vld [vmem:[#allocation6 + $0x140] ss:$16 sps:$4 sm:$0xff]  }
 0x26f   : > { %1329 = vmatmul.mubr.bf16.vlgmr.msra.gmra.mrb[32].mxu1 %v6037_v61 }
 0x270   : > { %1443 = vmatpush1.bf16.msra.mxu1 %v4434_v51  ;;  %1338 = vmatprep.mubr.bf16.mxu1 %v5753_v42  ;;  %v5112_v51 = vld [vmem:[#allocation6 + $0x16c] ss:$16 sps:$4 sm:$0xff]  }
 0x271   : > { %1444 = vmatprep.subr.bf16.mxu1 %v4443_v52  ;;  %v5107_v52 = vld [vmem:[#allocation6 + $0x160] ss:$16 sps:$4 sm:$0xff]  }
 0x274   : > { %1445 = vmatpush1.bf16.msra.mxu1 %v4442_v55  ;;  %v5118_v55 = vld [vmem:[#allocation6 + $0x18c] ss:$16 sps:$4 sm:$0xff]  }
 0x275   : > { %1446 = vmatprep.subr.bf16.mxu1 %v4451_v56  ;;  %v5113_v56 = vld [vmem:[#allocation6 + $0x180] ss:$16 sps:$4 sm:$0xff]  }
 0x277   : > { %1339 = vmatmul.mubr.bf16.gmra.mrb[36].mxu1 %v6035_v60 }
 0x278   : > { %1447 = vmatpush1.bf16.msra.mxu1 %v4450_v59  ;;  %1348 = vmatprep.mubr.bf16.mxu1 %v5753_v42  ;;  %v5124_v59 = vld [vmem:[#allocation6 + $0x1ac] ss:$16 sps:$4 sm:$0xff]  }
 0x279   : > { %1448 = vmatprep.subr.bf16.mxu1 %v4459_v62  ;;  %v5119_v62 = vld [vmem:[#allocation6 + $0x1a0] ss:$16 sps:$4 sm:$0xff]  }
 0x27c   : > { %1449 = vmatpush1.bf16.msra.mxu1 %v4458_v1  ;;  %v5130_v1 = vld [vmem:[#allocation6 + $0x1cc] ss:$16 sps:$4 sm:$0xff]  }
 0x27d   : > { %1450 = vmatprep.subr.bf16.mxu1 %v4467_v2  ;;  %v5125_v2 = vld [vmem:[#allocation6 + $0x1c0] ss:$16 sps:$4 sm:$0xff]  }
 0x27f   : > { %1349 = vmatmul.mubr.bf16.gmra.mrb[40].mxu1 %v6045_v22 }
 0x280   : > { %1451 = vmatpush1.bf16.msra.mxu1 %v4466_v5  ;;  %1358 = vmatprep.mubr.bf16.mxu1 %v5753_v42  ;;  %v5136_v5 = vld [vmem:[#allocation6 + $0x1ec] ss:$16 sps:$4 sm:$0xff]  }
 0x281   : > { %1452 = vmatprep.subr.bf16.mxu1 %v4475_v6  ;;  %v5131_v6 = vld [vmem:[#allocation6 + $0x1e0] ss:$16 sps:$4 sm:$0xff]  }
 0x284   : > { %1453 = vmatpush1.bf16.msra.mxu1 %v4474_v9  ;;  %v5142_v9 = vld [vmem:[#allocation6 + $0x20c] ss:$16 sps:$4 sm:$0xff]  }
 0x285   : > { %1454 = vmatprep.subr.bf16.mxu1 %v4483_v12  ;;  %v863_v12 = vlaneseq }
 0x287   : > { %1359 = vmatmul.mubr.bf16.gmra.mrb[44].mxu1 %v6043_v20  ;;  %v6073_v14 = vshrl.u32 %v863_v12, 7 }
 0x288   : > { %1455 = vmatpush1.bf16.msra.mxu1 %v4482_v16  ;;  %1474 = vmatprep.mubr.bf16.mxu1 %v5753_v42 }
 0x289   : > { %1456 = vmatprep.subr.bf16.mxu1 %v4491_v17  ;;  %v6076_v15 = vsub.s32 0, %v6073_v14  ;;  %v881_v16 = vsub.s32 4, %v6073_v14  ;;  %v6082_v17 = vld [vmem:[%s6290_s6] sm:$0xff] }
 0x28c   : > { %1457 = vmatpush1.bf16.msra.mxu1 %v4490_v18  ;;  %v6085_v18 = vsub.s32 1, %v6073_v14 }
 0x28d   : > { %3546 = vmatprep.subr.bf16.mxu1 %v5046_v10  ;;  %v885_v10 = vsub.s32 5, %v6073_v14 }
 0x28f   : > { %1475 = vmatmul.mubr.bf16.vlgmr.msra.gmra.mrb[48].mxu1 %v6037_v61  ;;  %v5067_v61 = vld [vmem:[#allocation6 + $0x84] ss:$16 sps:$4 sm:$0xff]  }
 0x290   : > { %1484 = vmatprep.mubr.bf16.mxu1 %v5753_v42  ;;  %3547 = vmatpush1.bf16.msra.mxu1 %v5044_v11  ;;  %v6090_v11 = vrot.slane %v6082_v17, %v6076_v15 }
 0x291   : > { %3548 = vmatprep.subr.bf16.mxu1 %v5052_v13  ;;  %3390 = vmatprep.subr.bf16.mxu0 %v5067_v61  ;;  %v6093_v13 = vrot.slane %v6082_v17, %v881_v16 }
 0x292   : > { %3391 = vmatpush1.bf16.msra.mxu0 %v5065_v27 }
 0x293   : > { %3392 = vmatprep.subr.bf16.mxu0 %v5073_v29 }
 0x294   : > { %3549 = vmatpush1.bf16.msra.mxu1 %v5050_v19  ;;  %v6097_v19 = vrot.slane %v6082_v17, %v6085_v18 }
 0x295   : > { %3550 = vmatprep.subr.bf16.mxu1 %v5058_v21  ;;  %v6100_v21 = vrot.slane %v6082_v17, %v885_v10 }
 0x296   : > { %3393 = vmatpush1.bf16.msra.mxu0 %v5071_v30 }
 0x297   : > { %1485 = vmatmul.mubr.bf16.gmra.mrb[52].mxu1 %v6035_v60  ;;  %v5076_v60 = vld [vmem:[#allocation6 + $0xac] ss:$16 sps:$4 sm:$0xff]  }
 0x298   : > { %1494 = vmatprep.mubr.bf16.mxu1 %v5753_v42  ;;  %3551 = vmatpush1.bf16.msra.mxu1 %v5056_v23 }
 0x299   : > { %3552 = vmatprep.subr.bf16.mxu1 %v5064_v24 }
 0x29c   : > { %3553 = vmatpush1.bf16.msra.mxu1 %v5062_v25 }
 0x29d   : > { %3554 = vmatprep.subr.bf16.mxu1 %v5070_v26 }
 0x29f   : > { %1495 = vmatmul.mubr.bf16.gmra.mrb[56].mxu1 %v6045_v22  ;;  %v5079_v22 = vld [vmem:[#allocation6 + $0xc4] ss:$16 sps:$4 sm:$0xff]  }
 0x2a0   : > { %1504 = vmatprep.mubr.bf16.mxu1 %v5753_v42  ;;  %3555 = vmatpush1.bf16.msra.mxu1 %v5068_v28  ;;  %v5082_v42 = vld [vmem:[#allocation6 + $0xcc] ss:$16 sps:$4 sm:$0xff]  }
 0x2a1   : > { %3556 = vmatprep.subr.bf16.mxu1 %v5076_v60  ;;  %3394 = vmatprep.subr.bf16.mxu0 %v5079_v22 }
 0x2a2   : > { %3395 = vmatpush1.bf16.msra.mxu0 %v5077_v32 }
 0x2a3   : > { %3396 = vmatprep.subr.bf16.mxu0 %v5085_v34 }
 0x2a4   : > { %3557 = vmatpush1.bf16.msra.mxu1 %v5074_v31 }
 0x2a5   : > { %3558 = vmatprep.subr.bf16.mxu1 %v5082_v42 }
 0x2a6   : > { %3397 = vmatpush1.bf16.msra.mxu0 %v5083_v36 }
 0x2a7   : > { %1505 = vmatmul.mubr.bf16.gmra.mrb[60].mxu1 %v6043_v20  ;;  %v5094_v20 = vld [vmem:[#allocation6 + $0x10c] ss:$16 sps:$4 sm:$0xff]   ;;  %3398 = vmatprep.subr.bf16.mxu0 %v5091_v38 }
 0x2a8   : > { %3559 = vmatpush1.bf16.msra.mxu1 %v5080_v33 }
 0x2a9   : > { %3560 = vmatprep.subr.bf16.mxu1 %v5088_v35 }
 0x2aa   : > { %3399 = vmatpush1.bf16.msra.mxu0 %v5089_v39 }
 0x2ab   : > { %3400 = vmatprep.subr.bf16.mxu0 %v5097_v41 }
 0x2ac   : > { %3561 = vmatpush1.bf16.msra.mxu1 %v5086_v37 }
 0x2ad   : > { %3562 = vmatprep.subr.bf16.mxu1 %v5094_v20 }
 0x2ae   : > { %3401 = vmatpush1.bf16.msra.mxu0 %v5095_v44 }
 0x2af   : > { %3402 = vmatprep.subr.bf16.mxu0 %v5103_v46 }
 0x2b0   : > { %3563 = vmatpush1.bf16.msra.mxu1 %v5092_v40 }
 0x2b1   : > { %3564 = vmatprep.subr.bf16.mxu1 %v5100_v43 }
 0x2b2   : > { %3403 = vmatpush1.bf16.msra.mxu0 %v5101_v48 }
 0x2b3   : > { %3404 = vmatprep.subr.bf16.mxu0 %v5109_v50 }
 0x2b4   : > { %3565 = vmatpush1.bf16.msra.mxu1 %v5098_v45 }
 0x2b5   : > { %3566 = vmatprep.subr.bf16.mxu1 %v5106_v47 }
 0x2b6   : > { %3405 = vmatpush1.bf16.msra.mxu0 %v5107_v52 }
 0x2b7   : > { %3406 = vmatprep.subr.bf16.mxu0 %v5115_v54 }
 0x2b8   : > { %3567 = vmatpush1.bf16.msra.mxu1 %v5104_v49 }
 0x2b9   : > { %3568 = vmatprep.subr.bf16.mxu1 %v5112_v51 }
 0x2ba   : > { %3407 = vmatpush1.bf16.msra.mxu0 %v5113_v56 }
 0x2bb   : > { %3408 = vmatprep.subr.bf16.mxu0 %v5121_v58 }
 0x2bc   : > { %3569 = vmatpush1.bf16.msra.mxu1 %v5110_v53 }
 0x2bd   : > { %3570 = vmatprep.subr.bf16.mxu1 %v5118_v55 }
 0x2be   : > { %3409 = vmatpush1.bf16.msra.mxu0 %v5119_v62 }
 0x2bf   : > { %3410 = vmatprep.subr.bf16.mxu0 %v5127_v0 }
 0x2c0   : > { %3571 = vmatpush1.bf16.msra.mxu1 %v5116_v57 }
 0x2c1   : > { %3572 = vmatprep.subr.bf16.mxu1 %v5124_v59 }
 0x2c2   : > { %3411 = vmatpush1.bf16.msra.mxu0 %v5125_v2 }
 0x2c3   : > { %3412 = vmatprep.subr.bf16.mxu0 %v5133_v4 }
 0x2c4   : > { %3573 = vmatpush1.bf16.msra.mxu1 %v5122_v63 }
 0x2c5   : > { %3574 = vmatprep.subr.bf16.mxu1 %v5130_v1 }
 0x2c6   : > { %3413 = vmatpush1.bf16.msra.mxu0 %v5131_v6 }
 0x2c7   : > { %3423 = vmatprep.subr.bf16.mxu0 %v5139_v8 }
 0x2c8   : > { %3575 = vmatpush1.bf16.msra.mxu1 %v5128_v3 }
 0x2c9   : > { %3576 = vmatprep.subr.bf16.mxu1 %v5136_v5 }
 0x2cc   : > { %3577 = vmatpush1.bf16.msra.mxu1 %v5134_v7 }
 0x2cd   : > { %3587 = vmatprep.subr.bf16.mxu1 %v5142_v9 }
 0x322   : > { %v1257_v23 = vpop.f32.mrb[16].mxu1  ;;  %v1403_v24 = vpop.f32.mrb[0].mxu0 }
 0x323   : > { %v1258_v25 = vadd.f32 %v1257_v23, %v6090_v11  ;;  %v1404_v61 = vadd.f32 %v1403_v24, %v6093_v13  ;;  %v1259_v26 = vpop.f32.mrb[17].mxu1  ;;  %v1405_v27 = vpop.f32.mrb[1].mxu0 }
 0x324   : > { %v1260_v28 = vadd.f32 %v1259_v26, %v6097_v19  ;;  %v1406_v29 = vadd.f32 %v1405_v27, %v6100_v21  ;;  %v1261_v60 = vpop.f32.mrb[18].mxu1  ;;  %v1407_v30 = vpop.f32.mrb[2].mxu0 }
 0x325   : > { %v1262_v31 = vadd.f32 %v1261_v60, %v6090_v11  ;;  %v1408_v22 = vadd.f32 %v1407_v30, %v6093_v13  ;;  %v1263_v42 = vpop.f32.mrb[19].mxu1  ;;  %v1409_v32 = vpop.f32.mrb[3].mxu0  ;;  %v1515_v35 = vmax.f32 %v1258_v25, 0.0  ;;  %v1519_v36 = vmax.f32 %v1404_v61, 0.0 }
 0x326   : > { %v1264_v33 = vadd.f32 %v1263_v42, %v6097_v19  ;;  %v1410_v34 = vadd.f32 %v1409_v32, %v6100_v21  ;;  %v1516_v20 = vmax.f32 %v1260_v28, 0.0  ;;  %v1520_v39 = vmax.f32 %v1406_v29, 0.0 }
 0x327   : > { %v1523_v37 = vmax.f32 %v1262_v31, 0.0  ;;  %v1527_v38 = vmax.f32 %v1408_v22, 0.0 }
 0x328   : > { %v1524_v40 = vmax.f32 %v1264_v33, 0.0  ;;  %v1528_v41 = vmax.f32 %v1410_v34, 0.0  ;;  %v873_v33 = vsub.s32 2, %v6073_v14  ;;  %v877_v34 = vsub.s32 3, %v6073_v14 }
 0x329   : > { %v1579_v43 = vmax.f32 %v1515_v35, %v1523_v37  ;;  %v1583_v44 = vmax.f32 %v1519_v36, %v1527_v38 }
 0x32a   : > { %v1580_v45 = vmax.f32 %v1516_v20, %v1524_v40  ;;  %v1584_v46 = vmax.f32 %v1520_v39, %v1528_v41  ;;  %v1267_v47 = vpop.f32.mrb[20].mxu1  ;;  %v1413_v48 = vpop.f32.mrb[4].mxu0 }
 0x32b   : > { %v1268_v49 = vadd.f32 %v1267_v47, %v6090_v11  ;;  %v1414_v50 = vadd.f32 %v1413_v48, %v6093_v13  ;;  %v1269_v51 = vpop.f32.mrb[21].mxu1  ;;  %v1415_v52 = vpop.f32.mrb[5].mxu0 }
 0x32c   : > { %v1270_v53 = vadd.f32 %v1269_v51, %v6097_v19  ;;  %v1416_v54 = vadd.f32 %v1415_v52, %v6100_v21  ;;  %v1271_v55 = vpop.f32.mrb[22].mxu1  ;;  %v1417_v56 = vpop.f32.mrb[6].mxu0 }
 0x32d   : > { %v1531_v57 = vmax.f32 %v1268_v49, 0.0  ;;  %v1535_v58 = vmax.f32 %v1414_v50, 0.0  ;;  %v1272_v59 = vadd.f32 %v1271_v55, %v6090_v11  ;;  %v1418_v62 = vadd.f32 %v1417_v56, %v6093_v13  ;;  %v1273_v63 = vpop.f32.mrb[23].mxu1  ;;  %v1419_v0 = vpop.f32.mrb[7].mxu0 }
 0x32e   : > { %v1532_v1 = vmax.f32 %v1270_v53, 0.0  ;;  %v1536_v2 = vmax.f32 %v1416_v54, 0.0  ;;  %v1274_v3 = vadd.f32 %v1273_v63, %v6097_v19  ;;  %v1420_v4 = vadd.f32 %v1419_v0, %v6100_v21 }
 0x32f   : > { %v1587_v5 = vmax.f32 %v1579_v43, %v1531_v57  ;;  %v1591_v6 = vmax.f32 %v1583_v44, %v1535_v58  ;;  %v1539_v7 = vmax.f32 %v1272_v59, 0.0  ;;  %v1543_v8 = vmax.f32 %v1418_v62, 0.0 }
 0x330   : > { %v1588_v9 = vmax.f32 %v1580_v45, %v1532_v1  ;;  %v1592_v12 = vmax.f32 %v1584_v46, %v1536_v2  ;;  %v1540_v16 = vmax.f32 %v1274_v3, 0.0  ;;  %v1544_v10 = vmax.f32 %v1420_v4, 0.0 }
 0x331   : > { %v1595_v23 = vmax.f32 %v1587_v5, %v1539_v7  ;;  %v1599_v24 = vmax.f32 %v1591_v6, %v1543_v8  ;;  %v6135_v5 = vrot.slane %v6082_v17, %v873_v33  ;;  %v6140_v6 = vrot.slane %v6082_v17, %v877_v34 }
 0x332   : > { %v1596_v25 = vmax.f32 %v1588_v9, %v1540_v16  ;;  %v1600_v61 = vmax.f32 %v1592_v12, %v1544_v10  ;;  %v1277_v26 = vpop.f32.mrb[24].mxu1  ;;  %v1423_v27 = vpop.f32.mrb[8].mxu0 }
 0x333   : > { %v1278_v28 = vadd.f32 %v1277_v26, %v6090_v11  ;;  %v1424_v29 = vadd.f32 %v1423_v27, %v6093_v13  ;;  %v1279_v60 = vpop.f32.mrb[25].mxu1  ;;  %v1425_v30 = vpop.f32.mrb[9].mxu0 }
 0x334   : > { %v1280_v31 = vadd.f32 %v1279_v60, %v6097_v19  ;;  %v1426_v22 = vadd.f32 %v1425_v30, %v6100_v21  ;;  %v1281_v42 = vpop.f32.mrb[26].mxu1  ;;  %v1427_v32 = vpop.f32.mrb[10].mxu0 }
 0x335   : > { %v1547_v35 = vmax.f32 %v1278_v28, 0.0  ;;  %v1551_v36 = vmax.f32 %v1424_v29, 0.0  ;;  %v1282_v37 = vadd.f32 %v1281_v42, %v6090_v11  ;;  %v1428_v38 = vadd.f32 %v1427_v32, %v6093_v13  ;;  %v1283_v20 = vpop.f32.mrb[27].mxu1  ;;  %v1429_v39 = vpop.f32.mrb[11].mxu0 }
 0x336   : > { %v1548_v40 = vmax.f32 %v1280_v31, 0.0  ;;  %v1552_v41 = vmax.f32 %v1426_v22, 0.0  ;;  %v1284_v43 = vadd.f32 %v1283_v20, %v6097_v19  ;;  %v1430_v44 = vadd.f32 %v1429_v39, %v6100_v21 }
 0x337   : > { %v1603_v45 = vmax.f32 %v1595_v23, %v1547_v35  ;;  %v1607_v46 = vmax.f32 %v1599_v24, %v1551_v36  ;;  %v1555_v47 = vmax.f32 %v1282_v37, 0.0  ;;  %v1559_v48 = vmax.f32 %v1428_v38, 0.0 }
 0x338   : > { %v1604_v49 = vmax.f32 %v1596_v25, %v1548_v40  ;;  %v1608_v50 = vmax.f32 %v1600_v61, %v1552_v41  ;;  %v1556_v51 = vmax.f32 %v1284_v43, 0.0  ;;  %v1560_v52 = vmax.f32 %v1430_v44, 0.0 }
 0x339   : > { %v1611_v53 = vmax.f32 %v1603_v45, %v1555_v47  ;;  %v1615_v54 = vmax.f32 %v1607_v46, %v1559_v48 }
 0x33a   : > { %v1612_v55 = vmax.f32 %v1604_v49, %v1556_v51  ;;  %v1616_v56 = vmax.f32 %v1608_v50, %v1560_v52  ;;  %v1287_v57 = vpop.f32.mrb[28].mxu1  ;;  %v1433_v58 = vpop.f32.mrb[12].mxu0 }
 0x33b   : > { %v1288_v59 = vadd.f32 %v1287_v57, %v6090_v11  ;;  %v1434_v62 = vadd.f32 %v1433_v58, %v6093_v13  ;;  %v1289_v63 = vpop.f32.mrb[29].mxu1  ;;  %v1435_v0 = vpop.f32.mrb[13].mxu0 }
 0x33c   : > { %v1290_v1 = vadd.f32 %v1289_v63, %v6097_v19  ;;  %v1436_v2 = vadd.f32 %v1435_v0, %v6100_v21  ;;  %v1291_v3 = vpop.f32.mrb[30].mxu1  ;;  %v1437_v4 = vpop.f32.mrb[14].mxu0 }
 0x33d   : > { %v1563_v7 = vmax.f32 %v1288_v59, 0.0  ;;  %v1567_v8 = vmax.f32 %v1434_v62, 0.0  ;;  %v1292_v9 = vadd.f32 %v1291_v3, %v6090_v11  ;;  %v1438_v12 = vadd.f32 %v1437_v4, %v6093_v13  ;;  %v1293_v16 = vpop.f32.mrb[31].mxu1  ;;  %v1439_v10 = vpop.f32.mrb[15].mxu0 }
 0x33e   : > { %v1564_v23 = vmax.f32 %v1290_v1, 0.0  ;;  %v1568_v24 = vmax.f32 %v1436_v2, 0.0  ;;  %v1294_v25 = vadd.f32 %v1293_v16, %v6097_v19  ;;  %v1440_v61 = vadd.f32 %v1439_v10, %v6100_v21 }
 0x33f   : > { %v1619_v26 = vmax.f32 %v1611_v53, %v1563_v7  ;;  %v1623_v27 = vmax.f32 %v1615_v54, %v1567_v8  ;;  %v1571_v28 = vmax.f32 %v1292_v9, 0.0  ;;  %v1575_v29 = vmax.f32 %v1438_v12, 0.0 }
 0x340   : > { %v1620_v60 = vmax.f32 %v1612_v55, %v1564_v23  ;;  %v1624_v30 = vmax.f32 %v1616_v56, %v1568_v24  ;;  %v1572_v31 = vmax.f32 %v1294_v25, 0.0  ;;  %v1576_v22 = vmax.f32 %v1440_v61, 0.0  ;;  %v5137_v24 = vld [vmem:[#allocation6 + $0x200] ss:$16 sps:$4 sm:$0xff]   ;;  %v5140_v25 = vld [vmem:[#allocation6 + $0x208] ss:$16 sps:$4 sm:$0xff]  }
 0x341   : > { %v1627_v42 = vmax.f32 %v1619_v26, %v1571_v28  ;;  %v6146_v11 = vmax.f32 %v1623_v27, %v1575_v29  ;;  %v5145_v27 = vld [vmem:[#allocation6 + $0x224] ss:$16 sps:$4 sm:$0xff]   ;;  %v5148_v28 = vld [vmem:[#allocation6 + $0x22c] ss:$16 sps:$4 sm:$0xff]  }
 0x342   : > { %v1628_v13 = vmax.f32 %v1620_v60, %v1572_v31  ;;  %v6148_v32 = vmax.f32 %v1624_v30, %v1576_v22  ;;  %v1330_v35 = vpop.f32.mrb[32].mxu1 }
 0x343   : > { %v1670_v36 = vrot.slane %v1627_v42, 4  ;;  %v1331_v19 = vadd.f32 %v1330_v35, %v6135_v5  ;;  %v1332_v37 = vpop.f32.mrb[33].mxu1  ;;  %v5146_v35 = vld [vmem:[#allocation6 + $0x228] ss:$16 sps:$4 sm:$0xff]  }
 0x344   : > { %v1676_v21 = vrot.slane %v1628_v13, 4  ;;  %v1333_v38 = vadd.f32 %v1332_v37, %v6140_v6  ;;  %v1334_v20 = vpop.f32.mrb[34].mxu1 }
 0x345   : > { %v1671_v39 = vmax.f32 %v1627_v42, %v1670_v36  ;;  %v1335_v40 = vadd.f32 %v1334_v20, %v6135_v5  ;;  %v1336_v41 = vpop.f32.mrb[35].mxu1  ;;  %v1517_v46 = vmax.f32 %v1331_v19, 0.0 }
 0x346   : > { %v1677_v43 = vmax.f32 %v1628_v13, %v1676_v21  ;;  %v1337_v44 = vadd.f32 %v1336_v41, %v6140_v6  ;;  %v1518_v49 = vmax.f32 %v1333_v38, 0.0  ;;  %v5143_v13 = vld [vmem:[#allocation6 + $0x220] ss:$16 sps:$4 sm:$0xff]   ;;  %v5151_v21 = vld [vmem:[#allocation6 + $0x244] ss:$16 sps:$4 sm:$0xff]  }
 0x347   : > { %v1672_v45 = vrot.slane %v1671_v39, 2  ;;  %v1525_v47 = vmax.f32 %v1335_v40, 0.0  ;;  %v5154_v38 = vld [vmem:[#allocation6 + $0x24c] ss:$16 sps:$4 sm:$0xff]  }
 0x348   : > { %v1678_v48 = vrot.slane %v1677_v43, 2  ;;  %v1526_v50 = vmax.f32 %v1337_v44, 0.0 }
 0x349   : > { %v1673_v51 = vmax.f32 %v1671_v39, %v1672_v45  ;;  %v1581_v52 = vmax.f32 %v1517_v46, %v1525_v47  ;;  %v5149_v45 = vld [vmem:[#allocation6 + $0x240] ss:$16 sps:$4 sm:$0xff]   ;;  %v5152_v46 = vld [vmem:[#allocation6 + $0x248] ss:$16 sps:$4 sm:$0xff]  }
 0x34a   : > { %v1582_v53 = vmax.f32 %v1518_v49, %v1526_v50  ;;  %v1340_v54 = vpop.f32.mrb[36].mxu1  ;;  %v1679_v55 = vmax.f32 %v1677_v43, %v1678_v48  ;;  %v5157_v48 = vld [vmem:[#allocation6 + $0x264] ss:$16 sps:$4 sm:$0xff]   ;;  %v5160_v49 = vld [vmem:[#allocation6 + $0x26c] ss:$16 sps:$4 sm:$0xff]  }
 0x34b   : > { %v1674_v56 = vrot.slane %v1673_v51, 1  ;;  %v1341_v57 = vadd.f32 %v1340_v54, %v6135_v5  ;;  %v1342_v58 = vpop.f32.mrb[37].mxu1  ;;  %v889_v54 = vsub.s32 6, %v6073_v14 }
 0x34c   : > { %v1343_v59 = vadd.f32 %v1342_v58, %v6140_v6  ;;  %v1344_v62 = vpop.f32.mrb[38].mxu1  ;;  %v1680_v63 = vrot.slane %v1679_v55, 1  ;;  %v5158_v58 = vld [vmem:[#allocation6 + $0x268] ss:$16 sps:$4 sm:$0xff]  }
 0x34d   : > { %v1675_v0 = vmax.f32 %v1673_v51, %v1674_v56  ;;  %v1533_v1 = vmax.f32 %v1341_v57, 0.0  ;;  %v1345_v2 = vadd.f32 %v1344_v62, %v6135_v5  ;;  %v1346_v3 = vpop.f32.mrb[39].mxu1  ;;  %v5155_v57 = vld [vmem:[#allocation6 + $0x260] ss:$16 sps:$4 sm:$0xff]  }
 0x34e   : > { %v1534_v4 = vmax.f32 %v1343_v59, 0.0  ;;  %v1347_v7 = vadd.f32 %v1346_v3, %v6140_v6  ;;  %v1681_v8 = vmax.f32 %v1679_v55, %v1680_v63  ;;  %v893_v59 = vsub.s32 7, %v6073_v14  ;;  %v5535_v14 = vld [vmem:[#allocation9 + $0x78] sm:$0xff]  }
 0x34f   : > { %v1589_v9 = vmax.f32 %v1581_v52, %v1533_v1  ;;  %v1541_v12 = vmax.f32 %v1345_v2, 0.0  ;;  %v2073_v61 = vpack.c.bf16 %v1675_v0, %v1675_v0  ;;  %v5163_v1 = vld [vmem:[#allocation6 + $0x284] ss:$16 sps:$4 sm:$0xff]   ;;  %v5166_v2 = vld [vmem:[#allocation6 + $0x28c] ss:$16 sps:$4 sm:$0xff]  }
 0x350   : > { %v1590_v16 = vmax.f32 %v1582_v53, %v1534_v4  ;;  %v1542_v10 = vmax.f32 %v1347_v7, 0.0  ;;  %v2074_v23 = vpack.c.bf16 %v1681_v8, %v1681_v8 }
 0x351   : > { %v1597_v26 = vmax.f32 %v1589_v9, %v1541_v12  ;;  %v6169_v9 = vrot.slane %v6082_v17, %v889_v54  ;;  %v5182_v54 = vld [vmem:[#allocation6 + $0x2e8] ss:$16 sps:$4 sm:$0xff]  }
 0x352   : > { %v1598_v29 = vmax.f32 %v1590_v16, %v1542_v10  ;;  %v1350_v60 = vpop.f32.mrb[40].mxu1  ;;  %3414 = vmatprep.mubr.bf16.mxu0 %v2074_v23  ;;  %3578 = vmatprep.mubr.bf16.mxu1 %v2074_v23  ;;  %v5161_v10 = vld [vmem:[#allocation6 + $0x280] ss:$16 sps:$4 sm:$0xff]   ;;  %v5164_v23 = vld [vmem:[#allocation6 + $0x288] ss:$16 sps:$4 sm:$0xff]  }
 0x353   : > { %v1351_v30 = vadd.f32 %v1350_v60, %v6135_v5  ;;  %v1352_v31 = vpop.f32.mrb[41].mxu1  ;;  %3415 = vmatmul.mubr.bf16.vlgmr.msra.gmra.mrb[16].mxu0 %v2073_v61  ;;  %3579 = vmatmul.mubr.bf16.vlgmr.msra.gmra.mrb[64].mxu1 %v2073_v61 }
 0x354   : > { %v1353_v22 = vadd.f32 %v1352_v31, %v6140_v6  ;;  %3424 = vmatpush1.bf16.msra.mxu0 %v5137_v24  ;;  %3588 = vmatpush1.bf16.msra.mxu1 %v5140_v25  ;;  %v1354_v42 = vpop.f32.mrb[42].mxu1  ;;  %v5169_v25 = vld [vmem:[#allocation6 + $0x2a4] ss:$16 sps:$4 sm:$0xff]   ;;  %v5167_v31 = vld [vmem:[#allocation6 + $0x2a0] ss:$16 sps:$4 sm:$0xff]  }
 0x355   : > { %v1549_v36 = vmax.f32 %v1351_v30, 0.0  ;;  %v1355_v19 = vadd.f32 %v1354_v42, %v6135_v5  ;;  %v1356_v37 = vpop.f32.mrb[43].mxu1  ;;  %3425 = vmatprep.subr.bf16.mxu0 %v5145_v27  ;;  %3589 = vmatprep.subr.bf16.mxu1 %v5148_v28 }
 0x356   : > { %v1550_v20 = vmax.f32 %v1353_v22, 0.0  ;;  %v1357_v39 = vadd.f32 %v1356_v37, %v6140_v6 }
 0x357   : > { %v1605_v40 = vmax.f32 %v1597_v26, %v1549_v36  ;;  %v1557_v41 = vmax.f32 %v1355_v19, 0.0 }
 0x358   : > { %v1606_v43 = vmax.f32 %v1598_v29, %v1550_v20  ;;  %v1558_v44 = vmax.f32 %v1357_v39, 0.0  ;;  %3426 = vmatpush1.bf16.msra.mxu0 %v5143_v13  ;;  %3590 = vmatpush1.bf16.msra.mxu1 %v5146_v35  ;;  %v5175_v13 = vld [vmem:[#allocation6 + $0x2c4] ss:$16 sps:$4 sm:$0xff]   ;;  %v5178_v35 = vld [vmem:[#allocation6 + $0x2cc] ss:$16 sps:$4 sm:$0xff]  }
 0x359   : > { %v1613_v47 = vmax.f32 %v1605_v40, %v1557_v41  ;;  %3427 = vmatprep.subr.bf16.mxu0 %v5151_v21  ;;  %3591 = vmatprep.subr.bf16.mxu1 %v5154_v38  ;;  %v5173_v38 = vld [vmem:[#allocation6 + $0x2c0] ss:$16 sps:$4 sm:$0xff]   ;;  %v5176_v41 = vld [vmem:[#allocation6 + $0x2c8] ss:$16 sps:$4 sm:$0xff]  }
 0x35a   : > { %v1614_v50 = vmax.f32 %v1606_v43, %v1558_v44  ;;  %v1360_v51 = vpop.f32.mrb[44].mxu1  ;;  %v5181_v44 = vld [vmem:[#allocation6 + $0x2e4] ss:$16 sps:$4 sm:$0xff]  }
 0x35b   : > { %v1361_v52 = vadd.f32 %v1360_v51, %v6135_v5  ;;  %v1362_v53 = vpop.f32.mrb[45].mxu1 }
 0x35c   : > { %v1363_v55 = vadd.f32 %v1362_v53, %v6140_v6  ;;  %3428 = vmatpush1.bf16.msra.mxu0 %v5149_v45  ;;  %3592 = vmatpush1.bf16.msra.mxu1 %v5152_v46  ;;  %v1364_v56 = vpop.f32.mrb[46].mxu1  ;;  %v5184_v45 = vld [vmem:[#allocation6 + $0x2ec] ss:$16 sps:$4 sm:$0xff]   ;;  %v5179_v53 = vld [vmem:[#allocation6 + $0x2e0] ss:$16 sps:$4 sm:$0xff]  }
 0x35d   : > { %v1565_v62 = vmax.f32 %v1361_v52, 0.0  ;;  %v1365_v63 = vadd.f32 %v1364_v56, %v6135_v5  ;;  %v1366_v0 = vpop.f32.mrb[47].mxu1  ;;  %3429 = vmatprep.subr.bf16.mxu0 %v5157_v48  ;;  %3593 = vmatprep.subr.bf16.mxu1 %v5160_v49  ;;  %v6172_v5 = vrot.slane %v6082_v17, %v893_v59  ;;  %v5170_v17 = vld [vmem:[#allocation6 + $0x2a8] ss:$16 sps:$4 sm:$0xff]   ;;  %v5187_v59 = vld [vmem:[#allocation6 + $0x304] ss:$16 sps:$4 sm:$0xff]  }
 0x35e   : > { %v1566_v3 = vmax.f32 %v1363_v55, 0.0  ;;  %v1367_v4 = vadd.f32 %v1366_v0, %v6140_v6  ;;  %v5172_v6 = vld [vmem:[#allocation6 + $0x2ac] ss:$16 sps:$4 sm:$0xff]  }
 0x35f   : > { %v1621_v7 = vmax.f32 %v1613_v47, %v1565_v62  ;;  %v1573_v8 = vmax.f32 %v1365_v63, 0.0  ;;  %v5190_v62 = vld [vmem:[#allocation6 + $0x30c] ss:$16 sps:$4 sm:$0xff]  }
 0x360   : > { %v1622_v12 = vmax.f32 %v1614_v50, %v1566_v3  ;;  %v1574_v16 = vmax.f32 %v1367_v4, 0.0  ;;  %3430 = vmatpush1.bf16.msra.mxu0 %v5155_v57  ;;  %3594 = vmatpush1.bf16.msra.mxu1 %v5158_v58 }
 0x361   : > { %v6174_v24 = vmax.f32 %v1621_v7, %v1573_v8  ;;  %3431 = vmatprep.subr.bf16.mxu0 %v5163_v1  ;;  %3595 = vmatprep.subr.bf16.mxu1 %v5166_v2  ;;  %v5185_v8 = vld [vmem:[#allocation6 + $0x300] ss:$16 sps:$4 sm:$0xff]  }
 0x362   : > { %v1630_v61 = vmax.f32 %v1622_v12, %v1574_v16  ;;  %v1476_v26 = vpop.f32.mrb[48].mxu1  ;;  %v5188_v16 = vld [vmem:[#allocation6 + $0x308] ss:$16 sps:$4 sm:$0xff]  }
 0x363   : > { %v1477_v27 = vadd.f32 %v1476_v26, %v6169_v9  ;;  %v1478_v28 = vpop.f32.mrb[49].mxu1 }
 0x364   : > { %v1688_v29 = vrot.slane %v1630_v61, 4  ;;  %v1479_v60 = vadd.f32 %v1478_v28, %v6172_v5  ;;  %3432 = vmatpush1.bf16.msra.mxu0 %v5161_v10  ;;  %3596 = vmatpush1.bf16.msra.mxu1 %v5164_v23  ;;  %v1480_v30 = vpop.f32.mrb[50].mxu1  ;;  %v5193_v23 = vld [vmem:[#allocation6 + $0x324] ss:$16 sps:$4 sm:$0xff]  }
 0x365   : > { %v1481_v22 = vadd.f32 %v1480_v30, %v6169_v9  ;;  %v1482_v42 = vpop.f32.mrb[51].mxu1  ;;  %3433 = vmatprep.subr.bf16.mxu0 %v5169_v25  ;;  %3597 = vmatprep.subr.bf16.mxu1 %v5172_v6  ;;  %v1521_v37 = vmax.f32 %v1477_v27, 0.0  ;;  %v5196_v25 = vld [vmem:[#allocation6 + $0x32c] ss:$16 sps:$4 sm:$0xff]   ;;  %v5194_v30 = vld [vmem:[#allocation6 + $0x328] ss:$16 sps:$4 sm:$0xff]  }
 0x366   : > { %v1689_v36 = vmax.f32 %v1630_v61, %v1688_v29  ;;  %v1483_v19 = vadd.f32 %v1482_v42, %v6172_v5  ;;  %v1522_v39 = vmax.f32 %v1479_v60, 0.0  ;;  %v5191_v60 = vld [vmem:[#allocation6 + $0x320] ss:$16 sps:$4 sm:$0xff]   ;;  %v5199_v42 = vld [vmem:[#allocation6 + $0x344] ss:$16 sps:$4 sm:$0xff]  }
 0x367   : > { %v1529_v21 = vmax.f32 %v1481_v22, 0.0 }
 0x368   : > { %v1690_v20 = vrot.slane %v1689_v36, 2  ;;  %v1530_v40 = vmax.f32 %v1483_v19, 0.0  ;;  %3434 = vmatpush1.bf16.msra.mxu0 %v5167_v31  ;;  %3598 = vmatpush1.bf16.msra.mxu1 %v5170_v17 }
 0x369   : > { %v1585_v43 = vmax.f32 %v1521_v37, %v1529_v21  ;;  %3435 = vmatprep.subr.bf16.mxu0 %v5175_v13  ;;  %3599 = vmatprep.subr.bf16.mxu1 %v5178_v35  ;;  %v5202_v13 = vld [vmem:[#allocation6 + $0x34c] ss:$16 sps:$4 sm:$0xff]  }
 0x36a   : > { %v1586_v46 = vmax.f32 %v1522_v39, %v1530_v40  ;;  %v1486_v47 = vpop.f32.mrb[52].mxu1  ;;  %v1691_v48 = vmax.f32 %v1689_v36, %v1690_v20  ;;  %v5197_v20 = vld [vmem:[#allocation6 + $0x340] ss:$16 sps:$4 sm:$0xff]   ;;  %v5200_v39 = vld [vmem:[#allocation6 + $0x348] ss:$16 sps:$4 sm:$0xff]   ;;  %v1682_v40 = vrot.slane %v6174_v24, 4 }
 0x36b   : > { %v1487_v49 = vadd.f32 %v1486_v47, %v6169_v9  ;;  %v1488_v50 = vpop.f32.mrb[53].mxu1 }
 0x36c   : > { %v1489_v51 = vadd.f32 %v1488_v50, %v6172_v5  ;;  %3436 = vmatpush1.bf16.msra.mxu0 %v5173_v38  ;;  %3600 = vmatpush1.bf16.msra.mxu1 %v5176_v41  ;;  %v1490_v52 = vpop.f32.mrb[54].mxu1  ;;  %v1692_v55 = vrot.slane %v1691_v48, 1 }
 0x36d   : > { %v1537_v56 = vmax.f32 %v1487_v49, 0.0  ;;  %v1491_v57 = vadd.f32 %v1490_v52, %v6169_v9  ;;  %v1492_v58 = vpop.f32.mrb[55].mxu1  ;;  %3437 = vmatprep.subr.bf16.mxu0 %v5181_v44  ;;  %3601 = vmatprep.subr.bf16.mxu1 %v5184_v45  ;;  %v5208_v44 = vld [vmem:[#allocation6 + $0x36c] ss:$16 sps:$4 sm:$0xff]   ;;  %v1700_v45 = vrot.slane %v6148_v32, 4 }
 0x36e   : > { %v1538_v63 = vmax.f32 %v1489_v51, 0.0  ;;  %v1493_v0 = vadd.f32 %v1492_v58, %v6172_v5  ;;  %v1693_v1 = vmax.f32 %v1691_v48, %v1692_v55  ;;  %v5203_v52 = vld [vmem:[#allocation6 + $0x360] ss:$16 sps:$4 sm:$0xff]   ;;  %v5211_v58 = vld [vmem:[#allocation6 + $0x384] ss:$16 sps:$4 sm:$0xff]  }
 0x36f   : > { %v1593_v2 = vmax.f32 %v1585_v43, %v1537_v56  ;;  %v1545_v3 = vmax.f32 %v1491_v57, 0.0  ;;  %v5205_v43 = vld [vmem:[#allocation6 + $0x364] ss:$16 sps:$4 sm:$0xff]  }
 0x370   : > { %v1594_v4 = vmax.f32 %v1586_v46, %v1538_v63  ;;  %v1546_v7 = vmax.f32 %v1493_v0, 0.0  ;;  %3438 = vmatpush1.bf16.msra.mxu0 %v5179_v53  ;;  %3602 = vmatpush1.bf16.msra.mxu1 %v5182_v54  ;;  %v2076_v12 = vpack.c.bf16 %v1693_v1, %v1693_v1  ;;  %v5206_v53 = vld [vmem:[#allocation6 + $0x368] ss:$16 sps:$4 sm:$0xff]   ;;  %v1683_v54 = vmax.f32 %v6174_v24, %v1682_v40  ;;  %v5209_v24 = vld [vmem:[#allocation6 + $0x380] ss:$16 sps:$4 sm:$0xff]  }
 0x371   : > { %v1601_v10 = vmax.f32 %v1593_v2, %v1545_v3  ;;  %3439 = vmatprep.subr.bf16.mxu0 %v5187_v59  ;;  %3603 = vmatprep.subr.bf16.mxu1 %v5190_v62  ;;  %v5214_v59 = vld [vmem:[#allocation6 + $0x38c] ss:$16 sps:$4 sm:$0xff]   ;;  %v1701_v62 = vmax.f32 %v6148_v32, %v1700_v45  ;;  %v5239_v40 = vld [vmem:[#allocation6 + $0x420] ss:$16 sps:$4 sm:$0xff]  }
 0x372   : > { %v1602_v6 = vmax.f32 %v1594_v4, %v1546_v7  ;;  %v1496_v61 = vpop.f32.mrb[56].mxu1  ;;  %3455 = vmatprep.mubr.bf16.mxu0 %v2076_v12  ;;  %3619 = vmatprep.mubr.bf16.mxu1 %v2076_v12  ;;  %v5212_v7 = vld [vmem:[#allocation6 + $0x388] ss:$16 sps:$4 sm:$0xff]   ;;  %v5217_v12 = vld [vmem:[#allocation6 + $0x3a4] ss:$16 sps:$4 sm:$0xff]  }
 0x373   : > { %v1497_v26 = vadd.f32 %v1496_v61, %v6169_v9  ;;  %v1498_v27 = vpop.f32.mrb[57].mxu1  ;;  %v5226_v61 = vld [vmem:[#allocation6 + $0x3cc] ss:$16 sps:$4 sm:$0xff]   ;;  %v5245_v45 = vld [vmem:[#allocation6 + $0x440] ss:$16 sps:$4 sm:$0xff]  }
 0x374   : > { %v1499_v28 = vadd.f32 %v1498_v27, %v6172_v5  ;;  %3440 = vmatpush1.bf16.msra.mxu0 %v5185_v8  ;;  %3604 = vmatpush1.bf16.msra.mxu1 %v5188_v16  ;;  %v1500_v29 = vpop.f32.mrb[58].mxu1  ;;  %v1684_v8 = vrot.slane %v1683_v54, 2  ;;  %v5220_v16 = vld [vmem:[#allocation6 + $0x3ac] ss:$16 sps:$4 sm:$0xff]   ;;  %v5221_v27 = vld [vmem:[#allocation6 + $0x3c0] ss:$16 sps:$4 sm:$0xff]  }
 0x375   : > { %v1553_v31 = vmax.f32 %v1497_v26, 0.0  ;;  %v1501_v17 = vadd.f32 %v1500_v29, %v6169_v9  ;;  %v1502_v22 = vpop.f32.mrb[59].mxu1  ;;  %3441 = vmatprep.subr.bf16.mxu0 %v5193_v23  ;;  %3605 = vmatprep.subr.bf16.mxu1 %v5196_v25  ;;  %v5218_v23 = vld [vmem:[#allocation6 + $0x3a8] ss:$16 sps:$4 sm:$0xff]  }
 0x376   : > { %v1554_v35 = vmax.f32 %v1499_v28, 0.0  ;;  %v1503_v36 = vadd.f32 %v1502_v22, %v6172_v5  ;;  %v1685_v25 = vmax.f32 %v1683_v54, %v1684_v8  ;;  %v5224_v28 = vld [vmem:[#allocation6 + $0x3c8] ss:$16 sps:$4 sm:$0xff]   ;;  %v5281_v8 = vld [vmem:[#allocation6 + $0x500] ss:$16 sps:$4 sm:$0xff]  }
 0x377   : > { %v1609_v19 = vmax.f32 %v1601_v10, %v1553_v31  ;;  %v1561_v37 = vmax.f32 %v1501_v17, 0.0  ;;  %v1702_v10 = vrot.slane %v1701_v62, 2  ;;  %v5227_v17 = vld [vmem:[#allocation6 + $0x3e0] ss:$16 sps:$4 sm:$0xff]   ;;  %v5230_v22 = vld [vmem:[#allocation6 + $0x3e8] ss:$16 sps:$4 sm:$0xff]  }
 0x378   : > { %v1610_v21 = vmax.f32 %v1602_v6, %v1554_v35  ;;  %v1562_v38 = vmax.f32 %v1503_v36, 0.0  ;;  %3442 = vmatpush1.bf16.msra.mxu0 %v5191_v60  ;;  %3606 = vmatpush1.bf16.msra.mxu1 %v5194_v30  ;;  %v5223_v6 = vld [vmem:[#allocation6 + $0x3c4] ss:$16 sps:$4 sm:$0xff]   ;;  %v1686_v29 = vrot.slane %v1685_v25, 1  ;;  %v5232_v30 = vld [vmem:[#allocation6 + $0x3ec] ss:$16 sps:$4 sm:$0xff]  }
 0x379   : > { %v1617_v41 = vmax.f32 %v1609_v19, %v1561_v37  ;;  %3443 = vmatprep.subr.bf16.mxu0 %v5199_v42  ;;  %3607 = vmatprep.subr.bf16.mxu1 %v5202_v13  ;;  %v1703_v26 = vmax.f32 %v1701_v62, %v1702_v10  ;;  %v5229_v60 = vld [vmem:[#allocation6 + $0x3e4] ss:$16 sps:$4 sm:$0xff]   ;;  %v5238_v35 = vld [vmem:[#allocation6 + $0x40c] ss:$16 sps:$4 sm:$0xff]   ;;  %v5233_v19 = vld [vmem:[#allocation6 + $0x400] ss:$16 sps:$4 sm:$0xff]  }
 0x37a   : > { %v1618_v46 = vmax.f32 %v1610_v21, %v1562_v38  ;;  %v1506_v47 = vpop.f32.mrb[60].mxu1  ;;  %v1687_v42 = vmax.f32 %v1685_v25, %v1686_v29  ;;  %v5235_v13 = vld [vmem:[#allocation6 + $0x404] ss:$16 sps:$4 sm:$0xff]   ;;  %v5236_v21 = vld [vmem:[#allocation6 + $0x408] ss:$16 sps:$4 sm:$0xff]  }
 0x37b   : > { %v1507_v48 = vadd.f32 %v1506_v47, %v6169_v9  ;;  %v1508_v49 = vpop.f32.mrb[61].mxu1  ;;  %v1704_v31 = vrot.slane %v1703_v26, 1  ;;  %v5253_v47 = vld [vmem:[#allocation6 + $0x464] ss:$16 sps:$4 sm:$0xff]   ;;  %v5260_v54 = vld [vmem:[#allocation6 + $0x488] ss:$16 sps:$4 sm:$0xff]  }
 0x37c   : > { %v1509_v50 = vadd.f32 %v1508_v49, %v6172_v5  ;;  %3444 = vmatpush1.bf16.msra.mxu0 %v5197_v20  ;;  %3608 = vmatpush1.bf16.msra.mxu1 %v5200_v39  ;;  %v1510_v51 = vpop.f32.mrb[62].mxu1  ;;  %v2075_v37 = vpack.c.bf16 %v1687_v42, %v1687_v42  ;;  %v5241_v20 = vld [vmem:[#allocation6 + $0x424] ss:$16 sps:$4 sm:$0xff]   ;;  %v5244_v39 = vld [vmem:[#allocation6 + $0x42c] ss:$16 sps:$4 sm:$0xff]  }
 0x37d   : > { %v1569_v55 = vmax.f32 %v1507_v48, 0.0  ;;  %v1511_v56 = vadd.f32 %v1510_v51, %v6169_v9  ;;  %v1512_v57 = vpop.f32.mrb[63].mxu1  ;;  %3445 = vmatprep.subr.bf16.mxu0 %v5205_v43  ;;  %3609 = vmatprep.subr.bf16.mxu1 %v5208_v44  ;;  %v1705_v36 = vmax.f32 %v1703_v26, %v1704_v31  ;;  %v5247_v43 = vld [vmem:[#allocation6 + $0x444] ss:$16 sps:$4 sm:$0xff]   ;;  %v5250_v44 = vld [vmem:[#allocation6 + $0x44c] ss:$16 sps:$4 sm:$0xff]  }
 0x37e   : > { %v1570_v63 = vmax.f32 %v1509_v50, 0.0  ;;  %v1513_v0 = vadd.f32 %v1512_v57, %v6172_v5  ;;  %v5215_v5 = vld [vmem:[#allocation6 + $0x3a0] ss:$16 sps:$4 sm:$0xff]   ;;  %v5256_v48 = vld [vmem:[#allocation6 + $0x46c] ss:$16 sps:$4 sm:$0xff]   ;;  %v1694_v26 = vrot.slane %v6146_v11, 4 }
 0x37f   : > { %v1625_v1 = vmax.f32 %v1617_v41, %v1569_v55  ;;  %v1577_v2 = vmax.f32 %v1511_v56, 0.0  ;;  %v2078_v38 = vpack.c.bf16 %v1705_v36, %v1705_v36  ;;  %v5242_v41 = vld [vmem:[#allocation6 + $0x428] ss:$16 sps:$4 sm:$0xff]   ;;  %v5251_v49 = vld [vmem:[#allocation6 + $0x460] ss:$16 sps:$4 sm:$0xff]  }
 0x380   : > { %v1626_v3 = vmax.f32 %v1618_v46, %v1570_v63  ;;  %v1578_v4 = vmax.f32 %v1513_v0, 0.0  ;;  %3446 = vmatpush1.bf16.msra.mxu0 %v5203_v52  ;;  %3610 = vmatpush1.bf16.msra.mxu1 %v5206_v53  ;;  %v5248_v46 = vld [vmem:[#allocation6 + $0x448] ss:$16 sps:$4 sm:$0xff]   ;;  %v5259_v51 = vld [vmem:[#allocation6 + $0x484] ss:$16 sps:$4 sm:$0xff]   ;;  %v1695_v31 = vmax.f32 %v6146_v11, %v1694_v26 }
 0x381   : > { %v6196_v9 = vmax.f32 %v1625_v1, %v1577_v2  ;;  %3447 = vmatprep.subr.bf16.mxu0 %v5211_v58  ;;  %3611 = vmatprep.subr.bf16.mxu1 %v5214_v59  ;;  %v5254_v50 = vld [vmem:[#allocation6 + $0x468] ss:$16 sps:$4 sm:$0xff]   ;;  %v5262_v52 = vld [vmem:[#allocation6 + $0x48c] ss:$16 sps:$4 sm:$0xff]   ;;  %v5257_v53 = vld [vmem:[#allocation6 + $0x480] ss:$16 sps:$4 sm:$0xff]  }
 0x382   : > { %v6198_v32 = vmax.f32 %v1626_v3, %v1578_v4  ;;  %v5265_v55 = vld [vmem:[#allocation6 + $0x4a4] ss:$16 sps:$4 sm:$0xff]   ;;  %v5268_v56 = vld [vmem:[#allocation6 + $0x4ac] ss:$16 sps:$4 sm:$0xff]   ;;  %v5263_v57 = vld [vmem:[#allocation6 + $0x4a0] ss:$16 sps:$4 sm:$0xff]  }
 0x383   : > { %v5266_v58 = vld [vmem:[#allocation6 + $0x4a8] ss:$16 sps:$4 sm:$0xff]   ;;  %v5271_v59 = vld [vmem:[#allocation6 + $0x4c4] ss:$16 sps:$4 sm:$0xff]   ;;  %v5274_v62 = vld [vmem:[#allocation6 + $0x4cc] ss:$16 sps:$4 sm:$0xff]  }
 0x384   : > { %3448 = vmatpush1.bf16.msra.mxu0 %v5209_v24  ;;  %3612 = vmatpush1.bf16.msra.mxu1 %v5212_v7  ;;  %v5269_v63 = vld [vmem:[#allocation6 + $0x4c0] ss:$16 sps:$4 sm:$0xff]   ;;  %v5272_v0 = vld [vmem:[#allocation6 + $0x4c8] ss:$16 sps:$4 sm:$0xff]   ;;  %v5277_v1 = vld [vmem:[#allocation6 + $0x4e4] ss:$16 sps:$4 sm:$0xff]  }
 0x385   : > { %3449 = vmatprep.subr.bf16.mxu0 %v5217_v12  ;;  %3613 = vmatprep.subr.bf16.mxu1 %v5220_v16  ;;  %v5280_v2 = vld [vmem:[#allocation6 + $0x4ec] ss:$16 sps:$4 sm:$0xff]   ;;  %v5275_v3 = vld [vmem:[#allocation6 + $0x4e0] ss:$16 sps:$4 sm:$0xff]   ;;  %v5278_v4 = vld [vmem:[#allocation6 + $0x4e8] ss:$16 sps:$4 sm:$0xff]  }
 0x386   : > { %v5283_v24 = vld [vmem:[#allocation6 + $0x504] ss:$16 sps:$4 sm:$0xff]   ;;  %v5286_v7 = vld [vmem:[#allocation6 + $0x50c] ss:$16 sps:$4 sm:$0xff]   ;;  %v5284_v12 = vld [vmem:[#allocation6 + $0x508] ss:$16 sps:$4 sm:$0xff]  }
 0x387   : > { %v5289_v16 = vld [vmem:[#allocation6 + $0x524] ss:$16 sps:$4 sm:$0xff]   ;;  %v5292_v10 = vld [vmem:[#allocation6 + $0x52c] ss:$16 sps:$4 sm:$0xff]   ;;  %v1696_v36 = vrot.slane %v1695_v31, 2 }
 0x388   : > { %3450 = vmatpush1.bf16.msra.mxu0 %v5215_v5  ;;  %3614 = vmatpush1.bf16.msra.mxu1 %v5218_v23  ;;  %v5287_v5 = vld [vmem:[#allocation6 + $0x520] ss:$16 sps:$4 sm:$0xff]   ;;  %v5290_v23 = vld [vmem:[#allocation6 + $0x528] ss:$16 sps:$4 sm:$0xff]   ;;  %v5295_v25 = vld [vmem:[#allocation6 + $0x544] ss:$16 sps:$4 sm:$0xff]  }
 0x389   : > { %3451 = vmatprep.subr.bf16.mxu0 %v5223_v6  ;;  %3615 = vmatprep.subr.bf16.mxu1 %v5226_v61  ;;  %v5298_v6 = vld [vmem:[#allocation6 + $0x54c] ss:$16 sps:$4 sm:$0xff]   ;;  %v5293_v61 = vld [vmem:[#allocation6 + $0x540] ss:$16 sps:$4 sm:$0xff]   ;;  %v5362_v26 = vld [vmem:[#allocation6 + $0x6a8] ss:$16 sps:$4 sm:$0xff]  }
 0x38a   : > { %v5304_v29 = vld [vmem:[#allocation6 + $0x56c] ss:$16 sps:$4 sm:$0xff]   ;;  %v5311_v11 = vld [vmem:[#allocation6 + $0x5a0] ss:$16 sps:$4 sm:$0xff]  }
 0x38b   : > { %v5310_v42 = vld [vmem:[#allocation6 + $0x58c] ss:$16 sps:$4 sm:$0xff]  }
 0x38c   : > { %3452 = vmatpush1.bf16.msra.mxu0 %v5221_v27  ;;  %3616 = vmatpush1.bf16.msra.mxu1 %v5224_v28  ;;  %v5296_v27 = vld [vmem:[#allocation6 + $0x548] ss:$16 sps:$4 sm:$0xff]   ;;  %v5301_v28 = vld [vmem:[#allocation6 + $0x564] ss:$16 sps:$4 sm:$0xff]  }
 0x38d   : > { %3453 = vmatprep.subr.bf16.mxu0 %v5229_v60  ;;  %3617 = vmatprep.subr.bf16.mxu1 %v5232_v30  ;;  %v1712_v60 = vrot.slane %v6198_v32, 4  ;;  %v5299_v30 = vld [vmem:[#allocation6 + $0x560] ss:$16 sps:$4 sm:$0xff]  }
 0x390   : > { %3454 = vmatpush1.bf16.msra.mxu0 %v5227_v17  ;;  %3618 = vmatpush1.bf16.msra.mxu1 %v5230_v22  ;;  %v5302_v17 = vld [vmem:[#allocation6 + $0x568] ss:$16 sps:$4 sm:$0xff]   ;;  %v5307_v22 = vld [vmem:[#allocation6 + $0x584] ss:$16 sps:$4 sm:$0xff]  }
 0x391   : > { %3464 = vmatprep.subr.bf16.mxu0 %v5235_v13  ;;  %3628 = vmatprep.subr.bf16.mxu1 %v5238_v35  ;;  %v1713_v13 = vmax.f32 %v6198_v32, %v1712_v60  ;;  %v5305_v35 = vld [vmem:[#allocation6 + $0x580] ss:$16 sps:$4 sm:$0xff]   ;;  %v5368_v60 = vld [vmem:[#allocation6 + $0x6c8] ss:$16 sps:$4 sm:$0xff]  }
 0x393   : > { %3456 = vmatmul.mubr.bf16.vlgmr.msra.gmra.mrb[16].mxu0 %v2075_v37  ;;  %3620 = vmatmul.mubr.bf16.vlgmr.msra.gmra.mrb[64].mxu1 %v2075_v37  ;;  %v5313_v37 = vld [vmem:[#allocation6 + $0x5a4] ss:$16 sps:$4 sm:$0xff]  }
 0x394   : > { %3465 = vmatpush1.bf16.msra.mxu0 %v5233_v19  ;;  %3496 = vmatprep.mubr.bf16.mxu0 %v2078_v38  ;;  %v5308_v19 = vld [vmem:[#allocation6 + $0x588] ss:$16 sps:$4 sm:$0xff]  }
 0x395   : > { %3629 = vmatpush1.bf16.msra.mxu1 %v5236_v21  ;;  %3660 = vmatprep.mubr.bf16.mxu1 %v2078_v38  ;;  %v5316_v21 = vld [vmem:[#allocation6 + $0x5ac] ss:$16 sps:$4 sm:$0xff]   ;;  %v1714_v38 = vrot.slane %v1713_v13, 2 }
 0x396   : > { %3466 = vmatprep.subr.bf16.mxu0 %v5241_v20  ;;  %3630 = vmatprep.subr.bf16.mxu1 %v5244_v39  ;;  %v1697_v20 = vmax.f32 %v1695_v31, %v1696_v36  ;;  %v5314_v39 = vld [vmem:[#allocation6 + $0x5a8] ss:$16 sps:$4 sm:$0xff]   ;;  %v5376_v31 = vld [vmem:[#allocation6 + $0x6ec] ss:$16 sps:$4 sm:$0xff]  }
 0x397   : > { %v1715_v32 = vmax.f32 %v1713_v13, %v1714_v38  ;;  %v5382_v13 = vld [vmem:[#allocation6 + $0x70c] ss:$16 sps:$4 sm:$0xff]   ;;  %v5380_v36 = vld [vmem:[#allocation6 + $0x708] ss:$16 sps:$4 sm:$0xff]  }
 0x398   : > { %3467 = vmatpush1.bf16.msra.mxu0 %v5239_v40  ;;  %v5319_v40 = vld [vmem:[#allocation6 + $0x5c4] ss:$16 sps:$4 sm:$0xff]   ;;  %v5386_v38 = vld [vmem:[#allocation6 + $0x728] ss:$16 sps:$4 sm:$0xff]  }
 0x399   : > { %3631 = vmatpush1.bf16.msra.mxu1 %v5242_v41  ;;  %3468 = vmatprep.subr.bf16.mxu0 %v5247_v43  ;;  %v5322_v41 = vld [vmem:[#allocation6 + $0x5cc] ss:$16 sps:$4 sm:$0xff]   ;;  %v5317_v43 = vld [vmem:[#allocation6 + $0x5c0] ss:$16 sps:$4 sm:$0xff]  }
 0x39a   : > { %3632 = vmatprep.subr.bf16.mxu1 %v5250_v44  ;;  %v1698_v44 = vrot.slane %v1697_v20, 1 }
 0x39c   : > { %3469 = vmatpush1.bf16.msra.mxu0 %v5245_v45  ;;  %v5320_v45 = vld [vmem:[#allocation6 + $0x5c8] ss:$16 sps:$4 sm:$0xff]  }
 0x39d   : > { %3633 = vmatpush1.bf16.msra.mxu1 %v5248_v46  ;;  %3470 = vmatprep.subr.bf16.mxu0 %v5253_v47  ;;  %v5325_v46 = vld [vmem:[#allocation6 + $0x5e4] ss:$16 sps:$4 sm:$0xff]   ;;  %v5328_v47 = vld [vmem:[#allocation6 + $0x5ec] ss:$16 sps:$4 sm:$0xff]  }
 0x39e   : > { %3634 = vmatprep.subr.bf16.mxu1 %v5256_v48  ;;  %v1716_v48 = vrot.slane %v1715_v32, 1 }
 0x3a0   : > { %3471 = vmatpush1.bf16.msra.mxu0 %v5251_v49  ;;  %v5323_v49 = vld [vmem:[#allocation6 + $0x5e0] ss:$16 sps:$4 sm:$0xff]  }
 0x3a1   : > { %3635 = vmatpush1.bf16.msra.mxu1 %v5254_v50  ;;  %3472 = vmatprep.subr.bf16.mxu0 %v5259_v51  ;;  %v5326_v50 = vld [vmem:[#allocation6 + $0x5e8] ss:$16 sps:$4 sm:$0xff]   ;;  %v1699_v51 = vmax.f32 %v1697_v20, %v1698_v44  ;;  %v5394_v20 = vld [vmem:[#allocation6 + $0x74c] ss:$16 sps:$4 sm:$0xff]   ;;  %v5395_v44 = vld [vmem:[#allocation6 + $0x760] ss:$16 sps:$4 sm:$0xff]  }
 0x3a2   : > { %3636 = vmatprep.subr.bf16.mxu1 %v5262_v52  ;;  %v5331_v52 = vld [vmem:[#allocation6 + $0x604] ss:$16 sps:$4 sm:$0xff]  }
 0x3a4   : > { %3473 = vmatpush1.bf16.msra.mxu0 %v5257_v53  ;;  %v5334_v53 = vld [vmem:[#allocation6 + $0x60c] ss:$16 sps:$4 sm:$0xff]  }
 0x3a5   : > { %3637 = vmatpush1.bf16.msra.mxu1 %v5260_v54  ;;  %3474 = vmatprep.subr.bf16.mxu0 %v5265_v55  ;;  %v1717_v54 = vmax.f32 %v1715_v32, %v1716_v48  ;;  %v5329_v55 = vld [vmem:[#allocation6 + $0x600] ss:$16 sps:$4 sm:$0xff]   ;;  %v5397_v32 = vld [vmem:[#allocation6 + $0x764] ss:$16 sps:$4 sm:$0xff]   ;;  %v5406_v48 = vld [vmem:[#allocation6 + $0x78c] ss:$16 sps:$4 sm:$0xff]  }
 0x3a6   : > { %3638 = vmatprep.subr.bf16.mxu1 %v5268_v56  ;;  %v2077_v56 = vpack.c.bf16 %v1699_v51, %v1699_v51  ;;  %v5404_v51 = vld [vmem:[#allocation6 + $0x788] ss:$16 sps:$4 sm:$0xff]  }
 0x3a8   : > { %3475 = vmatpush1.bf16.msra.mxu0 %v5263_v57  ;;  %v5332_v57 = vld [vmem:[#allocation6 + $0x608] ss:$16 sps:$4 sm:$0xff]  }
 0x3a9   : > { %3639 = vmatpush1.bf16.msra.mxu1 %v5266_v58  ;;  %3476 = vmatprep.subr.bf16.mxu0 %v5271_v59  ;;  %v5337_v58 = vld [vmem:[#allocation6 + $0x624] ss:$16 sps:$4 sm:$0xff]   ;;  %v2080_v59 = vpack.c.bf16 %v1717_v54, %v1717_v54  ;;  %v5407_v54 = vld [vmem:[#allocation6 + $0x7a0] ss:$16 sps:$4 sm:$0xff]  }
 0x3aa   : > { %3640 = vmatprep.subr.bf16.mxu1 %v5274_v62  ;;  %v5340_v62 = vld [vmem:[#allocation6 + $0x62c] ss:$16 sps:$4 sm:$0xff]  }
 0x3ac   : > { %3477 = vmatpush1.bf16.msra.mxu0 %v5269_v63  ;;  %v5335_v63 = vld [vmem:[#allocation6 + $0x620] ss:$16 sps:$4 sm:$0xff]  }
 0x3ad   : > { %3641 = vmatpush1.bf16.msra.mxu1 %v5272_v0  ;;  %3478 = vmatprep.subr.bf16.mxu0 %v5277_v1  ;;  %v5338_v0 = vld [vmem:[#allocation6 + $0x628] ss:$16 sps:$4 sm:$0xff]   ;;  %v5343_v1 = vld [vmem:[#allocation6 + $0x644] ss:$16 sps:$4 sm:$0xff]  }
 0x3ae   : > { %3642 = vmatprep.subr.bf16.mxu1 %v5280_v2  ;;  %v5346_v2 = vld [vmem:[#allocation6 + $0x64c] ss:$16 sps:$4 sm:$0xff]  }
 0x3b0   : > { %3479 = vmatpush1.bf16.msra.mxu0 %v5275_v3  ;;  %v5341_v3 = vld [vmem:[#allocation6 + $0x640] ss:$16 sps:$4 sm:$0xff]  }
 0x3b1   : > { %3643 = vmatpush1.bf16.msra.mxu1 %v5278_v4  ;;  %3480 = vmatprep.subr.bf16.mxu0 %v5283_v24  ;;  %v5344_v4 = vld [vmem:[#allocation6 + $0x648] ss:$16 sps:$4 sm:$0xff]   ;;  %v5349_v24 = vld [vmem:[#allocation6 + $0x664] ss:$16 sps:$4 sm:$0xff]  }
 0x3b2   : > { %3644 = vmatprep.subr.bf16.mxu1 %v5286_v7  ;;  %v5352_v7 = vld [vmem:[#allocation6 + $0x66c] ss:$16 sps:$4 sm:$0xff]  }
 0x3b4   : > { %3481 = vmatpush1.bf16.msra.mxu0 %v5281_v8  ;;  %v5347_v8 = vld [vmem:[#allocation6 + $0x660] ss:$16 sps:$4 sm:$0xff]  }
 0x3b5   : > { %3645 = vmatpush1.bf16.msra.mxu1 %v5284_v12  ;;  %3482 = vmatprep.subr.bf16.mxu0 %v5289_v16  ;;  %v5350_v12 = vld [vmem:[#allocation6 + $0x668] ss:$16 sps:$4 sm:$0xff]   ;;  %v5355_v16 = vld [vmem:[#allocation6 + $0x684] ss:$16 sps:$4 sm:$0xff]  }
 0x3b6   : > { %3646 = vmatprep.subr.bf16.mxu1 %v5292_v10  ;;  %v5358_v10 = vld [vmem:[#allocation6 + $0x68c] ss:$16 sps:$4 sm:$0xff]  }
 0x3b8   : > { %3483 = vmatpush1.bf16.msra.mxu0 %v5287_v5  ;;  %v5353_v5 = vld [vmem:[#allocation6 + $0x680] ss:$16 sps:$4 sm:$0xff]  }
 0x3b9   : > { %3647 = vmatpush1.bf16.msra.mxu1 %v5290_v23  ;;  %3484 = vmatprep.subr.bf16.mxu0 %v5295_v25  ;;  %v5356_v23 = vld [vmem:[#allocation6 + $0x688] ss:$16 sps:$4 sm:$0xff]   ;;  %v5361_v25 = vld [vmem:[#allocation6 + $0x6a4] ss:$16 sps:$4 sm:$0xff]  }
 0x3ba   : > { %3648 = vmatprep.subr.bf16.mxu1 %v5298_v6  ;;  %v5364_v6 = vld [vmem:[#allocation6 + $0x6ac] ss:$16 sps:$4 sm:$0xff]  }
 0x3bc   : > { %3485 = vmatpush1.bf16.msra.mxu0 %v5293_v61  ;;  %v5359_v61 = vld [vmem:[#allocation6 + $0x6a0] ss:$16 sps:$4 sm:$0xff]  }
 0x3bd   : > { %3649 = vmatpush1.bf16.msra.mxu1 %v5296_v27  ;;  %3486 = vmatprep.subr.bf16.mxu0 %v5301_v28  ;;  %v5367_v27 = vld [vmem:[#allocation6 + $0x6c4] ss:$16 sps:$4 sm:$0xff]   ;;  %v5370_v28 = vld [vmem:[#allocation6 + $0x6cc] ss:$16 sps:$4 sm:$0xff]  }
 0x3be   : > { %3650 = vmatprep.subr.bf16.mxu1 %v5304_v29  ;;  %v5365_v29 = vld [vmem:[#allocation6 + $0x6c0] ss:$16 sps:$4 sm:$0xff]  }
 0x3c0   : > { %3487 = vmatpush1.bf16.msra.mxu0 %v5299_v30  ;;  %v5373_v30 = vld [vmem:[#allocation6 + $0x6e4] ss:$16 sps:$4 sm:$0xff]  }
 0x3c1   : > { %3651 = vmatpush1.bf16.msra.mxu1 %v5302_v17  ;;  %3488 = vmatprep.subr.bf16.mxu0 %v5307_v22  ;;  %v5371_v17 = vld [vmem:[#allocation6 + $0x6e0] ss:$16 sps:$4 sm:$0xff]   ;;  %v5374_v22 = vld [vmem:[#allocation6 + $0x6e8] ss:$16 sps:$4 sm:$0xff]  }
 0x3c2   : > { %3652 = vmatprep.subr.bf16.mxu1 %v5310_v42  ;;  %v5379_v42 = vld [vmem:[#allocation6 + $0x704] ss:$16 sps:$4 sm:$0xff]  }
 0x3c4   : > { %3489 = vmatpush1.bf16.msra.mxu0 %v5305_v35  ;;  %v5377_v35 = vld [vmem:[#allocation6 + $0x700] ss:$16 sps:$4 sm:$0xff]  }
 0x3c5   : > { %3653 = vmatpush1.bf16.msra.mxu1 %v5308_v19  ;;  %3490 = vmatprep.subr.bf16.mxu0 %v5313_v37  ;;  %v5385_v19 = vld [vmem:[#allocation6 + $0x724] ss:$16 sps:$4 sm:$0xff]   ;;  %v5388_v37 = vld [vmem:[#allocation6 + $0x72c] ss:$16 sps:$4 sm:$0xff]  }
 0x3c6   : > { %3654 = vmatprep.subr.bf16.mxu1 %v5316_v21  ;;  %v5383_v21 = vld [vmem:[#allocation6 + $0x720] ss:$16 sps:$4 sm:$0xff]  }
 0x3c8   : > { %3491 = vmatpush1.bf16.msra.mxu0 %v5311_v11  ;;  %v5391_v11 = vld [vmem:[#allocation6 + $0x744] ss:$16 sps:$4 sm:$0xff]  }
 0x3c9   : > { %3655 = vmatpush1.bf16.msra.mxu1 %v5314_v39  ;;  %3492 = vmatprep.subr.bf16.mxu0 %v5319_v40  ;;  %v5389_v39 = vld [vmem:[#allocation6 + $0x740] ss:$16 sps:$4 sm:$0xff]   ;;  %v1706_v40 = vrot.slane %v6196_v9, 4 }
 0x3ca   : > { %3656 = vmatprep.subr.bf16.mxu1 %v5322_v41  ;;  %v5392_v41 = vld [vmem:[#allocation6 + $0x748] ss:$16 sps:$4 sm:$0xff]  }
 0x3cc   : > { %3493 = vmatpush1.bf16.msra.mxu0 %v5317_v43  ;;  %v5400_v43 = vld [vmem:[#allocation6 + $0x76c] ss:$16 sps:$4 sm:$0xff]  }
 0x3cd   : > { %3657 = vmatpush1.bf16.msra.mxu1 %v5320_v45  ;;  %3494 = vmatprep.subr.bf16.mxu0 %v5325_v46  ;;  %v1707_v45 = vmax.f32 %v6196_v9, %v1706_v40  ;;  %v5398_v46 = vld [vmem:[#allocation6 + $0x768] ss:$16 sps:$4 sm:$0xff]  }
 0x3ce   : > { %3658 = vmatprep.subr.bf16.mxu1 %v5328_v47  ;;  %v5403_v47 = vld [vmem:[#allocation6 + $0x784] ss:$16 sps:$4 sm:$0xff]   ;;  %v5410_v9 = vld [vmem:[#allocation6 + $0x7a8] ss:$16 sps:$4 sm:$0xff]  }
 0x3cf   : > { %v5470_v40 = vld [vmem:[#allocation8 + $0xf0] ss:$8 sps:$4 sm:$0xff]  }
 0x3d0   : > { %3495 = vmatpush1.bf16.msra.mxu0 %v5323_v49  ;;  %v5401_v49 = vld [vmem:[#allocation6 + $0x780] ss:$16 sps:$4 sm:$0xff]  }
 0x3d1   : > { %3659 = vmatpush1.bf16.msra.mxu1 %v5326_v50  ;;  %3505 = vmatprep.subr.bf16.mxu0 %v5331_v52  ;;  %v1708_v50 = vrot.slane %v1707_v45, 2  ;;  %v5409_v52 = vld [vmem:[#allocation6 + $0x7a4] ss:$16 sps:$4 sm:$0xff]  }
 0x3d2   : > { %3669 = vmatprep.subr.bf16.mxu1 %v5334_v53  ;;  %v5412_v53 = vld [vmem:[#allocation6 + $0x7ac] ss:$16 sps:$4 sm:$0xff]  }
 0x3d3   : > { %3497 = vmatmul.mubr.bf16.vlgmr.msra.gmra.mrb[16].mxu0 %v2077_v56 }
 0x3d4   : > { %3661 = vmatmul.mubr.bf16.vlgmr.msra.gmra.mrb[64].mxu1 %v2077_v56  ;;  %3506 = vmatpush1.bf16.msra.mxu0 %v5329_v55  ;;  %v1709_v55 = vmax.f32 %v1707_v45, %v1708_v50  ;;  %v5415_v56 = vld [vmem:[#allocation6 + $0x7c4] ss:$16 sps:$4 sm:$0xff]   ;;  %v5524_v45 = vld [vmem:[#allocation9 + $0x8] sm:$0xff]  }
 0x3d5   : > { %3537 = vmatprep.mubr.bf16.mxu0 %v2080_v59  ;;  %3670 = vmatpush1.bf16.msra.mxu1 %v5332_v57  ;;  %v5418_v57 = vld [vmem:[#allocation6 + $0x7cc] ss:$16 sps:$4 sm:$0xff]   ;;  %v5529_v50 = vld [vmem:[#allocation9 + $0x60] sm:$0xff]  }
 0x3d6   : > { %3701 = vmatprep.mubr.bf16.mxu1 %v2080_v59  ;;  %3507 = vmatprep.subr.bf16.mxu0 %v5337_v58  ;;  %v5413_v58 = vld [vmem:[#allocation6 + $0x7c0] ss:$16 sps:$4 sm:$0xff]   ;;  %v1710_v59 = vrot.slane %v1709_v55, 1 }
 0x3d7   : > { %3671 = vmatprep.subr.bf16.mxu1 %v5340_v62  ;;  %v5416_v62 = vld [vmem:[#allocation6 + $0x7c8] ss:$16 sps:$4 sm:$0xff]  }
 0x3d8   : > { %3508 = vmatpush1.bf16.msra.mxu0 %v5335_v63  ;;  %v5421_v63 = vld [vmem:[#allocation6 + $0x7e4] ss:$16 sps:$4 sm:$0xff]  }
 0x3d9   : > { %3672 = vmatpush1.bf16.msra.mxu1 %v5338_v0  ;;  %3509 = vmatprep.subr.bf16.mxu0 %v5343_v1  ;;  %v5424_v0 = vld [vmem:[#allocation6 + $0x7ec] ss:$16 sps:$4 sm:$0xff]   ;;  %v5419_v1 = vld [vmem:[#allocation6 + $0x7e0] ss:$16 sps:$4 sm:$0xff]  }
 0x3da   : > { %3673 = vmatprep.subr.bf16.mxu1 %v5346_v2  ;;  %v5422_v2 = vld [vmem:[#allocation6 + $0x7e8] ss:$16 sps:$4 sm:$0xff]  }
 0x3dc   : > { %3510 = vmatpush1.bf16.msra.mxu0 %v5341_v3  ;;  %v1711_v3 = vmax.f32 %v1709_v55, %v1710_v59 }
 0x3dd   : > { %3674 = vmatpush1.bf16.msra.mxu1 %v5344_v4  ;;  %3511 = vmatprep.subr.bf16.mxu0 %v5349_v24  ;;  %v5427_v4 = vld [vmem:[#allocation8 + $0x4] ss:$8 sps:$4 sm:$0xff]   ;;  %v5425_v24 = vld [vmem:[#allocation8] ss:$8 sps:$4 sm:$0xff]  }
 0x3de   : > { %3675 = vmatprep.subr.bf16.mxu1 %v5352_v7  ;;  %v2079_v7 = vpack.c.bf16 %v1711_v3, %v1711_v3 }
 0x3e0   : > { %3512 = vmatpush1.bf16.msra.mxu0 %v5347_v8  ;;  %v5430_v8 = vld [vmem:[#allocation8 + $0x14] ss:$8 sps:$4 sm:$0xff]  }
 0x3e1   : > { %3676 = vmatpush1.bf16.msra.mxu1 %v5350_v12  ;;  %3513 = vmatprep.subr.bf16.mxu0 %v5355_v16  ;;  %v5428_v12 = vld [vmem:[#allocation8 + $0x10] ss:$8 sps:$4 sm:$0xff]   ;;  %v5433_v16 = vld [vmem:[#allocation8 + $0x24] ss:$8 sps:$4 sm:$0xff]  }
 0x3e2   : > { %3677 = vmatprep.subr.bf16.mxu1 %v5358_v10  ;;  %v5431_v10 = vld [vmem:[#allocation8 + $0x20] ss:$8 sps:$4 sm:$0xff]  }
 0x3e4   : > { %3514 = vmatpush1.bf16.msra.mxu0 %v5353_v5  ;;  %v5436_v5 = vld [vmem:[#allocation8 + $0x34] ss:$8 sps:$4 sm:$0xff]  }
 0x3e5   : > { %3678 = vmatpush1.bf16.msra.mxu1 %v5356_v23  ;;  %3515 = vmatprep.subr.bf16.mxu0 %v5361_v25  ;;  %v5434_v23 = vld [vmem:[#allocation8 + $0x30] ss:$8 sps:$4 sm:$0xff]   ;;  %v5439_v25 = vld [vmem:[#allocation8 + $0x44] ss:$8 sps:$4 sm:$0xff]  }
 0x3e6   : > { %3679 = vmatprep.subr.bf16.mxu1 %v5364_v6  ;;  %v5437_v6 = vld [vmem:[#allocation8 + $0x40] ss:$8 sps:$4 sm:$0xff]  }
 0x3e8   : > { %3516 = vmatpush1.bf16.msra.mxu0 %v5359_v61  ;;  %v5442_v61 = vld [vmem:[#allocation8 + $0x54] ss:$8 sps:$4 sm:$0xff]  }
 0x3e9   : > { %3680 = vmatpush1.bf16.msra.mxu1 %v5362_v26  ;;  %3517 = vmatprep.subr.bf16.mxu0 %v5367_v27  ;;  %v5440_v26 = vld [vmem:[#allocation8 + $0x50] ss:$8 sps:$4 sm:$0xff]   ;;  %v5445_v27 = vld [vmem:[#allocation8 + $0x64] ss:$8 sps:$4 sm:$0xff]  }
 0x3ea   : > { %3681 = vmatprep.subr.bf16.mxu1 %v5370_v28  ;;  %v5443_v28 = vld [vmem:[#allocation8 + $0x60] ss:$8 sps:$4 sm:$0xff]  }
 0x3ec   : > { %3518 = vmatpush1.bf16.msra.mxu0 %v5365_v29  ;;  %v5448_v29 = vld [vmem:[#allocation8 + $0x74] ss:$8 sps:$4 sm:$0xff]  }
 0x3ed   : > { %3682 = vmatpush1.bf16.msra.mxu1 %v5368_v60  ;;  %3519 = vmatprep.subr.bf16.mxu0 %v5373_v30  ;;  %v5446_v60 = vld [vmem:[#allocation8 + $0x70] ss:$8 sps:$4 sm:$0xff]   ;;  %v5451_v30 = vld [vmem:[#allocation8 + $0x84] ss:$8 sps:$4 sm:$0xff]  }
 0x3ee   : > { %3683 = vmatprep.subr.bf16.mxu1 %v5376_v31  ;;  %v5449_v31 = vld [vmem:[#allocation8 + $0x80] ss:$8 sps:$4 sm:$0xff]  }
 0x3f0   : > { %3520 = vmatpush1.bf16.msra.mxu0 %v5371_v17  ;;  %v5454_v17 = vld [vmem:[#allocation8 + $0x94] ss:$8 sps:$4 sm:$0xff]  }
 0x3f1   : > { %3684 = vmatpush1.bf16.msra.mxu1 %v5374_v22  ;;  %3521 = vmatprep.subr.bf16.mxu0 %v5379_v42  ;;  %v5452_v22 = vld [vmem:[#allocation8 + $0x90] ss:$8 sps:$4 sm:$0xff]   ;;  %v5457_v42 = vld [vmem:[#allocation8 + $0xa4] ss:$8 sps:$4 sm:$0xff]  }
 0x3f2   : > { %3685 = vmatprep.subr.bf16.mxu1 %v5382_v13  ;;  %v5455_v13 = vld [vmem:[#allocation8 + $0xa0] ss:$8 sps:$4 sm:$0xff]  }
 0x3f4   : > { %3522 = vmatpush1.bf16.msra.mxu0 %v5377_v35  ;;  %v5460_v35 = vld [vmem:[#allocation8 + $0xb4] ss:$8 sps:$4 sm:$0xff]  }
 0x3f5   : > { %3686 = vmatpush1.bf16.msra.mxu1 %v5380_v36  ;;  %3523 = vmatprep.subr.bf16.mxu0 %v5385_v19  ;;  %v5458_v36 = vld [vmem:[#allocation8 + $0xb0] ss:$8 sps:$4 sm:$0xff]   ;;  %v5463_v19 = vld [vmem:[#allocation8 + $0xc4] ss:$8 sps:$4 sm:$0xff]  }
 0x3f6   : > { %3687 = vmatprep.subr.bf16.mxu1 %v5388_v37  ;;  %v5461_v37 = vld [vmem:[#allocation8 + $0xc0] ss:$8 sps:$4 sm:$0xff]  }
 0x3f8   : > { %3524 = vmatpush1.bf16.msra.mxu0 %v5383_v21  ;;  %v5466_v21 = vld [vmem:[#allocation8 + $0xd4] ss:$8 sps:$4 sm:$0xff]  }
 0x3f9   : > { %3688 = vmatpush1.bf16.msra.mxu1 %v5386_v38  ;;  %3525 = vmatprep.subr.bf16.mxu0 %v5391_v11  ;;  %v5464_v38 = vld [vmem:[#allocation8 + $0xd0] ss:$8 sps:$4 sm:$0xff]   ;;  %v5469_v11 = vld [vmem:[#allocation8 + $0xe4] ss:$8 sps:$4 sm:$0xff]  }
 0x3fa   : > { %3689 = vmatprep.subr.bf16.mxu1 %v5394_v20  ;;  %v5467_v20 = vld [vmem:[#allocation8 + $0xe0] ss:$8 sps:$4 sm:$0xff]  }
 0x3fc   : > { %3526 = vmatpush1.bf16.msra.mxu0 %v5389_v39  ;;  %v5472_v39 = vld [vmem:[#allocation8 + $0xf4] ss:$8 sps:$4 sm:$0xff]  }
 0x3fd   : > { %3690 = vmatpush1.bf16.msra.mxu1 %v5392_v41  ;;  %3527 = vmatprep.subr.bf16.mxu0 %v5397_v32  ;;  %v5475_v41 = vld [vmem:[#allocation8 + $0x104] ss:$8 sps:$4 sm:$0xff]  }
 0x3fe   : > { %3691 = vmatprep.subr.bf16.mxu1 %v5400_v43  ;;  %v5521_v32 = vld [vmem:[#allocation9 + $0x40] sm:$0xff]  }
 0x3ff   : > { %v5522_v43 = vld [vmem:[#allocation9] sm:$0xff]  }
 0x400   : > { %3528 = vmatpush1.bf16.msra.mxu0 %v5395_v44  ;;  %v5523_v44 = vld [vmem:[#allocation9 + $0x48] sm:$0xff]  }
 0x401   : > { %3692 = vmatpush1.bf16.msra.mxu1 %v5398_v46  ;;  %3529 = vmatprep.subr.bf16.mxu0 %v5403_v47  ;;  %v5525_v46 = vld [vmem:[#allocation9 + $0x50] sm:$0xff]  }
 0x402   : > { %3693 = vmatprep.subr.bf16.mxu1 %v5406_v48  ;;  %v5526_v47 = vld [vmem:[#allocation9 + $0x10] sm:$0xff]   ;;  %v5527_v48 = vld [vmem:[#allocation9 + $0x58] sm:$0xff]  }
 0x404   : > { %3530 = vmatpush1.bf16.msra.mxu0 %v5401_v49  ;;  %v5528_v49 = vld [vmem:[#allocation9 + $0x18] sm:$0xff]  }
 0x405   : > { %3694 = vmatpush1.bf16.msra.mxu1 %v5404_v51  ;;  %3531 = vmatprep.subr.bf16.mxu0 %v5409_v52  ;;  %v5530_v51 = vld [vmem:[#allocation9 + $0x20] sm:$0xff]   ;;  %v5531_v52 = vld [vmem:[#allocation9 + $0x68] sm:$0xff]  }
 0x406   : > { %3695 = vmatprep.subr.bf16.mxu1 %v5412_v53  ;;  %v5532_v53 = vld [vmem:[#allocation9 + $0x28] sm:$0xff]  }
 0x408   : > { %3532 = vmatpush1.bf16.msra.mxu0 %v5407_v54  ;;  %v6209_v54 = vld [vmem:[%s6292_s8] sm:$0xf] }
 0x409   : > { %3696 = vmatpush1.bf16.msra.mxu1 %v5410_v9  ;;  %3533 = vmatprep.subr.bf16.mxu0 %v5415_v56  ;;  %v3365_v55 = vrot.slane %v6209_v54, %v6076_v15  ;;  %v3369_v9 = vrot.slane %v6209_v54, %v6085_v18  ;;  %v3377_v56 = vrot.slane %v6209_v54, %v877_v34 }
 0x40a   : > { %3697 = vmatprep.subr.bf16.mxu1 %v5418_v57 }
 0x40c   : > { %3534 = vmatpush1.bf16.msra.mxu0 %v5413_v58 }
 0x40d   : > { %3698 = vmatpush1.bf16.msra.mxu1 %v5416_v62  ;;  %3535 = vmatprep.subr.bf16.mxu0 %v5421_v63 }
 0x40e   : > { %3699 = vmatprep.subr.bf16.mxu1 %v5424_v0 }
 0x410   : > { %3536 = vmatpush1.bf16.msra.mxu0 %v5419_v1 }
 0x411   : > { %3700 = vmatpush1.bf16.msra.mxu1 %v5422_v2  ;;  %4049 = vmatprep.subr.bf16.mxu0 %v5427_v4 }
 0x412   : > { %4845 = vmatprep.subr.bf16.mxu1 %v5521_v32  ;;  %v3373_v32 = vrot.slane %v6209_v54, %v873_v33  ;;  %v5536_v33 = vld [vmem:[#allocation9 + $0x38] sm:$0xff]  }
 0x413   : > { %3538 = vmatmul.mubr.bf16.vlgmr.msra.gmra.mrb[16].mxu0 %v2079_v7 }
 0x414   : > { %3702 = vmatmul.mubr.bf16.vlgmr.msra.gmra.mrb[64].mxu1 %v2079_v7  ;;  %4050 = vmatpush1.bf16.msra.mxu0 %v5425_v24 }
 0x415   : > { %4051 = vmatprep.subr.bf16.mxu0 %v5430_v8  ;;  %4846 = vmatpush3.bf16.msra.mxu1 %v5522_v43  ;;  %v5517_v43 = vld [vmem:[#allocation8 + $0x1e4] ss:$8 sps:$4 sm:$0xff]  }
 0x416   : > { %4847 = vmatprep.subr.bf16.mxu1 %v5523_v44  ;;  %v5515_v44 = vld [vmem:[#allocation8 + $0x1e0] ss:$8 sps:$4 sm:$0xff]  }
 0x418   : > { %4052 = vmatpush1.bf16.msra.mxu0 %v5428_v12 }
 0x419   : > { %4053 = vmatprep.subr.bf16.mxu0 %v5433_v16  ;;  %4848 = vmatpush3.bf16.msra.mxu1 %v5524_v45 }
 0x41a   : > { %4849 = vmatprep.subr.bf16.mxu1 %v5525_v46  ;;  %v5520_v46 = vld [vmem:[#allocation8 + $0x1f4] ss:$8 sps:$4 sm:$0xff]  }
 0x41c   : > { %4054 = vmatpush1.bf16.msra.mxu0 %v5431_v10  ;;  %v5473_v10 = vld [vmem:[#allocation8 + $0x100] ss:$8 sps:$4 sm:$0xff]  }
 0x41d   : > { %4055 = vmatprep.subr.bf16.mxu0 %v5436_v5  ;;  %4850 = vmatpush3.bf16.msra.mxu1 %v5526_v47  ;;  %v5518_v47 = vld [vmem:[#allocation8 + $0x1f0] ss:$8 sps:$4 sm:$0xff]  }
 0x41e   : > { %4851 = vmatprep.subr.bf16.mxu1 %v5527_v48 }
 0x420   : > { %4056 = vmatpush1.bf16.msra.mxu0 %v5434_v23  ;;  %v5478_v23 = vld [vmem:[#allocation8 + $0x114] ss:$8 sps:$4 sm:$0xff]  }
 0x421   : > { %4057 = vmatprep.subr.bf16.mxu0 %v5439_v25  ;;  %4852 = vmatpush3.bf16.msra.mxu1 %v5528_v49  ;;  %v5476_v25 = vld [vmem:[#allocation8 + $0x110] ss:$8 sps:$4 sm:$0xff]  }
 0x422   : > { %4853 = vmatprep.subr.bf16.mxu1 %v5529_v50  ;;  %v5533_v50 = vld [vmem:[#allocation9 + $0x70] sm:$0xff]  }
 0x424   : > { %4058 = vmatpush1.bf16.msra.mxu0 %v5437_v6  ;;  %v5481_v6 = vld [vmem:[#allocation8 + $0x124] ss:$8 sps:$4 sm:$0xff]  }
 0x425   : > { %4059 = vmatprep.subr.bf16.mxu0 %v5442_v61  ;;  %4854 = vmatpush3.bf16.msra.mxu1 %v5530_v51  ;;  %v5479_v61 = vld [vmem:[#allocation8 + $0x120] ss:$8 sps:$4 sm:$0xff]   ;;  %v5534_v51 = vld [vmem:[#allocation9 + $0x30] sm:$0xff]  }
 0x426   : > { %4855 = vmatprep.subr.bf16.mxu1 %v5531_v52  ;;  %v2039_v52 = vld [vmem:[%s6294_s10] sm:$0x3] }
 0x427   : > { %v4046_v54 = vrot.slane %v2039_v52, %v6085_v18 }
 0x428   : > { %4060 = vmatpush1.bf16.msra.mxu0 %v5440_v26  ;;  %v5484_v26 = vld [vmem:[#allocation8 + $0x134] ss:$8 sps:$4 sm:$0xff]  }
 0x429   : > { %4061 = vmatprep.subr.bf16.mxu0 %v5445_v27  ;;  %4856 = vmatpush3.bf16.msra.mxu1 %v5532_v53  ;;  %v5482_v27 = vld [vmem:[#allocation8 + $0x130] ss:$8 sps:$4 sm:$0xff]   ;;  %v4042_v53 = vrot.slane %v2039_v52, %v6076_v15  ;;  %v2072_v15 = vld [vmem:[%s6332_s29] sm:$0x1] }
 0x42a   : > { %4857 = vmatprep.subr.bf16.mxu1 %v5533_v50 }
 0x42c   : > { %4062 = vmatpush1.bf16.msra.mxu0 %v5443_v28  ;;  %v5487_v28 = vld [vmem:[#allocation8 + $0x144] ss:$8 sps:$4 sm:$0xff]  }
 0x42d   : > { %4063 = vmatprep.subr.bf16.mxu0 %v5448_v29  ;;  %v5485_v29 = vld [vmem:[#allocation8 + $0x140] ss:$8 sps:$4 sm:$0xff]   ;;  %4858 = vmatpush3.bf16.msra.mxu1 %v5534_v51 }
 0x42e   : > { %4859 = vmatprep.subr.bf16.mxu1 %v5535_v14 }
 0x430   : > { %4064 = vmatpush1.bf16.msra.mxu0 %v5446_v60  ;;  %v5490_v60 = vld [vmem:[#allocation8 + $0x154] ss:$8 sps:$4 sm:$0xff]  }
 0x431   : > { %4065 = vmatprep.subr.bf16.mxu0 %v5451_v30  ;;  %v5488_v30 = vld [vmem:[#allocation8 + $0x150] ss:$8 sps:$4 sm:$0xff]   ;;  %4860 = vmatpush3.bf16.msra.mxu1 %v5536_v33 }
 0x434   : > { %4066 = vmatpush1.bf16.msra.mxu0 %v5449_v31  ;;  %v5493_v31 = vld [vmem:[#allocation8 + $0x164] ss:$8 sps:$4 sm:$0xff]  }
 0x435   : > { %4067 = vmatprep.subr.bf16.mxu0 %v5454_v17  ;;  %v5491_v17 = vld [vmem:[#allocation8 + $0x160] ss:$8 sps:$4 sm:$0xff]  }
 0x438   : > { %4068 = vmatpush1.bf16.msra.mxu0 %v5452_v22  ;;  %v5496_v22 = vld [vmem:[#allocation8 + $0x174] ss:$8 sps:$4 sm:$0xff]  }
 0x439   : > { %4069 = vmatprep.subr.bf16.mxu0 %v5457_v42  ;;  %v5494_v42 = vld [vmem:[#allocation8 + $0x170] ss:$8 sps:$4 sm:$0xff]  }
 0x43c   : > { %4070 = vmatpush1.bf16.msra.mxu0 %v5455_v13  ;;  %v5499_v13 = vld [vmem:[#allocation8 + $0x184] ss:$8 sps:$4 sm:$0xff]  }
 0x43d   : > { %4071 = vmatprep.subr.bf16.mxu0 %v5460_v35  ;;  %v5497_v35 = vld [vmem:[#allocation8 + $0x180] ss:$8 sps:$4 sm:$0xff]  }
 0x440   : > { %4072 = vmatpush1.bf16.msra.mxu0 %v5458_v36  ;;  %v5502_v36 = vld [vmem:[#allocation8 + $0x194] ss:$8 sps:$4 sm:$0xff]  }
 0x441   : > { %4073 = vmatprep.subr.bf16.mxu0 %v5463_v19  ;;  %v5500_v19 = vld [vmem:[#allocation8 + $0x190] ss:$8 sps:$4 sm:$0xff]  }
 0x444   : > { %4074 = vmatpush1.bf16.msra.mxu0 %v5461_v37  ;;  %v5505_v37 = vld [vmem:[#allocation8 + $0x1a4] ss:$8 sps:$4 sm:$0xff]  }
 0x445   : > { %4075 = vmatprep.subr.bf16.mxu0 %v5466_v21  ;;  %v5503_v21 = vld [vmem:[#allocation8 + $0x1a0] ss:$8 sps:$4 sm:$0xff]  }
 0x448   : > { %4076 = vmatpush1.bf16.msra.mxu0 %v5464_v38  ;;  %v5508_v38 = vld [vmem:[#allocation8 + $0x1b4] ss:$8 sps:$4 sm:$0xff]  }
 0x449   : > { %4077 = vmatprep.subr.bf16.mxu0 %v5469_v11  ;;  %v5506_v11 = vld [vmem:[#allocation8 + $0x1b0] ss:$8 sps:$4 sm:$0xff]  }
 0x44c   : > { %4078 = vmatpush1.bf16.msra.mxu0 %v5467_v20  ;;  %v5511_v20 = vld [vmem:[#allocation8 + $0x1c4] ss:$8 sps:$4 sm:$0xff]  }
 0x44d   : > { %4079 = vmatprep.subr.bf16.mxu0 %v5472_v39  ;;  %v5509_v39 = vld [vmem:[#allocation8 + $0x1c0] ss:$8 sps:$4 sm:$0xff]  }
 0x450   : > { %4080 = vmatpush1.bf16.msra.mxu0 %v5470_v40  ;;  %v5514_v40 = vld [vmem:[#allocation8 + $0x1d4] ss:$8 sps:$4 sm:$0xff]  }
 0x451   : > { %4090 = vmatprep.subr.bf16.mxu0 %v5475_v41  ;;  %v5512_v41 = vld [vmem:[#allocation8 + $0x1d0] ss:$8 sps:$4 sm:$0xff]  }
 0x4e6   : > { %v3539_v57 = vpop.f32.mrb[16].mxu0 }
 0x4e7   : > { %v4893_v58 = vadd.f32 %v3539_v57, %v3365_v55  ;;  %v6218_v59 = vpop.f32.mrb[64].mxu1  ;;  %v3541_v62 = vpop.f32.mrb[17].mxu0 }
 0x4e8   : > { %v4894_v63 = vadd.f32 %v3541_v62, %v3369_v9  ;;  %v3705_v0 = vpop.f32.mrb[65].mxu1  ;;  %v3543_v1 = vpop.f32.mrb[18].mxu0  ;;  %v4895_v45 = vadd.f32 %v6218_v59, %v3373_v32 }
 0x4e9   : > { %v3710_v2 = vmax.f32 %v4893_v58, 0.0  ;;  %v4896_v3 = vadd.f32 %v3705_v0, %v3377_v56  ;;  %v3707_v4 = vpop.f32.mrb[66].mxu1  ;;  %v3544_v24 = vpop.f32.mrb[19].mxu0 }
 0x4ea   : > { %v3711_v7 = vmax.f32 %v4894_v63, 0.0  ;;  %v3708_v8 = vpop.f32.mrb[67].mxu1  ;;  %v3712_v48 = vmax.f32 %v4895_v45, 0.0 }
 0x4eb   : > { %v3713_v12 = vmax.f32 %v4896_v3, 0.0  ;;  %v3714_v5 = vpack.c.bf16 %v3710_v2, %v3710_v2 }
 0x4ec   : > { %v3715_v16 = vpack.c.bf16 %v3711_v7, %v3711_v7  ;;  %v3716_v49 = vpack.c.bf16 %v3712_v48, %v3712_v48 }
 0x4ed   : > { %v3717_v34 = vpack.c.bf16 %v3713_v12, %v3713_v12 }
 0x4ee   : > { %4081 = vmatprep.mubr.bf16.mxu0 %v3715_v16 }
 0x4ef   : > { %4082 = vmatmul.mubr.bf16.vlgmr.msra.gmra.mrb[20].mxu0 %v3714_v5 }
 0x4f0   : > { %4091 = vmatpush1.bf16.msra.mxu0 %v5473_v10  ;;  %4122 = vmatprep.mubr.bf16.mxu0 %v3717_v34 }
 0x4f1   : > { %4092 = vmatprep.subr.bf16.mxu0 %v5478_v23 }
 0x4f4   : > { %4093 = vmatpush1.bf16.msra.mxu0 %v5476_v25 }
 0x4f5   : > { %4094 = vmatprep.subr.bf16.mxu0 %v5481_v6 }
 0x4f8   : > { %4095 = vmatpush1.bf16.msra.mxu0 %v5479_v61 }
 0x4f9   : > { %4096 = vmatprep.subr.bf16.mxu0 %v5484_v26 }
 0x4fc   : > { %4097 = vmatpush1.bf16.msra.mxu0 %v5482_v27 }
 0x4fd   : > { %4098 = vmatprep.subr.bf16.mxu0 %v5487_v28 }
 0x500   : > { %4099 = vmatpush1.bf16.msra.mxu0 %v5485_v29 }
 0x501   : > { %4100 = vmatprep.subr.bf16.mxu0 %v5490_v60 }
 0x504   : > { %4101 = vmatpush1.bf16.msra.mxu0 %v5488_v30 }
 0x505   : > { %4102 = vmatprep.subr.bf16.mxu0 %v5493_v31 }
 0x508   : > { %4103 = vmatpush1.bf16.msra.mxu0 %v5491_v17 }
 0x509   : > { %4104 = vmatprep.subr.bf16.mxu0 %v5496_v22 }
 0x50c   : > { %4105 = vmatpush1.bf16.msra.mxu0 %v5494_v42 }
 0x50d   : > { %4106 = vmatprep.subr.bf16.mxu0 %v5499_v13 }
 0x510   : > { %4107 = vmatpush1.bf16.msra.mxu0 %v5497_v35 }
 0x511   : > { %4108 = vmatprep.subr.bf16.mxu0 %v5502_v36 }
 0x514   : > { %4109 = vmatpush1.bf16.msra.mxu0 %v5500_v19 }
 0x515   : > { %4110 = vmatprep.subr.bf16.mxu0 %v5505_v37 }
 0x518   : > { %4111 = vmatpush1.bf16.msra.mxu0 %v5503_v21 }
 0x519   : > { %4112 = vmatprep.subr.bf16.mxu0 %v5508_v38 }
 0x51c   : > { %4113 = vmatpush1.bf16.msra.mxu0 %v5506_v11 }
 0x51d   : > { %4114 = vmatprep.subr.bf16.mxu0 %v5511_v20 }
 0x520   : > { %4115 = vmatpush1.bf16.msra.mxu0 %v5509_v39 }
 0x521   : > { %4116 = vmatprep.subr.bf16.mxu0 %v5514_v40 }
 0x524   : > { %4117 = vmatpush1.bf16.msra.mxu0 %v5512_v41 }
 0x525   : > { %4118 = vmatprep.subr.bf16.mxu0 %v5517_v43 }
 0x528   : > { %4119 = vmatpush1.bf16.msra.mxu0 %v5515_v44 }
 0x529   : > { %4120 = vmatprep.subr.bf16.mxu0 %v5520_v46 }
 0x52c   : > { %4121 = vmatpush1.bf16.msra.mxu0 %v5518_v47 }
 0x52f   : > { %4123 = vmatmul.mubr.bf16.vlgmr.msra.gmra.mrb[20].mxu0 %v3716_v49 }
 0x602   : > { %v4124_v55 = vpop.f32.mrb[20].mxu0 }
 0x603   : > { %v4897_v9 = vadd.f32 %v4124_v55, %v4042_v53  ;;  %v4126_v56 = vpop.f32.mrb[21].mxu0 }
 0x604   : > { %v4898_v57 = vadd.f32 %v4126_v56, %v4046_v54  ;;  %v4128_v58 = vpop.f32.mrb[22].mxu0 }
 0x605   : > { %v4131_v59 = vmax.f32 %v4897_v9, 0.0  ;;  %v4129_v62 = vpop.f32.mrb[23].mxu0 }
 0x606   : > { %v4132_v63 = vmax.f32 %v4898_v57, 0.0 }
 0x607   : > { %v4133_v1 = vpack.c.bf16 %v4131_v59, %v4131_v59 }
 0x608   : > { %v4134_v0 = vpack.c.bf16 %v4132_v63, %v4132_v63 }
 0x60a   : > { %4263 = vmatprep.mubr.bf16.mxu1 %v4134_v0 }
 0x60b   : > { %4264 = vmatmul.mubr.bf16.vlgmr.msra.gmra.mrb[68].mxu1 %v4133_v1 }
 0x6de   : > { %v4861_v2 = vpop.f32.mrb[68].mxu1 }
 0x6df   : > { %v4862_v18 = vpop.f32.mrb[69].mxu1 }
 0x6e0   : > { %v4863_v3 = vadd.f32 %v4862_v18, %v4861_v2  ;;  %v4864_v4 = vpop.f32.mrb[70].mxu1 }
 0x6e1   : > { %v4865_v24 = vpop.f32.mrb[71].mxu1 }
 0x6e2   : > { %v4266_v7 = vadd.f32 %v4863_v3, %v2072_v15 }
 0x6e4   : > { %4271 = vst [vmem:[%s514_s20] sm:$0x1] %v4266_v7 }
 0x6e5   : > { %5662 = shalt.err (!%p5659_p6)
}
 0x6e6   : > { %s5663_s30 = scalar_lea.hbm %s6237_s22, 16  ;;  %s5667_s17 = scalar_lea.hbm %s6334_s12, 32 }
 0x6e7   : > { %p5664_p7 = scmp.ne.s32.totalorder %s6237_s22, %s5663_s30  ;;  %p5668_p4 = scmp.lt.u32.totalorder %s6237_s22, %s6334_s12 }
 0x6e8   : > { %p5669_p8 = scmp.lt.u32.totalorder %s5667_s17, %s5663_s30  ;;  %p5671_p1 = scmp.lt.u32.totalorder %s5663_s30, %s6237_s22 }
 0x6e9   : > { %p5665_p9 = pnand %p5664_p7, %p6335_p10 }
 0x6ea   : > { %p5670_p13 = por %p5669_p8, %p5668_p4 }
 0x6eb   : > { %p5666_p12 = pneg %p5665_p9 }
 0x6ec   : > { %p5672_p11 = por %p5671_p1, %p5670_p13 }
 0x6ee   : > { %p5673_p0 = pnand %p5672_p11, %p5666_p12 }
 0x6f0   : > { %5676 = shalt.err (!%p5673_p0)
}
 0x6f1   : > { %4944 = dma.vmem_to_hbm [thread:$0]  (%p6335_p10), %s6239_s13, 16, %s6237_s22, %s4273_s19  }
 0x6f2 PF: > { %s6336_s16 = sld [smem:[#allocation19_spill]]  ;;  %s6337_s20 = sld [smem:[#allocation16_spill]] }
 0x6f3   : > { %s6338_s18 = sld [smem:[#allocation22_spill]] }
 0x6f8   : > { %p4971_p2 = scmp.ge.s32.totalorder %s6336_s16, 2  ;;  %s4297_s7 = sand.u32 1, %s6337_s20  }
 0x6f9   : > { %p6339_p3 = scmp.ne.s32.totalorder %s6338_s18, 0  ;;  %s4298_s24 = scalar_lea.sflag [#allocation5], %s4297_s7 }
 0x6fb   : > { %p4960_p5 = pnand %p4971_p2, %p6339_p3 }
 0x6fd   : > { %5714 = dma.done.wait (!%p4960_p5), %s4298_s24, 16  }
 0x6fe   : > { %5716 = vsyncadd (!%p4960_p5), %s4298_s24, 4294967280  ;;  %s29_s30 = sadd.s32 1, %s6336_s16   ;;  %s6340_s28 = sld [smem:[#allocation17_spill]] }
 0x6ff   : > { %p26_p6 = scmp.ge.s32.totalorder %s29_s30, 4   ;;  %s6341_s27 = sld [smem:[#allocation23_spill]] }
 0x700   : > { %s6342_s15 = sld [smem:[#allocation18_spill]]  ;;  %s6343_s29 = sld [smem:[#allocation20_spill]] }
 0x701   : > { %s6344_s25 = smov %s5723_s26  ;;  %28 = sbr.rel (!%p26_p6) target bundleno = 11 (0xb), region = 132 }
 0x704   : > { %s6345_s26 = smov %s6340_s28 }
 0x706   : > { %s6346_s28 = smov %s6342_s15 }
 0x708   :  { %4302 = vsyncpa [#allocation4], 1 }
 0x709   :  { %4304 = vsyncpa [#allocation4 + $0x1], 1 }
 0x70a   :  { %4305 = vsyncpa [#allocation7], 1 }
 0x70b   :  { %4306 = vsyncpa [#allocation10], 1 }
 0x70c   :  { %4307 = vsyncpa [#allocation5], 1 }
 0x70d   :  { %4309 = vsyncpa [#allocation5 + $0x1], 1 }

</bundles_post_ra>
